<compile_context>
chip_gen: v7x
topology: tpu7x:2x2x1
jax: 0.10.0
libtpu: 0.0.40
codegen_flags: <defaults>
</compile_context>

<pallas_src>
import functools

import numpy as np
import jax
import jax.numpy as jnp
from jax.experimental import pallas as pl
from jax.experimental.pallas import tpu as pltpu


# ---------------------------------------------------------------------------
# Helpers
# ---------------------------------------------------------------------------
def _round_up(x, m):
    return ((x + m - 1) // m) * m


def _spatial_tiling(S, max_tile):
    """Return (S_pad, tile_s): tile_s a multiple of 128, S_pad % tile_s == 0."""
    max_tile = max(128, (max_tile // 128) * 128)
    tile = min(_round_up(S, 128), max_tile)
    return _round_up(S, tile), tile


def _pad_last(x, S_pad, value=0):
    S = x.shape[-1]
    if S_pad == S:
        return x
    pad = [(0, 0)] * (x.ndim - 1) + [(0, S_pad - S)]
    return jnp.pad(x, pad, constant_values=value)


def _bcast_write(ref, value):
    """Write a scalar partial into a lane/sublane-dense (...,8,128) out block."""
    ref[...] = jnp.zeros(ref.shape, jnp.float32) + value


# ---------------------------------------------------------------------------
# Cross-entropy (semantic segmentation)
#   logits: [B, C, S_pad]  (class on sublanes, spatial on lanes — lane dense)
#   labels: [B, 1, S_pad]  int32, padded positions = -1 (masked in-kernel)
# ---------------------------------------------------------------------------
def _ce_kernel(logits_ref, labels_ref, out_ref):
    x = logits_ref[0].astype(jnp.float32)                    # (C, tile_S)
    lab = labels_ref[0]                                      # (1, tile_S) int32
    m = jnp.max(x, axis=0, keepdims=True)
    lse = jnp.log(jnp.sum(jnp.exp(x - m), axis=0, keepdims=True)) + m
    cls_ids = jax.lax.broadcasted_iota(jnp.int32, x.shape, 0)
    picked = jnp.sum(jnp.where(cls_ids == lab, x, 0.0), axis=0, keepdims=True)
    contrib = jnp.where(lab >= 0, lse - picked, 0.0)         # padding -> 0
    _bcast_write(out_ref, jnp.sum(contrib))


def _ce_mean(logits_bcs, labels_b1s, *, max_tile=2048):
    B, C, S = logits_bcs.shape
    S_pad, tile_s = _spatial_tiling(S, max_tile)
    num_s = S_pad // tile_s
    logits = _pad_last(logits_bcs, S_pad)                    # native dtype
    labels = _pad_last(labels_b1s.astype(jnp.int32), S_pad, value=-1)
    partials = pl.pallas_call(
        _ce_kernel,
        out_shape=jax.ShapeDtypeStruct((B, num_s, 8, 128), jnp.float32),
        grid=(B, num_s),
        in_specs=[pl.BlockSpec((1, C, tile_s), lambda b, s: (b, 0, s)),
                  pl.BlockSpec((1, 1, tile_s), lambda b, s: (b, 0, s))],
        out_specs=pl.BlockSpec((1, 1, 8, 128), lambda b, s: (b, s, 0, 0)),
        compiler_params=pltpu.CompilerParams(
            dimension_semantics=("parallel", "parallel")),
    )(logits, labels)
    return jnp.sum(partials[:, :, 0, 0]) / (B * S)


def semantic_cross_entropy(pred_nchw, labels_nhw):
    B, C, H, W = pred_nchw.shape
    return _ce_mean(pred_nchw.reshape(B, C, H * W),
                    labels_nhw.reshape(B, 1, H * W))


# ---------------------------------------------------------------------------
# Cross-entropy (image classification) — [N, C], classes on lanes, no transpose
# ---------------------------------------------------------------------------
def _cls_ce_kernel(logits_ref, labels_ref, out_ref):
    x = logits_ref[...].astype(jnp.float32)                  # (N, C)
    lab = labels_ref[...]                                    # (N, 1) int32
    m = jnp.max(x, axis=1, keepdims=True)
    lse = jnp.log(jnp.sum(jnp.exp(x - m), axis=1, keepdims=True)) + m
    ids = jax.lax.broadcasted_iota(jnp.int32, x.shape, 1)
    picked = jnp.sum(jnp.where(ids == lab, x, 0.0), axis=1, keepdims=True)
    out_ref[0] = jnp.sum(lse - picked)


def classification_cross_entropy(logits_nc, labels_n):
    N, _ = logits_nc.shape
    total = pl.pallas_call(
        _cls_ce_kernel,
        out_shape=jax.ShapeDtypeStruct((1,), jnp.float32),
        in_specs=[pl.BlockSpec(memory_space=pltpu.MemorySpace.VMEM),
                  pl.BlockSpec(memory_space=pltpu.MemorySpace.VMEM)],
        out_specs=pl.BlockSpec(memory_space=pltpu.MemorySpace.SMEM),
    )(logits_nc, labels_n.astype(jnp.int32).reshape(N, 1))
    return total[0] / N


# ---------------------------------------------------------------------------
# Focal loss (detection classification head)
#   logits: [B, 9C, S_pad] (native conv layout, spatial on lanes)
#   onehot: [B, 9C, 1]     (compact, broadcast in-kernel across lanes)
# ---------------------------------------------------------------------------
def _focal_kernel(logits_ref, onehot_ref, out_ref, *, alpha, gamma, tile_s, s_valid):
    x = logits_ref[0].astype(jnp.float32)                    # (9C, tile_S)
    t = onehot_ref[0]                                        # (9C, 1) -> lane bcast
    e = jnp.exp(-jnp.abs(x))
    bce = jnp.maximum(x, 0.0) - x * t + jnp.log1p(e)
    inv = pl.reciprocal(1.0 + e, approx=True)                # EUP relief
    sig = jnp.where(x >= 0, inv, e * inv)
    pt = (1.0 - sig) * t + sig * (1.0 - t)
    pt_pow = pt * pt if gamma == 2.0 else jnp.power(pt, gamma)
    fw = (alpha * t + (1.0 - alpha) * (1.0 - t)) * pt_pow
    col = jax.lax.broadcasted_iota(jnp.int32, (1, tile_s), 1) + pl.program_id(1) * tile_s
    valid = (col < s_valid).astype(jnp.float32)              # mask padded lanes
    _bcast_write(out_ref, jnp.sum(bce * fw * valid))


def focal_loss(pred_levels, target_labels, *, alpha=0.25, gamma=2.0, max_tile=1024):
    B = pred_levels[0].shape[0]
    C = pred_levels[0].shape[1] // 9
    # one-hot of "classes present in the image" (matches reference's scatter
    # over the expanded target), kept compact: [B, C] -> [B, 9C, 1]
    onehot_bc = (target_labels[:, :, None] == jnp.arange(C)[None, None, :]).any(axis=1)
    onehot = jnp.tile(onehot_bc.astype(jnp.float32), (1, 9))[:, :, None]

    total_sum = jnp.float32(0.0)
    total_cnt = 0
    # TODO(synk): fold FPN levels into one pallas_call (pl.ANY inputs +
    # scalar-prefetched per-level offsets) to amortize launch overhead.
    for p in pred_levels:
        h, w = p.shape[-2:]
        S = h * w
        S_pad, tile_s = _spatial_tiling(S, max_tile)
        num_s = S_pad // tile_s
        logits = _pad_last(p.reshape(B, 9 * C, S), S_pad)    # native dtype
        partials = pl.pallas_call(
            functools.partial(_focal_kernel, alpha=alpha, gamma=gamma,
                              tile_s=tile_s, s_valid=S),
            out_shape=jax.ShapeDtypeStruct((B, num_s, 8, 128), jnp.float32),
            grid=(B, num_s),
            in_specs=[pl.BlockSpec((1, 9 * C, tile_s), lambda b, s: (b, 0, s)),
                      pl.BlockSpec((1, 9 * C, 1), lambda b, s: (b, 0, 0))],
            out_specs=pl.BlockSpec((1, 1, 8, 128), lambda b, s: (b, s, 0, 0)),
            compiler_params=pltpu.CompilerParams(
                dimension_semantics=("parallel", "parallel")),
        )(logits, onehot)
        total_sum = total_sum + jnp.sum(partials[:, :, 0, 0])
        total_cnt += B * 9 * S * C
    return total_sum / total_cnt


# ---------------------------------------------------------------------------
# Smooth L1 detection regression (IoU matching + masked smooth-L1 sum)
#   pred: [B, 36, R, 128]  native layout folded to dense (rows, 128) planes;
#         coordinate c of anchor-group k is sublane row 4*k + c.
#   tgt : [B*T*4] f32 in SMEM (scalar -> vreg broadcasts in-kernel)
# ---------------------------------------------------------------------------
def _detreg_kernel(pred_ref, tgt_ref, sum_ref, cnt_ref, *, T, beta):
    b = pl.program_id(0)
    pf = pred_ref[0].astype(jnp.float32)                     # (36, rows, 128)
    tile_sum = jnp.float32(0.0)
    tile_cnt = jnp.float32(0.0)
    for k in range(9):                                       # anchor groups (static)
        px1 = pf[4 * k + 0]
        py1 = pf[4 * k + 1]
        px2 = pf[4 * k + 2]
        py2 = pf[4 * k + 3]
        area_p = (px2 - px1) * (py2 - py1)
        best_iou = jnp.full_like(px1, -1.0)
        bx1 = jnp.zeros_like(px1)
        by1 = jnp.zeros_like(px1)
        bx2 = jnp.zeros_like(px1)
        by2 = jnp.zeros_like(px1)
        for t in range(T):                                   # targets (small, static)
            base = (b * T + t) * 4
            tx1 = tgt_ref[base + 0]
            ty1 = tgt_ref[base + 1]
            tx2 = tgt_ref[base + 2]
            ty2 = tgt_ref[base + 3]
            ix1 = jnp.maximum(px1, tx1)
            iy1 = jnp.maximum(py1, ty1)
            ix2 = jnp.minimum(px2, tx2)
            iy2 = jnp.minimum(py2, ty2)
            inter = jnp.maximum(ix2 - ix1, 0.0) * jnp.maximum(iy2 - iy1, 0.0)
            area_t = (tx2 - tx1) * (ty2 - ty1)
            iou = inter / (area_p + area_t - inter + 1e-6)
            upd = iou > best_iou                             # strict '>' keeps first max
            best_iou = jnp.where(upd, iou, best_iou)
            bx1 = jnp.where(upd, tx1, bx1)
            by1 = jnp.where(upd, ty1, by1)
            bx2 = jnp.where(upd, tx2, bx2)
            by2 = jnp.where(upd, ty2, by2)
        pos = (best_iou > 0.5).astype(jnp.float32)           # zero-padded anchors -> iou 0

        def sl1(d):
            ad = jnp.abs(d)
            return jnp.where(ad < beta, 0.5 * d * d / beta, ad - 0.5 * beta)

        per_anchor = sl1(px1 - bx1) + sl1(py1 - by1) + sl1(px2 - bx2) + sl1(py2 - by2)
        tile_sum = tile_sum + jnp.sum(per_anchor * pos)
        tile_cnt = tile_cnt + jnp.sum(pos)
    _bcast_write(sum_ref, tile_sum)
    _bcast_write(cnt_ref, tile_cnt)


def smooth_l1_detection(pred_levels, tgt_boxes, *, beta=1.0, max_rows=8):
    B = pred_levels[0].shape[0]
    T = tgt_boxes.shape[1]
    tgt_flat = tgt_boxes.astype(jnp.float32).reshape(-1)     # [B*T*4] -> SMEM

    sum_loss = jnp.float32(0.0)
    num_pos = jnp.float32(0.0)
    for p in pred_levels:
        h, w = p.shape[-2:]
        S = h * w
        if S <= 128 * max_rows:
            S_pad = _round_up(S, 128)
            rows_tile = S_pad // 128                         # full extent
        else:
            S_pad = _round_up(S, 128 * max_rows)
            rows_tile = max_rows
        R = S_pad // 128
        num_r = R // rows_tile
        # native [B, 36, H*W]; zero-pad lanes (padded anchors never match),
        # fold to dense (rows, 128) planes — no transpose / concat round-trip.
        pred = _pad_last(p.reshape(B, 36, S), S_pad).reshape(B, 36, R, 128)
        sums, cnts = pl.pallas_call(
            functools.partial(_detreg_kernel, T=T, beta=beta),
            out_shape=(jax.ShapeDtypeStruct((B, num_r, 8, 128), jnp.float32),
                       jax.ShapeDtypeStruct((B, num_r, 8, 128), jnp.float32)),
            grid=(B, num_r),
            in_specs=[pl.BlockSpec((1, 36, rows_tile, 128), lambda b, r: (b, 0, r, 0)),
                      pl.BlockSpec(memory_space=pltpu.MemorySpace.SMEM)],
            out_specs=(pl.BlockSpec((1, 1, 8, 128), lambda b, r: (b, r, 0, 0)),
                       pl.BlockSpec((1, 1, 8, 128), lambda b, r: (b, r, 0, 0))),
            compiler_params=pltpu.CompilerParams(
                dimension_semantics=("parallel", "parallel")),
        )(pred, tgt_flat)
        sum_loss = sum_loss + jnp.sum(sums[:, :, 0, 0])
        num_pos = num_pos + jnp.sum(cnts[:, :, 0, 0])
    # torch uses boolean indexing pred[pos_mask]; dense masked reduction is
    # numerically identical, incl. the "no positives -> 0" branch.
    return jnp.where(num_pos > 0.0, sum_loss / jnp.maximum(num_pos, 1.0), 0.0)


# ---------------------------------------------------------------------------
# Depth loss: bilinear resize via bf16 MXU matmuls + L1, gridded over batch
# ---------------------------------------------------------------------------
def _depth_kernel(pred_ref, tgt_ref, r_ref, ct_ref, out_ref):
    p = pred_ref[0].astype(jnp.bfloat16)                     # (hp, wp)
    cols = jnp.dot(p, ct_ref[...], preferred_element_type=jnp.float32)   # (hp, Wt)
    up = jnp.dot(r_ref[...], cols.astype(jnp.bfloat16),
                 preferred_element_type=jnp.float32)                     # (Ht, Wt)
    _bcast_write(out_ref, jnp.sum(jnp.abs(up - tgt_ref[0].astype(jnp.float32))))


def _bilinear_matrix(out_size, in_size):
    # matches F.interpolate(mode='bilinear', align_corners=False)
    scale = in_size / out_size
    m = np.zeros((out_size, in_size), np.float32)
    for i in range(out_size):
        src = max((i + 0.5) * scale - 0.5, 0.0)
        i0 = min(int(np.floor(src)), in_size - 1)
        i1 = min(i0 + 1, in_size - 1)
        lam = src - i0
        m[i, i0] += 1.0 - lam
        m[i, i1] += lam
    return m


def depth_l1(pred, target):
    B, _, hp, wp = pred.shape
    _, _, Ht, Wt = target.shape
    # bf16 matmul operands (f32 accumulation); tiny drift vs fp32 bilinear.
    r = jnp.asarray(_bilinear_matrix(Ht, hp), dtype=jnp.bfloat16)     # (Ht, hp)
    ct = jnp.asarray(_bilinear_matrix(Wt, wp).T, dtype=jnp.bfloat16)  # (wp, Wt)
    partials = pl.pallas_call(
        _depth_kernel,
        out_shape=jax.ShapeDtypeStruct((B, 8, 128), jnp.float32),
        grid=(B,),
        in_specs=[pl.BlockSpec((1, hp, wp), lambda b: (b, 0, 0)),
                  pl.BlockSpec((1, Ht, Wt), lambda b: (b, 0, 0)),
                  pl.BlockSpec((Ht, hp), lambda b: (0, 0)),     # resident
                  pl.BlockSpec((wp, Wt), lambda b: (0, 0))],    # resident
        out_specs=pl.BlockSpec((1, 8, 128), lambda b: (b, 0, 0)),
        compiler_params=pltpu.CompilerParams(dimension_semantics=("parallel",)),
    )(pred[:, 0], target[:, 0], r, ct)
    # TODO(synk): tile Wt as an extra grid axis for very large depth maps.
    return jnp.sum(partials[:, 0, 0]) / (B * Ht * Wt)


# ---------------------------------------------------------------------------
# MultiTaskLoss.forward  (whole forward is jitted; no host syncs inside)
# ---------------------------------------------------------------------------
def make_multitask_loss(config):
    lw = config['training']['loss']
    use_uw = bool(lw['uncertainty_weighting'])
    w_sem = float(lw['semantic_weight'])
    w_det = float(lw['detection_weight'])
    w_cls = float(lw['classification_weight'])
    w_dep = float(lw['depth_weight'])

    @jax.jit
    def _loss(preds, targets, uncertainty_weights):
        semantic_loss = semantic_cross_entropy(preds['semantic'], targets['semantic'])
        detection_cls_loss = focal_loss(preds['detection_cls'], targets['detection_cls'])
        detection_reg_loss = smooth_l1_detection(preds['detection_reg'],
                                                 targets['detection_boxes'])
        detection_loss = detection_cls_loss + detection_reg_loss
        classification_loss = classification_cross_entropy(preds['classification'],
                                                           targets['classification'])
        depth_loss = depth_l1(preds['depth'], targets['depth'])

        if use_uw:
            losses = jnp.stack([semantic_loss, detection_loss,
                                classification_loss, depth_loss])
            total = (jnp.sum(losses * uncertainty_weights)
                     + jnp.log(jnp.prod(uncertainty_weights)))
        else:
            total = (w_sem * semantic_loss + w_det * detection_loss
                     + w_cls * classification_loss + w_dep * depth_loss)

        loss_dict = {'total': total, 'semantic': semantic_loss,
                     'detection': detection_loss,
                     'classification': classification_loss,
                     'depth': depth_loss}
        return total, loss_dict

    return _loss


if __name__ == "__main__":
    key = jax.random.PRNGKey(0)
    ks = jax.random.split(key, 12)

    B = 2
    C_SEM, H_SEM, W_SEM = 8, 16, 16
    NUM_DET_CLS, H_DET, W_DET = 4, 8, 8
    NUM_OBJ = 3
    NUM_CLS = 8

    config = {'training': {'loss': {'semantic_weight': 1.0, 'detection_weight': 1.0,
                                    'classification_weight': 1.0, 'depth_weight': 1.0,
                                    'uncertainty_weighting': True}}}

    semantic_pred = jax.random.normal(ks[0], (B, C_SEM, H_SEM, W_SEM), jnp.float32)
    semantic_tgt = jax.random.randint(ks[1], (B, H_SEM, W_SEM), 0, C_SEM)

    det_cls_pred = [jax.random.normal(ks[2], (B, 9 * NUM_DET_CLS, H_DET, W_DET), jnp.float32)]
    det_cls_tgt = jax.random.randint(ks[3], (B, NUM_OBJ), 0, NUM_DET_CLS)

    # target boxes (x1, y1, x2, y2)
    xy = jax.random.uniform(ks[4], (B, NUM_OBJ, 2), minval=0.0, maxval=0.5)
    wh = jax.random.uniform(ks[5], (B, NUM_OBJ, 2), minval=0.2, maxval=0.5)
    det_boxes_tgt = jnp.concatenate([xy, xy + wh], axis=-1)            # [B, T, 4]

    # predicted boxes: perturbed copies of targets, laid out as conv output [B, 36, H, W]
    P = H_DET * W_DET
    idx = jnp.arange(P) % NUM_OBJ
    base = det_boxes_tgt[:, idx, :]                                    # [B, P, 4]
    base = jnp.broadcast_to(base[:, None, :, :], (B, 9, P, 4))
    noise = 0.05 * jax.random.normal(ks[6], (B, 9, P, 4), jnp.float32)
    det_reg_logical = base + noise                                     # [B, 9, P, 4]
    det_reg_pred = [det_reg_logical.transpose(0, 1, 3, 2).reshape(B, 9 * 4, H_DET, W_DET)]

    cls_pred = jax.random.normal(ks[7], (B, NUM_CLS), jnp.float32)
    cls_tgt = jax.random.randint(ks[8], (B,), 0, NUM_CLS)

    depth_pred = jax.random.normal(ks[9], (B, 1, 8, 8), jnp.float32)
    depth_tgt = jax.random.normal(ks[10], (B, 1, 16, 16), jnp.float32)

    uncertainty_weights = jax.random.uniform(ks[11], (4,), minval=0.5, maxval=1.5)

    preds = {'semantic': semantic_pred, 'detection_cls': det_cls_pred,
             'detection_reg': det_reg_pred, 'classification': cls_pred,
             'depth': depth_pred}
    targets = {'semantic': semantic_tgt, 'detection_cls': det_cls_tgt,
               'detection_boxes': det_boxes_tgt, 'classification': cls_tgt,
               'depth': depth_tgt}

    loss_fn = make_multitask_loss(config)
    total, loss_dict = loss_fn(preds, targets, uncertainty_weights)
    jax.block_until_ready(total)
    # host conversion only at the "logging" site, after the jitted compute
    _logged = {k: float(v) for k, v in loss_dict.items()}
    print("KERNEL_OK")
</pallas_src>

<mosaic_0001>
module attributes {stable_mosaic.version = 11 : i64} {
  func.func @_focal_kernel(%arg0: i32, %arg1: i32, %arg2: memref<1x36x128xf32, #tpu.memory_space<vmem>>, %arg3: memref<1x36x1xf32, #tpu.memory_space<vmem>>, %arg4: memref<1x1x8x128xf32, #tpu.memory_space<vmem>>) attributes {dimension_semantics = [#tpu.dimension_semantics<parallel>, #tpu.dimension_semantics<parallel>], iteration_bounds = array<i64: 2, 1>, scalar_prefetch = 0 : i64, scratch_operands = 0 : i64, tpu.core_type = #tpu.core_type<tc>, window_params = [{transform_indices = @transform_0, window_bounds = array<i64: 1, 36, 128>}, {transform_indices = @transform_1, window_bounds = array<i64: 1, 36, 1>}, {transform_indices = @transform_2, window_bounds = array<i64: 1, 1, 8, 128>}]} {
    %c0 = arith.constant 0 : index
    %c0_0 = arith.constant 0 : index
    %c0_1 = arith.constant 0 : index
    %0 = vector.load %arg2[%c0, %c0_0, %c0_1] : memref<1x36x128xf32, #tpu.memory_space<vmem>>, vector<1x36x128xf32>
    %1 = vector.shape_cast %0 : vector<1x36x128xf32> to vector<36x128xf32>
    %c0_2 = arith.constant 0 : index
    %c0_3 = arith.constant 0 : index
    %c0_4 = arith.constant 0 : index
    %2 = vector.load %arg3[%c0_2, %c0_3, %c0_4] : memref<1x36x1xf32, #tpu.memory_space<vmem>>, vector<1x36x1xf32>
    %3 = vector.shape_cast %2 : vector<1x36x1xf32> to vector<36x1xf32>
    %4 = math.absf %1 : vector<36x128xf32>
    %cst = arith.constant 0.000000e+00 : f32
    %5 = vector.broadcast %cst : f32 to vector<36x128xf32>
    %6 = arith.subf %5, %4 : vector<36x128xf32>
    %7 = math.exp %6 : vector<36x128xf32>
    %cst_5 = arith.constant 0.000000e+00 : f32
    %8 = vector.broadcast %cst_5 : f32 to vector<36x128xf32>
    %9 = arith.maximumf %1, %8 : vector<36x128xf32>
    %10 = vector.broadcast %3 : vector<36x1xf32> to vector<36x128xf32>
    %11 = arith.mulf %1, %10 : vector<36x128xf32>
    %12 = arith.subf %9, %11 : vector<36x128xf32>
    %13 = math.log1p %7 : vector<36x128xf32>
    %14 = arith.addf %12, %13 : vector<36x128xf32>
    %cst_6 = arith.constant 1.000000e+00 : f32
    %15 = vector.broadcast %cst_6 : f32 to vector<36x128xf32>
    %16 = arith.addf %15, %7 : vector<36x128xf32>
    %17 = tpu.reciprocal %16 {approx = true} : vector<36x128xf32> -> vector<36x128xf32>
    %cst_7 = arith.constant 0.000000e+00 : f32
    %18 = vector.broadcast %cst_7 : f32 to vector<36x128xf32>
    %19 = arith.cmpf oge, %1, %18 : vector<36x128xf32>
    %20 = arith.mulf %7, %17 : vector<36x128xf32>
    %21 = arith.select %19, %17, %20 : vector<36x128xi1>, vector<36x128xf32>
    %cst_8 = arith.constant 1.000000e+00 : f32
    %22 = vector.broadcast %cst_8 : f32 to vector<36x128xf32>
    %23 = arith.subf %22, %21 : vector<36x128xf32>
    %24 = vector.broadcast %3 : vector<36x1xf32> to vector<36x128xf32>
    %25 = arith.mulf %23, %24 : vector<36x128xf32>
    %cst_9 = arith.constant 1.000000e+00 : f32
    %26 = vector.broadcast %cst_9 : f32 to vector<36x1xf32>
    %27 = arith.subf %26, %3 : vector<36x1xf32>
    %28 = vector.broadcast %27 : vector<36x1xf32> to vector<36x128xf32>
    %29 = arith.mulf %21, %28 : vector<36x128xf32>
    %30 = arith.addf %25, %29 : vector<36x128xf32>
    %31 = arith.mulf %30, %30 : vector<36x128xf32>
    %cst_10 = arith.constant 2.500000e-01 : f32
    %32 = vector.broadcast %cst_10 : f32 to vector<36x1xf32>
    %33 = arith.mulf %32, %3 : vector<36x1xf32>
    %cst_11 = arith.constant 1.000000e+00 : f32
    %34 = vector.broadcast %cst_11 : f32 to vector<36x1xf32>
    %35 = arith.subf %34, %3 : vector<36x1xf32>
    %cst_12 = arith.constant 7.500000e-01 : f32
    %36 = vector.broadcast %cst_12 : f32 to vector<36x1xf32>
    %37 = arith.mulf %36, %35 : vector<36x1xf32>
    %38 = arith.addf %33, %37 : vector<36x1xf32>
    %39 = vector.broadcast %38 : vector<36x1xf32> to vector<36x128xf32>
    %40 = arith.mulf %39, %31 : vector<36x128xf32>
    %41 = tpu.iota {dimensions = array<i32: 1>} : vector<1x128xi32>
    %c128_i32 = arith.constant 128 : i32
    %42 = arith.muli %arg1, %c128_i32 : i32
    %43 = vector.broadcast %42 : i32 to vector<1x128xi32>
    %44 = arith.addi %41, %43 : vector<1x128xi32>
    %c64_i32 = arith.constant 64 : i32
    %45 = vector.broadcast %c64_i32 : i32 to vector<1x128xi32>
    %46 = arith.cmpi slt, %44, %45 : vector<1x128xi32>
    %47 = arith.extui %46 : vector<1x128xi1> to vector<1x128xi32>
    %48 = arith.sitofp %47 : vector<1x128xi32> to vector<1x128xf32>
    %49 = arith.mulf %14, %40 : vector<36x128xf32>
    %50 = vector.broadcast %48 : vector<1x128xf32> to vector<36x128xf32>
    %51 = arith.mulf %49, %50 : vector<36x128xf32>
    %52 = vector.shape_cast %51 : vector<36x128xf32> to vector<1x36x128xf32>
    %cst_13 = arith.constant dense<0.000000e+00> : vector<1xf32>
    %53 = vector.multi_reduction <add>, %52, %cst_13 [1, 2] : vector<1x36x128xf32> to vector<1xf32>
    %54 = vector.shape_cast %53 : vector<1xf32> to vector<1x1x1xf32>
    %55 = vector.extract %54[0, 0, 0] : f32 from vector<1x1x1xf32>
    %cst_14 = arith.constant 0.000000e+00 : f32
    %56 = vector.broadcast %cst_14 : f32 to vector<1x1x8x128xf32>
    %57 = vector.broadcast %55 : f32 to vector<1x1x8x128xf32>
    %58 = arith.addf %56, %57 : vector<1x1x8x128xf32>
    %c0_15 = arith.constant 0 : index
    %c0_16 = arith.constant 0 : index
    %c0_17 = arith.constant 0 : index
    %c0_18 = arith.constant 0 : index
    %59 = vector.load %arg4[%c0_15, %c0_16, %c0_17, %c0_18] : memref<1x1x8x128xf32, #tpu.memory_space<vmem>>, vector<1x1x8x128xf32>
    tpu.vector_store %arg4[%c0_15, %c0_16, %c0_17, %c0_18], %58 {strides = array<i32>} : memref<1x1x8x128xf32, #tpu.memory_space<vmem>>, vector<1x1x8x128xf32>,
    return
  }
  func.func @transform_0(%arg0: i32, %arg1: i32) -> (i32, i32, i32) {
    %c0_i32 = arith.constant 0 : i32
    %c0_i32_0 = arith.constant 0 : i32
    return %arg0, %c0_i32, %arg1 : i32, i32, i32
  }
  func.func @transform_1(%arg0: i32, %arg1: i32) -> (i32, i32, i32) {
    %c0_i32 = arith.constant 0 : i32
    %c0_i32_0 = arith.constant 0 : i32
    %c0_i32_1 = arith.constant 0 : i32
    return %arg0, %c0_i32, %c0_i32_0 : i32, i32, i32
  }
  func.func @transform_2(%arg0: i32, %arg1: i32) -> (i32, i32, i32, i32) {
    %c0_i32 = arith.constant 0 : i32
    %c0_i32_0 = arith.constant 0 : i32
    %c0_i32_1 = arith.constant 0 : i32
    return %arg0, %arg1, %c0_i32, %c0_i32_0 : i32, i32, i32, i32
  }
}

module attributes {stable_mosaic.version = 11 : i64} {
  func.func @_ce_kernel(%arg0: i32, %arg1: i32, %arg2: memref<1x8x256xf32, #tpu.memory_space<vmem>>, %arg3: memref<1x1x256xi32, #tpu.memory_space<vmem>>, %arg4: memref<1x1x8x128xf32, #tpu.memory_space<vmem>>) attributes {dimension_semantics = [#tpu.dimension_semantics<parallel>, #tpu.dimension_semantics<parallel>], iteration_bounds = array<i64: 2, 1>, scalar_prefetch = 0 : i64, scratch_operands = 0 : i64, tpu.core_type = #tpu.core_type<tc>, window_params = [{transform_indices = @transform_0, window_bounds = array<i64: 1, 8, 256>}, {transform_indices = @transform_1, window_bounds = array<i64: 1, 1, 256>}, {transform_indices = @transform_2, window_bounds = array<i64: 1, 1, 8, 128>}]} {
    %c0 = arith.constant 0 : index
    %c0_0 = arith.constant 0 : index
    %c0_1 = arith.constant 0 : index
    %0 = vector.load %arg2[%c0, %c0_0, %c0_1] : memref<1x8x256xf32, #tpu.memory_space<vmem>>, vector<1x8x256xf32>
    %1 = vector.shape_cast %0 : vector<1x8x256xf32> to vector<8x256xf32>
    %c0_2 = arith.constant 0 : index
    %c0_3 = arith.constant 0 : index
    %c0_4 = arith.constant 0 : index
    %2 = vector.load %arg3[%c0_2, %c0_3, %c0_4] : memref<1x1x256xi32, #tpu.memory_space<vmem>>, vector<1x1x256xi32>
    %3 = vector.shape_cast %2 : vector<1x1x256xi32> to vector<1x256xi32>
    %cst = arith.constant dense<0xFF800000> : vector<256xf32>
    %4 = vector.multi_reduction <maximumf>, %1, %cst [0] : vector<8x256xf32> to vector<256xf32>
    %5 = vector.shape_cast %4 : vector<256xf32> to vector<1x256xf32>
    %6 = vector.broadcast %5 : vector<1x256xf32> to vector<8x256xf32>
    %7 = arith.subf %1, %6 : vector<8x256xf32>
    %8 = math.exp %7 : vector<8x256xf32>
    %cst_5 = arith.constant dense<0.000000e+00> : vector<256xf32>
    %9 = vector.multi_reduction <add>, %8, %cst_5 [0] : vector<8x256xf32> to vector<256xf32>
    %10 = vector.shape_cast %9 : vector<256xf32> to vector<1x256xf32>
    %11 = math.log %10 : vector<1x256xf32>
    %12 = arith.addf %11, %5 : vector<1x256xf32>
    %13 = tpu.iota {dimensions = array<i32: 0>} : vector<8x256xi32>
    %14 = vector.broadcast %3 : vector<1x256xi32> to vector<8x256xi32>
    %15 = arith.cmpi eq, %13, %14 : vector<8x256xi32>
    %cst_6 = arith.constant 0.000000e+00 : f32
    %16 = vector.broadcast %cst_6 : f32 to vector<8x256xf32>
    %17 = arith.select %15, %1, %16 : vector<8x256xi1>, vector<8x256xf32>
    %cst_7 = arith.constant dense<0.000000e+00> : vector<256xf32>
    %18 = vector.multi_reduction <add>, %17, %cst_7 [0] : vector<8x256xf32> to vector<256xf32>
    %19 = vector.shape_cast %18 : vector<256xf32> to vector<1x256xf32>
    %c0_i32 = arith.constant 0 : i32
    %20 = vector.broadcast %c0_i32 : i32 to vector<1x256xi32>
    %21 = arith.cmpi sge, %3, %20 : vector<1x256xi32>
    %22 = arith.subf %12, %19 : vector<1x256xf32>
    %cst_8 = arith.constant 0.000000e+00 : f32
    %23 = vector.broadcast %cst_8 : f32 to vector<1x256xf32>
    %24 = arith.select %21, %22, %23 : vector<1x256xi1>, vector<1x256xf32>
    %25 = vector.shape_cast %24 : vector<1x256xf32> to vector<1x1x256xf32>
    %cst_9 = arith.constant dense<0.000000e+00> : vector<1xf32>
    %26 = vector.multi_reduction <add>, %25, %cst_9 [1, 2] : vector<1x1x256xf32> to vector<1xf32>
    %27 = vector.shape_cast %26 : vector<1xf32> to vector<1x1x1xf32>
    %28 = vector.extract %27[0, 0, 0] : f32 from vector<1x1x1xf32>
    %cst_10 = arith.constant 0.000000e+00 : f32
    %29 = vector.broadcast %cst_10 : f32 to vector<1x1x8x128xf32>
    %30 = vector.broadcast %28 : f32 to vector<1x1x8x128xf32>
    %31 = arith.addf %29, %30 : vector<1x1x8x128xf32>
    %c0_11 = arith.constant 0 : index
    %c0_12 = arith.constant 0 : index
    %c0_13 = arith.constant 0 : index
    %c0_14 = arith.constant 0 : index
    %32 = vector.load %arg4[%c0_11, %c0_12, %c0_13, %c0_14] : memref<1x1x8x128xf32, #tpu.memory_space<vmem>>, vector<1x1x8x128xf32>
    tpu.vector_store %arg4[%c0_11, %c0_12, %c0_13, %c0_14], %31 {strides = array<i32>} : memref<1x1x8x128xf32, #tpu.memory_space<vmem>>, vector<1x1x8x128xf32>,
    return
  }
  func.func @transform_0(%arg0: i32, %arg1: i32) -> (i32, i32, i32) {
    %c0_i32 = arith.constant 0 : i32
    %c0_i32_0 = arith.constant 0 : i32
    return %arg0, %c0_i32, %arg1 : i32, i32, i32
  }
  func.func @transform_1(%arg0: i32, %arg1: i32) -> (i32, i32, i32) {
    %c0_i32 = arith.constant 0 : i32
    %c0_i32_0 = arith.constant 0 : i32
    return %arg0, %c0_i32, %arg1 : i32, i32, i32
  }
  func.func @transform_2(%arg0: i32, %arg1: i32) -> (i32, i32, i32, i32) {
    %c0_i32 = arith.constant 0 : i32
    %c0_i32_0 = arith.constant 0 : i32
    %c0_i32_1 = arith.constant 0 : i32
    return %arg0, %arg1, %c0_i32, %c0_i32_0 : i32, i32, i32, i32
  }
}

module attributes {stable_mosaic.version = 11 : i64} {
  func.func @_depth_kernel(%arg0: i32, %arg1: memref<1x8x8xf32, #tpu.memory_space<vmem>>, %arg2: memref<1x16x16xf32, #tpu.memory_space<vmem>>, %arg3: memref<16x8xbf16, #tpu.memory_space<vmem>>, %arg4: memref<8x16xbf16, #tpu.memory_space<vmem>>, %arg5: memref<1x8x128xf32, #tpu.memory_space<vmem>>) attributes {dimension_semantics = [#tpu.dimension_semantics<parallel>], iteration_bounds = array<i64: 2>, scalar_prefetch = 0 : i64, scratch_operands = 0 : i64, tpu.core_type = #tpu.core_type<tc>, window_params = [{transform_indices = @transform_0, window_bounds = array<i64: 1, 8, 8>}, {transform_indices = @transform_1, window_bounds = array<i64: 1, 16, 16>}, {pipeline_mode = #tpu.pipeline_mode<synchronous>, transform_indices = @transform_2, window_bounds = array<i64: 16, 8>}, {pipeline_mode = #tpu.pipeline_mode<synchronous>, transform_indices = @transform_3, window_bounds = array<i64: 8, 16>}, {transform_indices = @transform_4, window_bounds = array<i64: 1, 8, 128>}]} {
    %c0 = arith.constant 0 : index
    %c0_0 = arith.constant 0 : index
    %c0_1 = arith.constant 0 : index
    %0 = vector.load %arg1[%c0, %c0_0, %c0_1] : memref<1x8x8xf32, #tpu.memory_space<vmem>>, vector<1x8x8xf32>
    %1 = vector.shape_cast %0 : vector<1x8x8xf32> to vector<8x8xf32>
    %2 = arith.truncf %1 : vector<8x8xf32> to vector<8x8xbf16>
    %c0_2 = arith.constant 0 : index
    %c0_3 = arith.constant 0 : index
    %3 = vector.load %arg4[%c0_2, %c0_3] : memref<8x16xbf16, #tpu.memory_space<vmem>>, vector<8x16xbf16>
    %cst = arith.constant dense<0.000000e+00> : vector<8x16xf32>
    %4 = tpu.matmul %2, %3, %cst {dimension_numbers = #tpu.dot_dimension_numbers<[1], [0], [0], [1], [0, 0, 1, 1], [], []>} : vector<8x8xbf16>, vector<8x16xbf16>, vector<8x16xf32> -> vector<8x16xf32>
    %c0_4 = arith.constant 0 : index
    %c0_5 = arith.constant 0 : index
    %5 = vector.load %arg3[%c0_4, %c0_5] : memref<16x8xbf16, #tpu.memory_space<vmem>>, vector<16x8xbf16>
    %6 = arith.truncf %4 : vector<8x16xf32> to vector<8x16xbf16>
    %cst_6 = arith.constant dense<0.000000e+00> : vector<16x16xf32>
    %7 = tpu.matmul %5, %6, %cst_6 {dimension_numbers = #tpu.dot_dimension_numbers<[1], [0], [0], [1], [0, 0, 1, 1], [], []>} : vector<16x8xbf16>, vector<8x16xbf16>, vector<16x16xf32> -> vector<16x16xf32>
    %c0_7 = arith.constant 0 : index
    %c0_8 = arith.constant 0 : index
    %c0_9 = arith.constant 0 : index
    %8 = vector.load %arg2[%c0_7, %c0_8, %c0_9] : memref<1x16x16xf32, #tpu.memory_space<vmem>>, vector<1x16x16xf32>
    %9 = vector.shape_cast %8 : vector<1x16x16xf32> to vector<16x16xf32>
    %10 = arith.subf %7, %9 : vector<16x16xf32>
    %11 = math.absf %10 : vector<16x16xf32>
    %12 = vector.shape_cast %11 : vector<16x16xf32> to vector<1x16x16xf32>
    %cst_10 = arith.constant dense<0.000000e+00> : vector<1xf32>
    %13 = vector.multi_reduction <add>, %12, %cst_10 [1, 2] : vector<1x16x16xf32> to vector<1xf32>
    %14 = vector.shape_cast %13 : vector<1xf32> to vector<1x1x1xf32>
    %15 = vector.extract %14[0, 0, 0] : f32 from vector<1x1x1xf32>
    %cst_11 = arith.constant 0.000000e+00 : f32
    %16 = vector.broadcast %cst_11 : f32 to vector<1x8x128xf32>
    %17 = vector.broadcast %15 : f32 to vector<1x8x128xf32>
    %18 = arith.addf %16, %17 : vector<1x8x128xf32>
    %c0_12 = arith.constant 0 : index
    %c0_13 = arith.constant 0 : index
    %c0_14 = arith.constant 0 : index
    %19 = vector.load %arg5[%c0_12, %c0_13, %c0_14] : memref<1x8x128xf32, #tpu.memory_space<vmem>>, vector<1x8x128xf32>
    tpu.vector_store %arg5[%c0_12, %c0_13, %c0_14], %18 {strides = array<i32>} : memref<1x8x128xf32, #tpu.memory_space<vmem>>, vector<1x8x128xf32>,
    return
  }
  func.func @transform_0(%arg0: i32) -> (i32, i32, i32) {
    %c0_i32 = arith.constant 0 : i32
    %c0_i32_0 = arith.constant 0 : i32
    %c0_i32_1 = arith.constant 0 : i32
    return %arg0, %c0_i32, %c0_i32_0 : i32, i32, i32
  }
  func.func @transform_1(%arg0: i32) -> (i32, i32, i32) {
    %c0_i32 = arith.constant 0 : i32
    %c0_i32_0 = arith.constant 0 : i32
    %c0_i32_1 = arith.constant 0 : i32
    return %arg0, %c0_i32, %c0_i32_0 : i32, i32, i32
  }
  func.func @transform_2(%arg0: i32) -> (i32, i32) {
    %c0_i32 = arith.constant 0 : i32
    %c0_i32_0 = arith.constant 0 : i32
    %c0_i32_1 = arith.constant 0 : i32
    return %c0_i32, %c0_i32_0 : i32, i32
  }
  func.func @transform_3(%arg0: i32) -> (i32, i32) {
    %c0_i32 = arith.constant 0 : i32
    %c0_i32_0 = arith.constant 0 : i32
    %c0_i32_1 = arith.constant 0 : i32
    return %c0_i32, %c0_i32_0 : i32, i32
  }
  func.func @transform_4(%arg0: i32) -> (i32, i32, i32) {
    %c0_i32 = arith.constant 0 : i32
    %c0_i32_0 = arith.constant 0 : i32
    %c0_i32_1 = arith.constant 0 : i32
    return %arg0, %c0_i32, %c0_i32_0 : i32, i32, i32
  }
}

module attributes {stable_mosaic.version = 11 : i64} {
  func.func @_detreg_kernel(%arg0: i32, %arg1: i32, %arg2: memref<1x36x1x128xf32, #tpu.memory_space<vmem>>, %arg3: memref<24xf32, #tpu.memory_space<smem>>, %arg4: memref<1x1x8x128xf32, #tpu.memory_space<vmem>>, %arg5: memref<1x1x8x128xf32, #tpu.memory_space<vmem>>) attributes {dimension_semantics = [#tpu.dimension_semantics<parallel>, #tpu.dimension_semantics<parallel>], iteration_bounds = array<i64: 2, 1>, scalar_prefetch = 0 : i64, scratch_operands = 0 : i64, tpu.core_type = #tpu.core_type<tc>, window_params = [{transform_indices = @transform_0, window_bounds = array<i64: 1, 36, 1, 128>}, {transform_indices = @transform_1, window_bounds = array<i64: 24>}, {transform_indices = @transform_2, window_bounds = array<i64: 1, 1, 8, 128>}, {transform_indices = @transform_3, window_bounds = array<i64: 1, 1, 8, 128>}]} {
    %c0 = arith.constant 0 : index
    %c0_0 = arith.constant 0 : index
    %c0_1 = arith.constant 0 : index
    %c0_2 = arith.constant 0 : index
    %0 = vector.load %arg2[%c0, %c0_0, %c0_1, %c0_2] : memref<1x36x1x128xf32, #tpu.memory_space<vmem>>, vector<1x36x1x128xf32>
    %1 = vector.shape_cast %0 : vector<1x36x1x128xf32> to vector<36x1x128xf32>
    %2 = vector.extract_strided_slice %1 {offsets = [0, 0, 0], sizes = [1, 1, 128], strides = [1, 1, 1]} : vector<36x1x128xf32> to vector<1x1x128xf32>
    %3 = vector.shape_cast %2 : vector<1x1x128xf32> to vector<1x128xf32>
    %4 = vector.extract_strided_slice %1 {offsets = [1, 0, 0], sizes = [1, 1, 128], strides = [1, 1, 1]} : vector<36x1x128xf32> to vector<1x1x128xf32>
    %5 = vector.shape_cast %4 : vector<1x1x128xf32> to vector<1x128xf32>
    %6 = vector.extract_strided_slice %1 {offsets = [2, 0, 0], sizes = [1, 1, 128], strides = [1, 1, 1]} : vector<36x1x128xf32> to vector<1x1x128xf32>
    %7 = vector.shape_cast %6 : vector<1x1x128xf32> to vector<1x128xf32>
    %8 = vector.extract_strided_slice %1 {offsets = [3, 0, 0], sizes = [1, 1, 128], strides = [1, 1, 1]} : vector<36x1x128xf32> to vector<1x1x128xf32>
    %9 = vector.shape_cast %8 : vector<1x1x128xf32> to vector<1x128xf32>
    %10 = arith.subf %7, %3 : vector<1x128xf32>
    %11 = arith.subf %9, %5 : vector<1x128xf32>
    %12 = arith.mulf %10, %11 : vector<1x128xf32>
    %cst = arith.constant -1.000000e+00 : f32
    %13 = vector.broadcast %cst : f32 to vector<1x128xf32>
    %cst_3 = arith.constant 0.000000e+00 : f32
    %14 = vector.broadcast %cst_3 : f32 to vector<1x128xf32>
    %cst_4 = arith.constant 0.000000e+00 : f32
    %15 = vector.broadcast %cst_4 : f32 to vector<1x128xf32>
    %cst_5 = arith.constant 0.000000e+00 : f32
    %16 = vector.broadcast %cst_5 : f32 to vector<1x128xf32>
    %cst_6 = arith.constant 0.000000e+00 : f32
    %17 = vector.broadcast %cst_6 : f32 to vector<1x128xf32>
    %c3_i32 = arith.constant 3 : i32
    %18 = arith.muli %arg0, %c3_i32 : i32
    %c0_i32 = arith.constant 0 : i32
    %19 = arith.addi %18, %c0_i32 : i32
    %c4_i32 = arith.constant 4 : i32
    %20 = arith.muli %19, %c4_i32 : i32
    %c0_i32_7 = arith.constant 0 : i32
    %21 = arith.addi %20, %c0_i32_7 : i32
    %22 = arith.index_cast %21 : i32 to index
    %23 = memref.load %arg3[%22] : memref<24xf32, #tpu.memory_space<smem>>
    %c1_i32 = arith.constant 1 : i32
    %24 = arith.addi %20, %c1_i32 : i32
    %25 = arith.index_cast %24 : i32 to index
    %26 = memref.load %arg3[%25] : memref<24xf32, #tpu.memory_space<smem>>
    %c2_i32 = arith.constant 2 : i32
    %27 = arith.addi %20, %c2_i32 : i32
    %28 = arith.index_cast %27 : i32 to index
    %29 = memref.load %arg3[%28] : memref<24xf32, #tpu.memory_space<smem>>
    %c3_i32_8 = arith.constant 3 : i32
    %30 = arith.addi %20, %c3_i32_8 : i32
    %31 = arith.index_cast %30 : i32 to index
    %32 = memref.load %arg3[%31] : memref<24xf32, #tpu.memory_space<smem>>
    %33 = vector.broadcast %23 : f32 to vector<1x128xf32>
    %34 = arith.maximumf %3, %33 : vector<1x128xf32>
    %35 = vector.broadcast %26 : f32 to vector<1x128xf32>
    %36 = arith.maximumf %5, %35 : vector<1x128xf32>
    %37 = vector.broadcast %29 : f32 to vector<1x128xf32>
    %38 = arith.minimumf %7, %37 : vector<1x128xf32>
    %39 = vector.broadcast %32 : f32 to vector<1x128xf32>
    %40 = arith.minimumf %9, %39 : vector<1x128xf32>
    %41 = arith.subf %38, %34 : vector<1x128xf32>
    %cst_9 = arith.constant 0.000000e+00 : f32
    %42 = vector.broadcast %cst_9 : f32 to vector<1x128xf32>
    %43 = arith.maximumf %41, %42 : vector<1x128xf32>
    %44 = arith.subf %40, %36 : vector<1x128xf32>
    %cst_10 = arith.constant 0.000000e+00 : f32
    %45 = vector.broadcast %cst_10 : f32 to vector<1x128xf32>
    %46 = arith.maximumf %44, %45 : vector<1x128xf32>
    %47 = arith.mulf %43, %46 : vector<1x128xf32>
    %48 = arith.subf %29, %23 : f32
    %49 = arith.subf %32, %26 : f32
    %50 = arith.mulf %48, %49 : f32
    %51 = vector.broadcast %50 : f32 to vector<1x128xf32>
    %52 = arith.addf %12, %51 : vector<1x128xf32>
    %53 = arith.subf %52, %47 : vector<1x128xf32>
    %cst_11 = arith.constant 9.99999997E-7 : f32
    %54 = vector.broadcast %cst_11 : f32 to vector<1x128xf32>
    %55 = arith.addf %53, %54 : vector<1x128xf32>
    %56 = arith.divf %47, %55 : vector<1x128xf32>
    %57 = arith.cmpf ogt, %56, %13 : vector<1x128xf32>
    %58 = arith.select %57, %56, %13 : vector<1x128xi1>, vector<1x128xf32>
    %59 = vector.broadcast %23 : f32 to vector<1x128xf32>
    %60 = arith.select %57, %59, %14 : vector<1x128xi1>, vector<1x128xf32>
    %61 = vector.broadcast %26 : f32 to vector<1x128xf32>
    %62 = arith.select %57, %61, %15 : vector<1x128xi1>, vector<1x128xf32>
    %63 = vector.broadcast %29 : f32 to vector<1x128xf32>
    %64 = arith.select %57, %63, %16 : vector<1x128xi1>, vector<1x128xf32>
    %65 = vector.broadcast %32 : f32 to vector<1x128xf32>
    %66 = arith.select %57, %65, %17 : vector<1x128xi1>, vector<1x128xf32>
    %c3_i32_12 = arith.constant 3 : i32
    %67 = arith.muli %arg0, %c3_i32_12 : i32
    %c1_i32_13 = arith.constant 1 : i32
    %68 = arith.addi %67, %c1_i32_13 : i32
    %c4_i32_14 = arith.constant 4 : i32
    %69 = arith.muli %68, %c4_i32_14 : i32
    %c0_i32_15 = arith.constant 0 : i32
    %70 = arith.addi %69, %c0_i32_15 : i32
    %71 = arith.index_cast %70 : i32 to index
    %72 = memref.load %arg3[%71] : memref<24xf32, #tpu.memory_space<smem>>
    %c1_i32_16 = arith.constant 1 : i32
    %73 = arith.addi %69, %c1_i32_16 : i32
    %74 = arith.index_cast %73 : i32 to index
    %75 = memref.load %arg3[%74] : memref<24xf32, #tpu.memory_space<smem>>
    %c2_i32_17 = arith.constant 2 : i32
    %76 = arith.addi %69, %c2_i32_17 : i32
    %77 = arith.index_cast %76 : i32 to index
    %78 = memref.load %arg3[%77] : memref<24xf32, #tpu.memory_space<smem>>
    %c3_i32_18 = arith.constant 3 : i32
    %79 = arith.addi %69, %c3_i32_18 : i32
    %80 = arith.index_cast %79 : i32 to index
    %81 = memref.load %arg3[%80] : memref<24xf32, #tpu.memory_space<smem>>
    %82 = vector.broadcast %72 : f32 to vector<1x128xf32>
    %83 = arith.maximumf %3, %82 : vector<1x128xf32>
    %84 = vector.broadcast %75 : f32 to vector<1x128xf32>
    %85 = arith.maximumf %5, %84 : vector<1x128xf32>
    %86 = vector.broadcast %78 : f32 to vector<1x128xf32>
    %87 = arith.minimumf %7, %86 : vector<1x128xf32>
    %88 = vector.broadcast %81 : f32 to vector<1x128xf32>
    %89 = arith.minimumf %9, %88 : vector<1x128xf32>
    %90 = arith.subf %87, %83 : vector<1x128xf32>
    %cst_19 = arith.constant 0.000000e+00 : f32
    %91 = vector.broadcast %cst_19 : f32 to vector<1x128xf32>
    %92 = arith.maximumf %90, %91 : vector<1x128xf32>
    %93 = arith.subf %89, %85 : vector<1x128xf32>
    %cst_20 = arith.constant 0.000000e+00 : f32
    %94 = vector.broadcast %cst_20 : f32 to vector<1x128xf32>
    %95 = arith.maximumf %93, %94 : vector<1x128xf32>
    %96 = arith.mulf %92, %95 : vector<1x128xf32>
    %97 = arith.subf %78, %72 : f32
    %98 = arith.subf %81, %75 : f32
    %99 = arith.mulf %97, %98 : f32
    %100 = vector.broadcast %99 : f32 to vector<1x128xf32>
    %101 = arith.addf %12, %100 : vector<1x128xf32>
    %102 = arith.subf %101, %96 : vector<1x128xf32>
    %cst_21 = arith.constant 9.99999997E-7 : f32
    %103 = vector.broadcast %cst_21 : f32 to vector<1x128xf32>
    %104 = arith.addf %102, %103 : vector<1x128xf32>
    %105 = arith.divf %96, %104 : vector<1x128xf32>
    %106 = arith.cmpf ogt, %105, %58 : vector<1x128xf32>
    %107 = arith.select %106, %105, %58 : vector<1x128xi1>, vector<1x128xf32>
    %108 = vector.broadcast %72 : f32 to vector<1x128xf32>
    %109 = arith.select %106, %108, %60 : vector<1x128xi1>, vector<1x128xf32>
    %110 = vector.broadcast %75 : f32 to vector<1x128xf32>
    %111 = arith.select %106, %110, %62 : vector<1x128xi1>, vector<1x128xf32>
    %112 = vector.broadcast %78 : f32 to vector<1x128xf32>
    %113 = arith.select %106, %112, %64 : vector<1x128xi1>, vector<1x128xf32>
    %114 = vector.broadcast %81 : f32 to vector<1x128xf32>
    %115 = arith.select %106, %114, %66 : vector<1x128xi1>, vector<1x128xf32>
    %c3_i32_22 = arith.constant 3 : i32
    %116 = arith.muli %arg0, %c3_i32_22 : i32
    %c2_i32_23 = arith.constant 2 : i32
    %117 = arith.addi %116, %c2_i32_23 : i32
    %c4_i32_24 = arith.constant 4 : i32
    %118 = arith.muli %117, %c4_i32_24 : i32
    %c0_i32_25 = arith.constant 0 : i32
    %119 = arith.addi %118, %c0_i32_25 : i32
    %120 = arith.index_cast %119 : i32 to index
    %121 = memref.load %arg3[%120] : memref<24xf32, #tpu.memory_space<smem>>
    %c1_i32_26 = arith.constant 1 : i32
    %122 = arith.addi %118, %c1_i32_26 : i32
    %123 = arith.index_cast %122 : i32 to index
    %124 = memref.load %arg3[%123] : memref<24xf32, #tpu.memory_space<smem>>
    %c2_i32_27 = arith.constant 2 : i32
    %125 = arith.addi %118, %c2_i32_27 : i32
    %126 = arith.index_cast %125 : i32 to index
    %127 = memref.load %arg3[%126] : memref<24xf32, #tpu.memory_space<smem>>
    %c3_i32_28 = arith.constant 3 : i32
    %128 = arith.addi %118, %c3_i32_28 : i32
    %129 = arith.index_cast %128 : i32 to index
    %130 = memref.load %arg3[%129] : memref<24xf32, #tpu.memory_space<smem>>
    %131 = vector.broadcast %121 : f32 to vector<1x128xf32>
    %132 = arith.maximumf %3, %131 : vector<1x128xf32>
    %133 = vector.broadcast %124 : f32 to vector<1x128xf32>
    %134 = arith.maximumf %5, %133 : vector<1x128xf32>
    %135 = vector.broadcast %127 : f32 to vector<1x128xf32>
    %136 = arith.minimumf %7, %135 : vector<1x128xf32>
    %137 = vector.broadcast %130 : f32 to vector<1x128xf32>
    %138 = arith.minimumf %9, %137 : vector<1x128xf32>
    %139 = arith.subf %136, %132 : vector<1x128xf32>
    %cst_29 = arith.constant 0.000000e+00 : f32
    %140 = vector.broadcast %cst_29 : f32 to vector<1x128xf32>
    %141 = arith.maximumf %139, %140 : vector<1x128xf32>
    %142 = arith.subf %138, %134 : vector<1x128xf32>
    %cst_30 = arith.constant 0.000000e+00 : f32
    %143 = vector.broadcast %cst_30 : f32 to vector<1x128xf32>
    %144 = arith.maximumf %142, %143 : vector<1x128xf32>
    %145 = arith.mulf %141, %144 : vector<1x128xf32>
    %146 = arith.subf %127, %121 : f32
    %147 = arith.subf %130, %124 : f32
    %148 = arith.mulf %146, %147 : f32
    %149 = vector.broadcast %148 : f32 to vector<1x128xf32>
    %150 = arith.addf %12, %149 : vector<1x128xf32>
    %151 = arith.subf %150, %145 : vector<1x128xf32>
    %cst_31 = arith.constant 9.99999997E-7 : f32
    %152 = vector.broadcast %cst_31 : f32 to vector<1x128xf32>
    %153 = arith.addf %151, %152 : vector<1x128xf32>
    %154 = arith.divf %145, %153 : vector<1x128xf32>
    %155 = arith.cmpf ogt, %154, %107 : vector<1x128xf32>
    %156 = arith.select %155, %154, %107 : vector<1x128xi1>, vector<1x128xf32>
    %157 = vector.broadcast %121 : f32 to vector<1x128xf32>
    %158 = arith.select %155, %157, %109 : vector<1x128xi1>, vector<1x128xf32>
    %159 = vector.broadcast %124 : f32 to vector<1x128xf32>
    %160 = arith.select %155, %159, %111 : vector<1x128xi1>, vector<1x128xf32>
    %161 = vector.broadcast %127 : f32 to vector<1x128xf32>
    %162 = arith.select %155, %161, %113 : vector<1x128xi1>, vector<1x128xf32>
    %163 = vector.broadcast %130 : f32 to vector<1x128xf32>
    %164 = arith.select %155, %163, %115 : vector<1x128xi1>, vector<1x128xf32>
    %cst_32 = arith.constant 5.000000e-01 : f32
    %165 = vector.broadcast %cst_32 : f32 to vector<1x128xf32>
    %166 = arith.cmpf ogt, %156, %165 : vector<1x128xf32>
    %167 = arith.extui %166 : vector<1x128xi1> to vector<1x128xi32>
    %168 = arith.sitofp %167 : vector<1x128xi32> to vector<1x128xf32>
    %169 = arith.subf %3, %158 : vector<1x128xf32>
    %170 = math.absf %169 : vector<1x128xf32>
    %cst_33 = arith.constant 1.000000e+00 : f32
    %171 = vector.broadcast %cst_33 : f32 to vector<1x128xf32>
    %172 = arith.cmpf olt, %170, %171 : vector<1x128xf32>
    %cst_34 = arith.constant 5.000000e-01 : f32
    %173 = vector.broadcast %cst_34 : f32 to vector<1x128xf32>
    %174 = arith.mulf %173, %169 : vector<1x128xf32>
    %175 = arith.mulf %174, %169 : vector<1x128xf32>
    %cst_35 = arith.constant 1.000000e+00 : f32
    %176 = vector.broadcast %cst_35 : f32 to vector<1x128xf32>
    %177 = arith.divf %175, %176 : vector<1x128xf32>
    %cst_36 = arith.constant 5.000000e-01 : f32
    %178 = vector.broadcast %cst_36 : f32 to vector<1x128xf32>
    %179 = arith.subf %170, %178 : vector<1x128xf32>
    %180 = arith.select %172, %177, %179 : vector<1x128xi1>, vector<1x128xf32>
    %181 = arith.subf %5, %160 : vector<1x128xf32>
    %182 = math.absf %181 : vector<1x128xf32>
    %cst_37 = arith.constant 1.000000e+00 : f32
    %183 = vector.broadcast %cst_37 : f32 to vector<1x128xf32>
    %184 = arith.cmpf olt, %182, %183 : vector<1x128xf32>
    %cst_38 = arith.constant 5.000000e-01 : f32
    %185 = vector.broadcast %cst_38 : f32 to vector<1x128xf32>
    %186 = arith.mulf %185, %181 : vector<1x128xf32>
    %187 = arith.mulf %186, %181 : vector<1x128xf32>
    %cst_39 = arith.constant 1.000000e+00 : f32
    %188 = vector.broadcast %cst_39 : f32 to vector<1x128xf32>
    %189 = arith.divf %187, %188 : vector<1x128xf32>
    %cst_40 = arith.constant 5.000000e-01 : f32
    %190 = vector.broadcast %cst_40 : f32 to vector<1x128xf32>
    %191 = arith.subf %182, %190 : vector<1x128xf32>
    %192 = arith.select %184, %189, %191 : vector<1x128xi1>, vector<1x128xf32>
    %193 = arith.addf %180, %192 : vector<1x128xf32>
    %194 = arith.subf %7, %162 : vector<1x128xf32>
    %195 = math.absf %194 : vector<1x128xf32>
    %cst_41 = arith.constant 1.000000e+00 : f32
    %196 = vector.broadcast %cst_41 : f32 to vector<1x128xf32>
    %197 = arith.cmpf olt, %195, %196 : vector<1x128xf32>
    %cst_42 = arith.constant 5.000000e-01 : f32
    %198 = vector.broadcast %cst_42 : f32 to vector<1x128xf32>
    %199 = arith.mulf %198, %194 : vector<1x128xf32>
    %200 = arith.mulf %199, %194 : vector<1x128xf32>
    %cst_43 = arith.constant 1.000000e+00 : f32
    %201 = vector.broadcast %cst_43 : f32 to vector<1x128xf32>
    %202 = arith.divf %200, %201 : vector<1x128xf32>
    %cst_44 = arith.constant 5.000000e-01 : f32
    %203 = vector.broadcast %cst_44 : f32 to vector<1x128xf32>
    %204 = arith.subf %195, %203 : vector<1x128xf32>
    %205 = arith.select %197, %202, %204 : vector<1x128xi1>, vector<1x128xf32>
    %206 = arith.addf %193, %205 : vector<1x128xf32>
    %207 = arith.subf %9, %164 : vector<1x128xf32>
    %208 = math.absf %207 : vector<1x128xf32>
    %cst_45 = arith.constant 1.000000e+00 : f32
    %209 = vector.broadcast %cst_45 : f32 to vector<1x128xf32>
    %210 = arith.cmpf olt, %208, %209 : vector<1x128xf32>
    %cst_46 = arith.constant 5.000000e-01 : f32
    %211 = vector.broadcast %cst_46 : f32 to vector<1x128xf32>
    %212 = arith.mulf %211, %207 : vector<1x128xf32>
    %213 = arith.mulf %212, %207 : vector<1x128xf32>
    %cst_47 = arith.constant 1.000000e+00 : f32
    %214 = vector.broadcast %cst_47 : f32 to vector<1x128xf32>
    %215 = arith.divf %213, %214 : vector<1x128xf32>
    %cst_48 = arith.constant 5.000000e-01 : f32
    %216 = vector.broadcast %cst_48 : f32 to vector<1x128xf32>
    %217 = arith.subf %208, %216 : vector<1x128xf32>
    %218 = arith.select %210, %215, %217 : vector<1x128xi1>, vector<1x128xf32>
    %219 = arith.addf %206, %218 : vector<1x128xf32>
    %220 = arith.mulf %219, %168 : vector<1x128xf32>
    %221 = vector.shape_cast %220 : vector<1x128xf32> to vector<1x1x128xf32>
    %cst_49 = arith.constant dense<0.000000e+00> : vector<1xf32>
    %222 = vector.multi_reduction <add>, %221, %cst_49 [1, 2] : vector<1x1x128xf32> to vector<1xf32>
    %223 = vector.shape_cast %222 : vector<1xf32> to vector<1x1x1xf32>
    %224 = vector.extract %223[0, 0, 0] : f32 from vector<1x1x1xf32>
    %cst_50 = arith.constant 0.000000e+00 : f32
    %225 = arith.addf %cst_50, %224 : f32
    %226 = vector.shape_cast %168 : vector<1x128xf32> to vector<1x1x128xf32>
    %cst_51 = arith.constant dense<0.000000e+00> : vector<1xf32>
    %227 = vector.multi_reduction <add>, %226, %cst_51 [1, 2] : vector<1x1x128xf32> to vector<1xf32>
    %228 = vector.shape_cast %227 : vector<1xf32> to vector<1x1x1xf32>
    %229 = vector.extract %228[0, 0, 0] : f32 from vector<1x1x1xf32>
    %cst_52 = arith.constant 0.000000e+00 : f32
    %230 = arith.addf %cst_52, %229 : f32
    %231 = vector.extract_strided_slice %1 {offsets = [4, 0, 0], sizes = [1, 1, 128], strides = [1, 1, 1]} : vector<36x1x128xf32> to vector<1x1x128xf32>
    %232 = vector.shape_cast %231 : vector<1x1x128xf32> to vector<1x128xf32>
    %233 = vector.extract_strided_slice %1 {offsets = [5, 0, 0], sizes = [1, 1, 128], strides = [1, 1, 1]} : vector<36x1x128xf32> to vector<1x1x128xf32>
    %234 = vector.shape_cast %233 : vector<1x1x128xf32> to vector<1x128xf32>
    %235 = vector.extract_strided_slice %1 {offsets = [6, 0, 0], sizes = [1, 1, 128], strides = [1, 1, 1]} : vector<36x1x128xf32> to vector<1x1x128xf32>
    %236 = vector.shape_cast %235 : vector<1x1x128xf32> to vector<1x128xf32>
    %237 = vector.extract_strided_slice %1 {offsets = [7, 0, 0], sizes = [1, 1, 128], strides = [1, 1, 1]} : vector<36x1x128xf32> to vector<1x1x128xf32>
    %238 = vector.shape_cast %237 : vector<1x1x128xf32> to vector<1x128xf32>
    %239 = arith.subf %236, %232 : vector<1x128xf32>
    %240 = arith.subf %238, %234 : vector<1x128xf32>
    %241 = arith.mulf %239, %240 : vector<1x128xf32>
    %cst_53 = arith.constant -1.000000e+00 : f32
    %242 = vector.broadcast %cst_53 : f32 to vector<1x128xf32>
    %cst_54 = arith.constant 0.000000e+00 : f32
    %243 = vector.broadcast %cst_54 : f32 to vector<1x128xf32>
    %cst_55 = arith.constant 0.000000e+00 : f32
    %244 = vector.broadcast %cst_55 : f32 to vector<1x128xf32>
    %cst_56 = arith.constant 0.000000e+00 : f32
    %245 = vector.broadcast %cst_56 : f32 to vector<1x128xf32>
    %cst_57 = arith.constant 0.000000e+00 : f32
    %246 = vector.broadcast %cst_57 : f32 to vector<1x128xf32>
    %c3_i32_58 = arith.constant 3 : i32
    %247 = arith.muli %arg0, %c3_i32_58 : i32
    %c0_i32_59 = arith.constant 0 : i32
    %248 = arith.addi %247, %c0_i32_59 : i32
    %c4_i32_60 = arith.constant 4 : i32
    %249 = arith.muli %248, %c4_i32_60 : i32
    %c0_i32_61 = arith.constant 0 : i32
    %250 = arith.addi %249, %c0_i32_61 : i32
    %251 = arith.index_cast %250 : i32 to index
    %252 = memref.load %arg3[%251] : memref<24xf32, #tpu.memory_space<smem>>
    %c1_i32_62 = arith.constant 1 : i32
    %253 = arith.addi %249, %c1_i32_62 : i32
    %254 = arith.index_cast %253 : i32 to index
    %255 = memref.load %arg3[%254] : memref<24xf32, #tpu.memory_space<smem>>
    %c2_i32_63 = arith.constant 2 : i32
    %256 = arith.addi %249, %c2_i32_63 : i32
    %257 = arith.index_cast %256 : i32 to index
    %258 = memref.load %arg3[%257] : memref<24xf32, #tpu.memory_space<smem>>
    %c3_i32_64 = arith.constant 3 : i32
    %259 = arith.addi %249, %c3_i32_64 : i32
    %260 = arith.index_cast %259 : i32 to index
    %261 = memref.load %arg3[%260] : memref<24xf32, #tpu.memory_space<smem>>
    %262 = vector.broadcast %252 : f32 to vector<1x128xf32>
    %263 = arith.maximumf %232, %262 : vector<1x128xf32>
    %264 = vector.broadcast %255 : f32 to vector<1x128xf32>
    %265 = arith.maximumf %234, %264 : vector<1x128xf32>
    %266 = vector.broadcast %258 : f32 to vector<1x128xf32>
    %267 = arith.minimumf %236, %266 : vector<1x128xf32>
    %268 = vector.broadcast %261 : f32 to vector<1x128xf32>
    %269 = arith.minimumf %238, %268 : vector<1x128xf32>
    %270 = arith.subf %267, %263 : vector<1x128xf32>
    %cst_65 = arith.constant 0.000000e+00 : f32
    %271 = vector.broadcast %cst_65 : f32 to vector<1x128xf32>
    %272 = arith.maximumf %270, %271 : vector<1x128xf32>
    %273 = arith.subf %269, %265 : vector<1x128xf32>
    %cst_66 = arith.constant 0.000000e+00 : f32
    %274 = vector.broadcast %cst_66 : f32 to vector<1x128xf32>
    %275 = arith.maximumf %273, %274 : vector<1x128xf32>
    %276 = arith.mulf %272, %275 : vector<1x128xf32>
    %277 = arith.subf %258, %252 : f32
    %278 = arith.subf %261, %255 : f32
    %279 = arith.mulf %277, %278 : f32
    %280 = vector.broadcast %279 : f32 to vector<1x128xf32>
    %281 = arith.addf %241, %280 : vector<1x128xf32>
    %282 = arith.subf %281, %276 : vector<1x128xf32>
    %cst_67 = arith.constant 9.99999997E-7 : f32
    %283 = vector.broadcast %cst_67 : f32 to vector<1x128xf32>
    %284 = arith.addf %282, %283 : vector<1x128xf32>
    %285 = arith.divf %276, %284 : vector<1x128xf32>
    %286 = arith.cmpf ogt, %285, %242 : vector<1x128xf32>
    %287 = arith.select %286, %285, %242 : vector<1x128xi1>, vector<1x128xf32>
    %288 = vector.broadcast %252 : f32 to vector<1x128xf32>
    %289 = arith.select %286, %288, %243 : vector<1x128xi1>, vector<1x128xf32>
    %290 = vector.broadcast %255 : f32 to vector<1x128xf32>
    %291 = arith.select %286, %290, %244 : vector<1x128xi1>, vector<1x128xf32>
    %292 = vector.broadcast %258 : f32 to vector<1x128xf32>
    %293 = arith.select %286, %292, %245 : vector<1x128xi1>, vector<1x128xf32>
    %294 = vector.broadcast %261 : f32 to vector<1x128xf32>
    %295 = arith.select %286, %294, %246 : vector<1x128xi1>, vector<1x128xf32>
    %c3_i32_68 = arith.constant 3 : i32
    %296 = arith.muli %arg0, %c3_i32_68 : i32
    %c1_i32_69 = arith.constant 1 : i32
    %297 = arith.addi %296, %c1_i32_69 : i32
    %c4_i32_70 = arith.constant 4 : i32
    %298 = arith.muli %297, %c4_i32_70 : i32
    %c0_i32_71 = arith.constant 0 : i32
    %299 = arith.addi %298, %c0_i32_71 : i32
    %300 = arith.index_cast %299 : i32 to index
    %301 = memref.load %arg3[%300] : memref<24xf32, #tpu.memory_space<smem>>
    %c1_i32_72 = arith.constant 1 : i32
    %302 = arith.addi %298, %c1_i32_72 : i32
    %303 = arith.index_cast %302 : i32 to index
    %304 = memref.load %arg3[%303] : memref<24xf32, #tpu.memory_space<smem>>
    %c2_i32_73 = arith.constant 2 : i32
    %305 = arith.addi %298, %c2_i32_73 : i32
    %306 = arith.index_cast %305 : i32 to index
    %307 = memref.load %arg3[%306] : memref<24xf32, #tpu.memory_space<smem>>
    %c3_i32_74 = arith.constant 3 : i32
    %308 = arith.addi %298, %c3_i32_74 : i32
    %309 = arith.index_cast %308 : i32 to index
    %310 = memref.load %arg3[%309] : memref<24xf32, #tpu.memory_space<smem>>
    %311 = vector.broadcast %301 : f32 to vector<1x128xf32>
    %312 = arith.maximumf %232, %311 : vector<1x128xf32>
    %313 = vector.broadcast %304 : f32 to vector<1x128xf32>
    %314 = arith.maximumf %234, %313 : vector<1x128xf32>
    %315 = vector.broadcast %307 : f32 to vector<1x128xf32>
    %316 = arith.minimumf %236, %315 : vector<1x128xf32>
    %317 = vector.broadcast %310 : f32 to vector<1x128xf32>
    %318 = arith.minimumf %238, %317 : vector<1x128xf32>
    %319 = arith.subf %316, %312 : vector<1x128xf32>
    %cst_75 = arith.constant 0.000000e+00 : f32
    %320 = vector.broadcast %cst_75 : f32 to vector<1x128xf32>
    %321 = arith.maximumf %319, %320 : vector<1x128xf32>
    %322 = arith.subf %318, %314 : vector<1x128xf32>
    %cst_76 = arith.constant 0.000000e+00 : f32
    %323 = vector.broadcast %cst_76 : f32 to vector<1x128xf32>
    %324 = arith.maximumf %322, %323 : vector<1x128xf32>
    %325 = arith.mulf %321, %324 : vector<1x128xf32>
    %326 = arith.subf %307, %301 : f32
    %327 = arith.subf %310, %304 : f32
    %328 = arith.mulf %326, %327 : f32
    %329 = vector.broadcast %328 : f32 to vector<1x128xf32>
    %330 = arith.addf %241, %329 : vector<1x128xf32>
    %331 = arith.subf %330, %325 : vector<1x128xf32>
    %cst_77 = arith.constant 9.99999997E-7 : f32
    %332 = vector.broadcast %cst_77 : f32 to vector<1x128xf32>
    %333 = arith.addf %331, %332 : vector<1x128xf32>
    %334 = arith.divf %325, %333 : vector<1x128xf32>
    %335 = arith.cmpf ogt, %334, %287 : vector<1x128xf32>
    %336 = arith.select %335, %334, %287 : vector<1x128xi1>, vector<1x128xf32>
    %337 = vector.broadcast %301 : f32 to vector<1x128xf32>
    %338 = arith.select %335, %337, %289 : vector<1x128xi1>, vector<1x128xf32>
    %339 = vector.broadcast %304 : f32 to vector<1x128xf32>
    %340 = arith.select %335, %339, %291 : vector<1x128xi1>, vector<1x128xf32>
    %341 = vector.broadcast %307 : f32 to vector<1x128xf32>
    %342 = arith.select %335, %341, %293 : vector<1x128xi1>, vector<1x128xf32>
    %343 = vector.broadcast %310 : f32 to vector<1x128xf32>
    %344 = arith.select %335, %343, %295 : vector<1x128xi1>, vector<1x128xf32>
    %c3_i32_78 = arith.constant 3 : i32
    %345 = arith.muli %arg0, %c3_i32_78 : i32
    %c2_i32_79 = arith.constant 2 : i32
    %346 = arith.addi %345, %c2_i32_79 : i32
    %c4_i32_80 = arith.constant 4 : i32
    %347 = arith.muli %346, %c4_i32_80 : i32
    %c0_i32_81 = arith.constant 0 : i32
    %348 = arith.addi %347, %c0_i32_81 : i32
    %349 = arith.index_cast %348 : i32 to index
    %350 = memref.load %arg3[%349] : memref<24xf32, #tpu.memory_space<smem>>
    %c1_i32_82 = arith.constant 1 : i32
    %351 = arith.addi %347, %c1_i32_82 : i32
    %352 = arith.index_cast %351 : i32 to index
    %353 = memref.load %arg3[%352] : memref<24xf32, #tpu.memory_space<smem>>
    %c2_i32_83 = arith.constant 2 : i32
    %354 = arith.addi %347, %c2_i32_83 : i32
    %355 = arith.index_cast %354 : i32 to index
    %356 = memref.load %arg3[%355] : memref<24xf32, #tpu.memory_space<smem>>
    %c3_i32_84 = arith.constant 3 : i32
    %357 = arith.addi %347, %c3_i32_84 : i32
    %358 = arith.index_cast %357 : i32 to index
    %359 = memref.load %arg3[%358] : memref<24xf32, #tpu.memory_space<smem>>
    %360 = vector.broadcast %350 : f32 to vector<1x128xf32>
    %361 = arith.maximumf %232, %360 : vector<1x128xf32>
    %362 = vector.broadcast %353 : f32 to vector<1x128xf32>
    %363 = arith.maximumf %234, %362 : vector<1x128xf32>
    %364 = vector.broadcast %356 : f32 to vector<1x128xf32>
    %365 = arith.minimumf %236, %364 : vector<1x128xf32>
    %366 = vector.broadcast %359 : f32 to vector<1x128xf32>
    %367 = arith.minimumf %238, %366 : vector<1x128xf32>
    %368 = arith.subf %365, %361 : vector<1x128xf32>
    %cst_85 = arith.constant 0.000000e+00 : f32
    %369 = vector.broadcast %cst_85 : f32 to vector<1x128xf32>
    %370 = arith.maximumf %368, %369 : vector<1x128xf32>
    %371 = arith.subf %367, %363 : vector<1x128xf32>
    %cst_86 = arith.constant 0.000000e+00 : f32
    %372 = vector.broadcast %cst_86 : f32 to vector<1x128xf32>
    %373 = arith.maximumf %371, %372 : vector<1x128xf32>
    %374 = arith.mulf %370, %373 : vector<1x128xf32>
    %375 = arith.subf %356, %350 : f32
    %376 = arith.subf %359, %353 : f32
    %377 = arith.mulf %375, %376 : f32
    %378 = vector.broadcast %377 : f32 to vector<1x128xf32>
    %379 = arith.addf %241, %378 : vector<1x128xf32>
    %380 = arith.subf %379, %374 : vector<1x128xf32>
    %cst_87 = arith.constant 9.99999997E-7 : f32
    %381 = vector.broadcast %cst_87 : f32 to vector<1x128xf32>
    %382 = arith.addf %380, %381 : vector<1x128xf32>
    %383 = arith.divf %374, %382 : vector<1x128xf32>
    %384 = arith.cmpf ogt, %383, %336 : vector<1x128xf32>
    %385 = arith.select %384, %383, %336 : vector<1x128xi1>, vector<1x128xf32>
    %386 = vector.broadcast %350 : f32 to vector<1x128xf32>
    %387 = arith.select %384, %386, %338 : vector<1x128xi1>, vector<1x128xf32>
    %388 = vector.broadcast %353 : f32 to vector<1x128xf32>
    %389 = arith.select %384, %388, %340 : vector<1x128xi1>, vector<1x128xf32>
    %390 = vector.broadcast %356 : f32 to vector<1x128xf32>
    %391 = arith.select %384, %390, %342 : vector<1x128xi1>, vector<1x128xf32>
    %392 = vector.broadcast %359 : f32 to vector<1x128xf32>
    %393 = arith.select %384, %392, %344 : vector<1x128xi1>, vector<1x128xf32>
    %cst_88 = arith.constant 5.000000e-01 : f32
    %394 = vector.broadcast %cst_88 : f32 to vector<1x128xf32>
    %395 = arith.cmpf ogt, %385, %394 : vector<1x128xf32>
    %396 = arith.extui %395 : vector<1x128xi1> to vector<1x128xi32>
    %397 = arith.sitofp %396 : vector<1x128xi32> to vector<1x128xf32>
    %398 = arith.subf %232, %387 : vector<1x128xf32>
    %399 = math.absf %398 : vector<1x128xf32>
    %cst_89 = arith.constant 1.000000e+00 : f32
    %400 = vector.broadcast %cst_89 : f32 to vector<1x128xf32>
    %401 = arith.cmpf olt, %399, %400 : vector<1x128xf32>
    %cst_90 = arith.constant 5.000000e-01 : f32
    %402 = vector.broadcast %cst_90 : f32 to vector<1x128xf32>
    %403 = arith.mulf %402, %398 : vector<1x128xf32>
    %404 = arith.mulf %403, %398 : vector<1x128xf32>
    %cst_91 = arith.constant 1.000000e+00 : f32
    %405 = vector.broadcast %cst_91 : f32 to vector<1x128xf32>
    %406 = arith.divf %404, %405 : vector<1x128xf32>
    %cst_92 = arith.constant 5.000000e-01 : f32
    %407 = vector.broadcast %cst_92 : f32 to vector<1x128xf32>
    %408 = arith.subf %399, %407 : vector<1x128xf32>
    %409 = arith.select %401, %406, %408 : vector<1x128xi1>, vector<1x128xf32>
    %410 = arith.subf %234, %389 : vector<1x128xf32>
    %411 = math.absf %410 : vector<1x128xf32>
    %cst_93 = arith.constant 1.000000e+00 : f32
    %412 = vector.broadcast %cst_93 : f32 to vector<1x128xf32>
    %413 = arith.cmpf olt, %411, %412 : vector<1x128xf32>
    %cst_94 = arith.constant 5.000000e-01 : f32
    %414 = vector.broadcast %cst_94 : f32 to vector<1x128xf32>
    %415 = arith.mulf %414, %410 : vector<1x128xf32>
    %416 = arith.mulf %415, %410 : vector<1x128xf32>
    %cst_95 = arith.constant 1.000000e+00 : f32
    %417 = vector.broadcast %cst_95 : f32 to vector<1x128xf32>
    %418 = arith.divf %416, %417 : vector<1x128xf32>
    %cst_96 = arith.constant 5.000000e-01 : f32
    %419 = vector.broadcast %cst_96 : f32 to vector<1x128xf32>
    %420 = arith.subf %411, %419 : vector<1x128xf32>
    %421 = arith.select %413, %418, %420 : vector<1x128xi1>, vector<1x128xf32>
    %422 = arith.addf %409, %421 : vector<1x128xf32>
    %423 = arith.subf %236, %391 : vector<1x128xf32>
    %424 = math.absf %423 : vector<1x128xf32>
    %cst_97 = arith.constant 1.000000e+00 : f32
    %425 = vector.broadcast %cst_97 : f32 to vector<1x128xf32>
    %426 = arith.cmpf olt, %424, %425 : vector<1x128xf32>
    %cst_98 = arith.constant 5.000000e-01 : f32
    %427 = vector.broadcast %cst_98 : f32 to vector<1x128xf32>
    %428 = arith.mulf %427, %423 : vector<1x128xf32>
    %429 = arith.mulf %428, %423 : vector<1x128xf32>
    %cst_99 = arith.constant 1.000000e+00 : f32
    %430 = vector.broadcast %cst_99 : f32 to vector<1x128xf32>
    %431 = arith.divf %429, %430 : vector<1x128xf32>
    %cst_100 = arith.constant 5.000000e-01 : f32
    %432 = vector.broadcast %cst_100 : f32 to vector<1x128xf32>
    %433 = arith.subf %424, %432 : vector<1x128xf32>
    %434 = arith.select %426, %431, %433 : vector<1x128xi1>, vector<1x128xf32>
    %435 = arith.addf %422, %434 : vector<1x128xf32>
    %436 = arith.subf %238, %393 : vector<1x128xf32>
    %437 = math.absf %436 : vector<1x128xf32>
    %cst_101 = arith.constant 1.000000e+00 : f32
    %438 = vector.broadcast %cst_101 : f32 to vector<1x128xf32>
    %439 = arith.cmpf olt, %437, %438 : vector<1x128xf32>
    %cst_102 = arith.constant 5.000000e-01 : f32
    %440 = vector.broadcast %cst_102 : f32 to vector<1x128xf32>
    %441 = arith.mulf %440, %436 : vector<1x128xf32>
    %442 = arith.mulf %441, %436 : vector<1x128xf32>
    %cst_103 = arith.constant 1.000000e+00 : f32
    %443 = vector.broadcast %cst_103 : f32 to vector<1x128xf32>
    %444 = arith.divf %442, %443 : vector<1x128xf32>
    %cst_104 = arith.constant 5.000000e-01 : f32
    %445 = vector.broadcast %cst_104 : f32 to vector<1x128xf32>
    %446 = arith.subf %437, %445 : vector<1x128xf32>
    %447 = arith.select %439, %444, %446 : vector<1x128xi1>, vector<1x128xf32>
    %448 = arith.addf %435, %447 : vector<1x128xf32>
    %449 = arith.mulf %448, %397 : vector<1x128xf32>
    %450 = vector.shape_cast %449 : vector<1x128xf32> to vector<1x1x128xf32>
    %cst_105 = arith.constant dense<0.000000e+00> : vector<1xf32>
    %451 = vector.multi_reduction <add>, %450, %cst_105 [1, 2] : vector<1x1x128xf32> to vector<1xf32>
    %452 = vector.shape_cast %451 : vector<1xf32> to vector<1x1x1xf32>
    %453 = vector.extract %452[0, 0, 0] : f32 from vector<1x1x1xf32>
    %454 = arith.addf %225, %453 : f32
    %455 = vector.shape_cast %397 : vector<1x128xf32> to vector<1x1x128xf32>
    %cst_106 = arith.constant dense<0.000000e+00> : vector<1xf32>
    %456 = vector.multi_reduction <add>, %455, %cst_106 [1, 2] : vector<1x1x128xf32> to vector<1xf32>
    %457 = vector.shape_cast %456 : vector<1xf32> to vector<1x1x1xf32>
    %458 = vector.extract %457[0, 0, 0] : f32 from vector<1x1x1xf32>
    %459 = arith.addf %230, %458 : f32
    %460 = vector.extract_strided_slice %1 {offsets = [8, 0, 0], sizes = [1, 1, 128], strides = [1, 1, 1]} : vector<36x1x128xf32> to vector<1x1x128xf32>
    %461 = vector.shape_cast %460 : vector<1x1x128xf32> to vector<1x128xf32>
    %462 = vector.extract_strided_slice %1 {offsets = [9, 0, 0], sizes = [1, 1, 128], strides = [1, 1, 1]} : vector<36x1x128xf32> to vector<1x1x128xf32>
    %463 = vector.shape_cast %462 : vector<1x1x128xf32> to vector<1x128xf32>
    %464 = vector.extract_strided_slice %1 {offsets = [10, 0, 0], sizes = [1, 1, 128], strides = [1, 1, 1]} : vector<36x1x128xf32> to vector<1x1x128xf32>
    %465 = vector.shape_cast %464 : vector<1x1x128xf32> to vector<1x128xf32>
    %466 = vector.extract_strided_slice %1 {offsets = [11, 0, 0], sizes = [1, 1, 128], strides = [1, 1, 1]} : vector<36x1x128xf32> to vector<1x1x128xf32>
    %467 = vector.shape_cast %466 : vector<1x1x128xf32> to vector<1x128xf32>
    %468 = arith.subf %465, %461 : vector<1x128xf32>
    %469 = arith.subf %467, %463 : vector<1x128xf32>
    %470 = arith.mulf %468, %469 : vector<1x128xf32>
    %cst_107 = arith.constant -1.000000e+00 : f32
    %471 = vector.broadcast %cst_107 : f32 to vector<1x128xf32>
    %cst_108 = arith.constant 0.000000e+00 : f32
    %472 = vector.broadcast %cst_108 : f32 to vector<1x128xf32>
    %cst_109 = arith.constant 0.000000e+00 : f32
    %473 = vector.broadcast %cst_109 : f32 to vector<1x128xf32>
    %cst_110 = arith.constant 0.000000e+00 : f32
    %474 = vector.broadcast %cst_110 : f32 to vector<1x128xf32>
    %cst_111 = arith.constant 0.000000e+00 : f32
    %475 = vector.broadcast %cst_111 : f32 to vector<1x128xf32>
    %c3_i32_112 = arith.constant 3 : i32
    %476 = arith.muli %arg0, %c3_i32_112 : i32
    %c0_i32_113 = arith.constant 0 : i32
    %477 = arith.addi %476, %c0_i32_113 : i32
    %c4_i32_114 = arith.constant 4 : i32
    %478 = arith.muli %477, %c4_i32_114 : i32
    %c0_i32_115 = arith.constant 0 : i32
    %479 = arith.addi %478, %c0_i32_115 : i32
    %480 = arith.index_cast %479 : i32 to index
    %481 = memref.load %arg3[%480] : memref<24xf32, #tpu.memory_space<smem>>
    %c1_i32_116 = arith.constant 1 : i32
    %482 = arith.addi %478, %c1_i32_116 : i32
    %483 = arith.index_cast %482 : i32 to index
    %484 = memref.load %arg3[%483] : memref<24xf32, #tpu.memory_space<smem>>
    %c2_i32_117 = arith.constant 2 : i32
    %485 = arith.addi %478, %c2_i32_117 : i32
    %486 = arith.index_cast %485 : i32 to index
    %487 = memref.load %arg3[%486] : memref<24xf32, #tpu.memory_space<smem>>
    %c3_i32_118 = arith.constant 3 : i32
    %488 = arith.addi %478, %c3_i32_118 : i32
    %489 = arith.index_cast %488 : i32 to index
    %490 = memref.load %arg3[%489] : memref<24xf32, #tpu.memory_space<smem>>
    %491 = vector.broadcast %481 : f32 to vector<1x128xf32>
    %492 = arith.maximumf %461, %491 : vector<1x128xf32>
    %493 = vector.broadcast %484 : f32 to vector<1x128xf32>
    %494 = arith.maximumf %463, %493 : vector<1x128xf32>
    %495 = vector.broadcast %487 : f32 to vector<1x128xf32>
    %496 = arith.minimumf %465, %495 : vector<1x128xf32>
    %497 = vector.broadcast %490 : f32 to vector<1x128xf32>
    %498 = arith.minimumf %467, %497 : vector<1x128xf32>
    %499 = arith.subf %496, %492 : vector<1x128xf32>
    %cst_119 = arith.constant 0.000000e+00 : f32
    %500 = vector.broadcast %cst_119 : f32 to vector<1x128xf32>
    %501 = arith.maximumf %499, %500 : vector<1x128xf32>
    %502 = arith.subf %498, %494 : vector<1x128xf32>
    %cst_120 = arith.constant 0.000000e+00 : f32
    %503 = vector.broadcast %cst_120 : f32 to vector<1x128xf32>
    %504 = arith.maximumf %502, %503 : vector<1x128xf32>
    %505 = arith.mulf %501, %504 : vector<1x128xf32>
    %506 = arith.subf %487, %481 : f32
    %507 = arith.subf %490, %484 : f32
    %508 = arith.mulf %506, %507 : f32
    %509 = vector.broadcast %508 : f32 to vector<1x128xf32>
    %510 = arith.addf %470, %509 : vector<1x128xf32>
    %511 = arith.subf %510, %505 : vector<1x128xf32>
    %cst_121 = arith.constant 9.99999997E-7 : f32
    %512 = vector.broadcast %cst_121 : f32 to vector<1x128xf32>
    %513 = arith.addf %511, %512 : vector<1x128xf32>
    %514 = arith.divf %505, %513 : vector<1x128xf32>
    %515 = arith.cmpf ogt, %514, %471 : vector<1x128xf32>
    %516 = arith.select %515, %514, %471 : vector<1x128xi1>, vector<1x128xf32>
    %517 = vector.broadcast %481 : f32 to vector<1x128xf32>
    %518 = arith.select %515, %517, %472 : vector<1x128xi1>, vector<1x128xf32>
    %519 = vector.broadcast %484 : f32 to vector<1x128xf32>
    %520 = arith.select %515, %519, %473 : vector<1x128xi1>, vector<1x128xf32>
    %521 = vector.broadcast %487 : f32 to vector<1x128xf32>
    %522 = arith.select %515, %521, %474 : vector<1x128xi1>, vector<1x128xf32>
    %523 = vector.broadcast %490 : f32 to vector<1x128xf32>
    %524 = arith.select %515, %523, %475 : vector<1x128xi1>, vector<1x128xf32>
    %c3_i32_122 = arith.constant 3 : i32
    %525 = arith.muli %arg0, %c3_i32_122 : i32
    %c1_i32_123 = arith.constant 1 : i32
    %526 = arith.addi %525, %c1_i32_123 : i32
    %c4_i32_124 = arith.constant 4 : i32
    %527 = arith.muli %526, %c4_i32_124 : i32
    %c0_i32_125 = arith.constant 0 : i32
    %528 = arith.addi %527, %c0_i32_125 : i32
    %529 = arith.index_cast %528 : i32 to index
    %530 = memref.load %arg3[%529] : memref<24xf32, #tpu.memory_space<smem>>
    %c1_i32_126 = arith.constant 1 : i32
    %531 = arith.addi %527, %c1_i32_126 : i32
    %532 = arith.index_cast %531 : i32 to index
    %533 = memref.load %arg3[%532] : memref<24xf32, #tpu.memory_space<smem>>
    %c2_i32_127 = arith.constant 2 : i32
    %534 = arith.addi %527, %c2_i32_127 : i32
    %535 = arith.index_cast %534 : i32 to index
    %536 = memref.load %arg3[%535] : memref<24xf32, #tpu.memory_space<smem>>
    %c3_i32_128 = arith.constant 3 : i32
    %537 = arith.addi %527, %c3_i32_128 : i32
    %538 = arith.index_cast %537 : i32 to index
    %539 = memref.load %arg3[%538] : memref<24xf32, #tpu.memory_space<smem>>
    %540 = vector.broadcast %530 : f32 to vector<1x128xf32>
    %541 = arith.maximumf %461, %540 : vector<1x128xf32>
    %542 = vector.broadcast %533 : f32 to vector<1x128xf32>
    %543 = arith.maximumf %463, %542 : vector<1x128xf32>
    %544 = vector.broadcast %536 : f32 to vector<1x128xf32>
    %545 = arith.minimumf %465, %544 : vector<1x128xf32>
    %546 = vector.broadcast %539 : f32 to vector<1x128xf32>
    %547 = arith.minimumf %467, %546 : vector<1x128xf32>
    %548 = arith.subf %545, %541 : vector<1x128xf32>
    %cst_129 = arith.constant 0.000000e+00 : f32
    %549 = vector.broadcast %cst_129 : f32 to vector<1x128xf32>
    %550 = arith.maximumf %548, %549 : vector<1x128xf32>
    %551 = arith.subf %547, %543 : vector<1x128xf32>
    %cst_130 = arith.constant 0.000000e+00 : f32
    %552 = vector.broadcast %cst_130 : f32 to vector<1x128xf32>
    %553 = arith.maximumf %551, %552 : vector<1x128xf32>
    %554 = arith.mulf %550, %553 : vector<1x128xf32>
    %555 = arith.subf %536, %530 : f32
    %556 = arith.subf %539, %533 : f32
    %557 = arith.mulf %555, %556 : f32
    %558 = vector.broadcast %557 : f32 to vector<1x128xf32>
    %559 = arith.addf %470, %558 : vector<1x128xf32>
    %560 = arith.subf %559, %554 : vector<1x128xf32>
    %cst_131 = arith.constant 9.99999997E-7 : f32
    %561 = vector.broadcast %cst_131 : f32 to vector<1x128xf32>
    %562 = arith.addf %560, %561 : vector<1x128xf32>
    %563 = arith.divf %554, %562 : vector<1x128xf32>
    %564 = arith.cmpf ogt, %563, %516 : vector<1x128xf32>
    %565 = arith.select %564, %563, %516 : vector<1x128xi1>, vector<1x128xf32>
    %566 = vector.broadcast %530 : f32 to vector<1x128xf32>
    %567 = arith.select %564, %566, %518 : vector<1x128xi1>, vector<1x128xf32>
    %568 = vector.broadcast %533 : f32 to vector<1x128xf32>
    %569 = arith.select %564, %568, %520 : vector<1x128xi1>, vector<1x128xf32>
    %570 = vector.broadcast %536 : f32 to vector<1x128xf32>
    %571 = arith.select %564, %570, %522 : vector<1x128xi1>, vector<1x128xf32>
    %572 = vector.broadcast %539 : f32 to vector<1x128xf32>
    %573 = arith.select %564, %572, %524 : vector<1x128xi1>, vector<1x128xf32>
    %c3_i32_132 = arith.constant 3 : i32
    %574 = arith.muli %arg0, %c3_i32_132 : i32
    %c2_i32_133 = arith.constant 2 : i32
    %575 = arith.addi %574, %c2_i32_133 : i32
    %c4_i32_134 = arith.constant 4 : i32
    %576 = arith.muli %575, %c4_i32_134 : i32
    %c0_i32_135 = arith.constant 0 : i32
    %577 = arith.addi %576, %c0_i32_135 : i32
    %578 = arith.index_cast %577 : i32 to index
    %579 = memref.load %arg3[%578] : memref<24xf32, #tpu.memory_space<smem>>
    %c1_i32_136 = arith.constant 1 : i32
    %580 = arith.addi %576, %c1_i32_136 : i32
    %581 = arith.index_cast %580 : i32 to index
    %582 = memref.load %arg3[%581] : memref<24xf32, #tpu.memory_space<smem>>
    %c2_i32_137 = arith.constant 2 : i32
    %583 = arith.addi %576, %c2_i32_137 : i32
    %584 = arith.index_cast %583 : i32 to index
    %585 = memref.load %arg3[%584] : memref<24xf32, #tpu.memory_space<smem>>
    %c3_i32_138 = arith.constant 3 : i32
    %586 = arith.addi %576, %c3_i32_138 : i32
    %587 = arith.index_cast %586 : i32 to index
    %588 = memref.load %arg3[%587] : memref<24xf32, #tpu.memory_space<smem>>
    %589 = vector.broadcast %579 : f32 to vector<1x128xf32>
    %590 = arith.maximumf %461, %589 : vector<1x128xf32>
    %591 = vector.broadcast %582 : f32 to vector<1x128xf32>
    %592 = arith.maximumf %463, %591 : vector<1x128xf32>
    %593 = vector.broadcast %585 : f32 to vector<1x128xf32>
    %594 = arith.minimumf %465, %593 : vector<1x128xf32>
    %595 = vector.broadcast %588 : f32 to vector<1x128xf32>
    %596 = arith.minimumf %467, %595 : vector<1x128xf32>
    %597 = arith.subf %594, %590 : vector<1x128xf32>
    %cst_139 = arith.constant 0.000000e+00 : f32
    %598 = vector.broadcast %cst_139 : f32 to vector<1x128xf32>
    %599 = arith.maximumf %597, %598 : vector<1x128xf32>
    %600 = arith.subf %596, %592 : vector<1x128xf32>
    %cst_140 = arith.constant 0.000000e+00 : f32
    %601 = vector.broadcast %cst_140 : f32 to vector<1x128xf32>
    %602 = arith.maximumf %600, %601 : vector<1x128xf32>
    %603 = arith.mulf %599, %602 : vector<1x128xf32>
    %604 = arith.subf %585, %579 : f32
    %605 = arith.subf %588, %582 : f32
    %606 = arith.mulf %604, %605 : f32
    %607 = vector.broadcast %606 : f32 to vector<1x128xf32>
    %608 = arith.addf %470, %607 : vector<1x128xf32>
    %609 = arith.subf %608, %603 : vector<1x128xf32>
    %cst_141 = arith.constant 9.99999997E-7 : f32
    %610 = vector.broadcast %cst_141 : f32 to vector<1x128xf32>
    %611 = arith.addf %609, %610 : vector<1x128xf32>
    %612 = arith.divf %603, %611 : vector<1x128xf32>
    %613 = arith.cmpf ogt, %612, %565 : vector<1x128xf32>
    %614 = arith.select %613, %612, %565 : vector<1x128xi1>, vector<1x128xf32>
    %615 = vector.broadcast %579 : f32 to vector<1x128xf32>
    %616 = arith.select %613, %615, %567 : vector<1x128xi1>, vector<1x128xf32>
    %617 = vector.broadcast %582 : f32 to vector<1x128xf32>
    %618 = arith.select %613, %617, %569 : vector<1x128xi1>, vector<1x128xf32>
    %619 = vector.broadcast %585 : f32 to vector<1x128xf32>
    %620 = arith.select %613, %619, %571 : vector<1x128xi1>, vector<1x128xf32>
    %621 = vector.broadcast %588 : f32 to vector<1x128xf32>
    %622 = arith.select %613, %621, %573 : vector<1x128xi1>, vector<1x128xf32>
    %cst_142 = arith.constant 5.000000e-01 : f32
    %623 = vector.broadcast %cst_142 : f32 to vector<1x128xf32>
    %624 = arith.cmpf ogt, %614, %623 : vector<1x128xf32>
    %625 = arith.extui %624 : vector<1x128xi1> to vector<1x128xi32>
    %626 = arith.sitofp %625 : vector<1x128xi32> to vector<1x128xf32>
    %627 = arith.subf %461, %616 : vector<1x128xf32>
    %628 = math.absf %627 : vector<1x128xf32>
    %cst_143 = arith.constant 1.000000e+00 : f32
    %629 = vector.broadcast %cst_143 : f32 to vector<1x128xf32>
    %630 = arith.cmpf olt, %628, %629 : vector<1x128xf32>
    %cst_144 = arith.constant 5.000000e-01 : f32
    %631 = vector.broadcast %cst_144 : f32 to vector<1x128xf32>
    %632 = arith.mulf %631, %627 : vector<1x128xf32>
    %633 = arith.mulf %632, %627 : vector<1x128xf32>
    %cst_145 = arith.constant 1.000000e+00 : f32
    %634 = vector.broadcast %cst_145 : f32 to vector<1x128xf32>
    %635 = arith.divf %633, %634 : vector<1x128xf32>
    %cst_146 = arith.constant 5.000000e-01 : f32
    %636 = vector.broadcast %cst_146 : f32 to vector<1x128xf32>
    %637 = arith.subf %628, %636 : vector<1x128xf32>
    %638 = arith.select %630, %635, %637 : vector<1x128xi1>, vector<1x128xf32>
    %639 = arith.subf %463, %618 : vector<1x128xf32>
    %640 = math.absf %639 : vector<1x128xf32>
    %cst_147 = arith.constant 1.000000e+00 : f32
    %641 = vector.broadcast %cst_147 : f32 to vector<1x128xf32>
    %642 = arith.cmpf olt, %640, %641 : vector<1x128xf32>
    %cst_148 = arith.constant 5.000000e-01 : f32
    %643 = vector.broadcast %cst_148 : f32 to vector<1x128xf32>
    %644 = arith.mulf %643, %639 : vector<1x128xf32>
    %645 = arith.mulf %644, %639 : vector<1x128xf32>
    %cst_149 = arith.constant 1.000000e+00 : f32
    %646 = vector.broadcast %cst_149 : f32 to vector<1x128xf32>
    %647 = arith.divf %645, %646 : vector<1x128xf32>
    %cst_150 = arith.constant 5.000000e-01 : f32
    %648 = vector.broadcast %cst_150 : f32 to vector<1x128xf32>
    %649 = arith.subf %640, %648 : vector<1x128xf32>
    %650 = arith.select %642, %647, %649 : vector<1x128xi1>, vector<1x128xf32>
    %651 = arith.addf %638, %650 : vector<1x128xf32>
    %652 = arith.subf %465, %620 : vector<1x128xf32>
    %653 = math.absf %652 : vector<1x128xf32>
    %cst_151 = arith.constant 1.000000e+00 : f32
    %654 = vector.broadcast %cst_151 : f32 to vector<1x128xf32>
    %655 = arith.cmpf olt, %653, %654 : vector<1x128xf32>
    %cst_152 = arith.constant 5.000000e-01 : f32
    %656 = vector.broadcast %cst_152 : f32 to vector<1x128xf32>
    %657 = arith.mulf %656, %652 : vector<1x128xf32>
    %658 = arith.mulf %657, %652 : vector<1x128xf32>
    %cst_153 = arith.constant 1.000000e+00 : f32
    %659 = vector.broadcast %cst_153 : f32 to vector<1x128xf32>
    %660 = arith.divf %658, %659 : vector<1x128xf32>
    %cst_154 = arith.constant 5.000000e-01 : f32
    %661 = vector.broadcast %cst_154 : f32 to vector<1x128xf32>
    %662 = arith.subf %653, %661 : vector<1x128xf32>
    %663 = arith.select %655, %660, %662 : vector<1x128xi1>, vector<1x128xf32>
    %664 = arith.addf %651, %663 : vector<1x128xf32>
    %665 = arith.subf %467, %622 : vector<1x128xf32>
    %666 = math.absf %665 : vector<1x128xf32>
    %cst_155 = arith.constant 1.000000e+00 : f32
    %667 = vector.broadcast %cst_155 : f32 to vector<1x128xf32>
    %668 = arith.cmpf olt, %666, %667 : vector<1x128xf32>
    %cst_156 = arith.constant 5.000000e-01 : f32
    %669 = vector.broadcast %cst_156 : f32 to vector<1x128xf32>
    %670 = arith.mulf %669, %665 : vector<1x128xf32>
    %671 = arith.mulf %670, %665 : vector<1x128xf32>
    %cst_157 = arith.constant 1.000000e+00 : f32
    %672 = vector.broadcast %cst_157 : f32 to vector<1x128xf32>
    %673 = arith.divf %671, %672 : vector<1x128xf32>
    %cst_158 = arith.constant 5.000000e-01 : f32
    %674 = vector.broadcast %cst_158 : f32 to vector<1x128xf32>
    %675 = arith.subf %666, %674 : vector<1x128xf32>
    %676 = arith.select %668, %673, %675 : vector<1x128xi1>, vector<1x128xf32>
    %677 = arith.addf %664, %676 : vector<1x128xf32>
    %678 = arith.mulf %677, %626 : vector<1x128xf32>
    %679 = vector.shape_cast %678 : vector<1x128xf32> to vector<1x1x128xf32>
    %cst_159 = arith.constant dense<0.000000e+00> : vector<1xf32>
    %680 = vector.multi_reduction <add>, %679, %cst_159 [1, 2] : vector<1x1x128xf32> to vector<1xf32>
    %681 = vector.shape_cast %680 : vector<1xf32> to vector<1x1x1xf32>
    %682 = vector.extract %681[0, 0, 0] : f32 from vector<1x1x1xf32>
    %683 = arith.addf %454, %682 : f32
    %684 = vector.shape_cast %626 : vector<1x128xf32> to vector<1x1x128xf32>
    %cst_160 = arith.constant dense<0.000000e+00> : vector<1xf32>
    %685 = vector.multi_reduction <add>, %684, %cst_160 [1, 2] : vector<1x1x128xf32> to vector<1xf32>
    %686 = vector.shape_cast %685 : vector<1xf32> to vector<1x1x1xf32>
    %687 = vector.extract %686[0, 0, 0] : f32 from vector<1x1x1xf32>
    %688 = arith.addf %459, %687 : f32
    %689 = vector.extract_strided_slice %1 {offsets = [12, 0, 0], sizes = [1, 1, 128], strides = [1, 1, 1]} : vector<36x1x128xf32> to vector<1x1x128xf32>
    %690 = vector.shape_cast %689 : vector<1x1x128xf32> to vector<1x128xf32>
    %691 = vector.extract_strided_slice %1 {offsets = [13, 0, 0], sizes = [1, 1, 128], strides = [1, 1, 1]} : vector<36x1x128xf32> to vector<1x1x128xf32>
    %692 = vector.shape_cast %691 : vector<1x1x128xf32> to vector<1x128xf32>
    %693 = vector.extract_strided_slice %1 {offsets = [14, 0, 0], sizes = [1, 1, 128], strides = [1, 1, 1]} : vector<36x1x128xf32> to vector<1x1x128xf32>
    %694 = vector.shape_cast %693 : vector<1x1x128xf32> to vector<1x128xf32>
    %695 = vector.extract_strided_slice %1 {offsets = [15, 0, 0], sizes = [1, 1, 128], strides = [1, 1, 1]} : vector<36x1x128xf32> to vector<1x1x128xf32>
    %696 = vector.shape_cast %695 : vector<1x1x128xf32> to vector<1x128xf32>
    %697 = arith.subf %694, %690 : vector<1x128xf32>
    %698 = arith.subf %696, %692 : vector<1x128xf32>
    %699 = arith.mulf %697, %698 : vector<1x128xf32>
    %cst_161 = arith.constant -1.000000e+00 : f32
    %700 = vector.broadcast %cst_161 : f32 to vector<1x128xf32>
    %cst_162 = arith.constant 0.000000e+00 : f32
    %701 = vector.broadcast %cst_162 : f32 to vector<1x128xf32>
    %cst_163 = arith.constant 0.000000e+00 : f32
    %702 = vector.broadcast %cst_163 : f32 to vector<1x128xf32>
    %cst_164 = arith.constant 0.000000e+00 : f32
    %703 = vector.broadcast %cst_164 : f32 to vector<1x128xf32>
    %cst_165 = arith.constant 0.000000e+00 : f32
    %704 = vector.broadcast %cst_165 : f32 to vector<1x128xf32>
    %c3_i32_166 = arith.constant 3 : i32
    %705 = arith.muli %arg0, %c3_i32_166 : i32
    %c0_i32_167 = arith.constant 0 : i32
    %706 = arith.addi %705, %c0_i32_167 : i32
    %c4_i32_168 = arith.constant 4 : i32
    %707 = arith.muli %706, %c4_i32_168 : i32
    %c0_i32_169 = arith.constant 0 : i32
    %708 = arith.addi %707, %c0_i32_169 : i32
    %709 = arith.index_cast %708 : i32 to index
    %710 = memref.load %arg3[%709] : memref<24xf32, #tpu.memory_space<smem>>
    %c1_i32_170 = arith.constant 1 : i32
    %711 = arith.addi %707, %c1_i32_170 : i32
    %712 = arith.index_cast %711 : i32 to index
    %713 = memref.load %arg3[%712] : memref<24xf32, #tpu.memory_space<smem>>
    %c2_i32_171 = arith.constant 2 : i32
    %714 = arith.addi %707, %c2_i32_171 : i32
    %715 = arith.index_cast %714 : i32 to index
    %716 = memref.load %arg3[%715] : memref<24xf32, #tpu.memory_space<smem>>
    %c3_i32_172 = arith.constant 3 : i32
    %717 = arith.addi %707, %c3_i32_172 : i32
    %718 = arith.index_cast %717 : i32 to index
    %719 = memref.load %arg3[%718] : memref<24xf32, #tpu.memory_space<smem>>
    %720 = vector.broadcast %710 : f32 to vector<1x128xf32>
    %721 = arith.maximumf %690, %720 : vector<1x128xf32>
    %722 = vector.broadcast %713 : f32 to vector<1x128xf32>
    %723 = arith.maximumf %692, %722 : vector<1x128xf32>
    %724 = vector.broadcast %716 : f32 to vector<1x128xf32>
    %725 = arith.minimumf %694, %724 : vector<1x128xf32>
    %726 = vector.broadcast %719 : f32 to vector<1x128xf32>
    %727 = arith.minimumf %696, %726 : vector<1x128xf32>
    %728 = arith.subf %725, %721 : vector<1x128xf32>
    %cst_173 = arith.constant 0.000000e+00 : f32
    %729 = vector.broadcast %cst_173 : f32 to vector<1x128xf32>
    %730 = arith.maximumf %728, %729 : vector<1x128xf32>
    %731 = arith.subf %727, %723 : vector<1x128xf32>
    %cst_174 = arith.constant 0.000000e+00 : f32
    %732 = vector.broadcast %cst_174 : f32 to vector<1x128xf32>
    %733 = arith.maximumf %731, %732 : vector<1x128xf32>
    %734 = arith.mulf %730, %733 : vector<1x128xf32>
    %735 = arith.subf %716, %710 : f32
    %736 = arith.subf %719, %713 : f32
    %737 = arith.mulf %735, %736 : f32
    %738 = vector.broadcast %737 : f32 to vector<1x128xf32>
    %739 = arith.addf %699, %738 : vector<1x128xf32>
    %740 = arith.subf %739, %734 : vector<1x128xf32>
    %cst_175 = arith.constant 9.99999997E-7 : f32
    %741 = vector.broadcast %cst_175 : f32 to vector<1x128xf32>
    %742 = arith.addf %740, %741 : vector<1x128xf32>
    %743 = arith.divf %734, %742 : vector<1x128xf32>
    %744 = arith.cmpf ogt, %743, %700 : vector<1x128xf32>
    %745 = arith.select %744, %743, %700 : vector<1x128xi1>, vector<1x128xf32>
    %746 = vector.broadcast %710 : f32 to vector<1x128xf32>
    %747 = arith.select %744, %746, %701 : vector<1x128xi1>, vector<1x128xf32>
    %748 = vector.broadcast %713 : f32 to vector<1x128xf32>
    %749 = arith.select %744, %748, %702 : vector<1x128xi1>, vector<1x128xf32>
    %750 = vector.broadcast %716 : f32 to vector<1x128xf32>
    %751 = arith.select %744, %750, %703 : vector<1x128xi1>, vector<1x128xf32>
    %752 = vector.broadcast %719 : f32 to vector<1x128xf32>
    %753 = arith.select %744, %752, %704 : vector<1x128xi1>, vector<1x128xf32>
    %c3_i32_176 = arith.constant 3 : i32
    %754 = arith.muli %arg0, %c3_i32_176 : i32
    %c1_i32_177 = arith.constant 1 : i32
    %755 = arith.addi %754, %c1_i32_177 : i32
    %c4_i32_178 = arith.constant 4 : i32
    %756 = arith.muli %755, %c4_i32_178 : i32
    %c0_i32_179 = arith.constant 0 : i32
    %757 = arith.addi %756, %c0_i32_179 : i32
    %758 = arith.index_cast %757 : i32 to index
    %759 = memref.load %arg3[%758] : memref<24xf32, #tpu.memory_space<smem>>
    %c1_i32_180 = arith.constant 1 : i32
    %760 = arith.addi %756, %c1_i32_180 : i32
    %761 = arith.index_cast %760 : i32 to index
    %762 = memref.load %arg3[%761] : memref<24xf32, #tpu.memory_space<smem>>
    %c2_i32_181 = arith.constant 2 : i32
    %763 = arith.addi %756, %c2_i32_181 : i32
    %764 = arith.index_cast %763 : i32 to index
    %765 = memref.load %arg3[%764] : memref<24xf32, #tpu.memory_space<smem>>
    %c3_i32_182 = arith.constant 3 : i32
    %766 = arith.addi %756, %c3_i32_182 : i32
    %767 = arith.index_cast %766 : i32 to index
    %768 = memref.load %arg3[%767] : memref<24xf32, #tpu.memory_space<smem>>
    %769 = vector.broadcast %759 : f32 to vector<1x128xf32>
    %770 = arith.maximumf %690, %769 : vector<1x128xf32>
    %771 = vector.broadcast %762 : f32 to vector<1x128xf32>
    %772 = arith.maximumf %692, %771 : vector<1x128xf32>
    %773 = vector.broadcast %765 : f32 to vector<1x128xf32>
    %774 = arith.minimumf %694, %773 : vector<1x128xf32>
    %775 = vector.broadcast %768 : f32 to vector<1x128xf32>
    %776 = arith.minimumf %696, %775 : vector<1x128xf32>
    %777 = arith.subf %774, %770 : vector<1x128xf32>
    %cst_183 = arith.constant 0.000000e+00 : f32
    %778 = vector.broadcast %cst_183 : f32 to vector<1x128xf32>
    %779 = arith.maximumf %777, %778 : vector<1x128xf32>
    %780 = arith.subf %776, %772 : vector<1x128xf32>
    %cst_184 = arith.constant 0.000000e+00 : f32
    %781 = vector.broadcast %cst_184 : f32 to vector<1x128xf32>
    %782 = arith.maximumf %780, %781 : vector<1x128xf32>
    %783 = arith.mulf %779, %782 : vector<1x128xf32>
    %784 = arith.subf %765, %759 : f32
    %785 = arith.subf %768, %762 : f32
    %786 = arith.mulf %784, %785 : f32
    %787 = vector.broadcast %786 : f32 to vector<1x128xf32>
    %788 = arith.addf %699, %787 : vector<1x128xf32>
    %789 = arith.subf %788, %783 : vector<1x128xf32>
    %cst_185 = arith.constant 9.99999997E-7 : f32
    %790 = vector.broadcast %cst_185 : f32 to vector<1x128xf32>
    %791 = arith.addf %789, %790 : vector<1x128xf32>
    %792 = arith.divf %783, %791 : vector<1x128xf32>
    %793 = arith.cmpf ogt, %792, %745 : vector<1x128xf32>
    %794 = arith.select %793, %792, %745 : vector<1x128xi1>, vector<1x128xf32>
    %795 = vector.broadcast %759 : f32 to vector<1x128xf32>
    %796 = arith.select %793, %795, %747 : vector<1x128xi1>, vector<1x128xf32>
    %797 = vector.broadcast %762 : f32 to vector<1x128xf32>
    %798 = arith.select %793, %797, %749 : vector<1x128xi1>, vector<1x128xf32>
    %799 = vector.broadcast %765 : f32 to vector<1x128xf32>
    %800 = arith.select %793, %799, %751 : vector<1x128xi1>, vector<1x128xf32>
    %801 = vector.broadcast %768 : f32 to vector<1x128xf32>
    %802 = arith.select %793, %801, %753 : vector<1x128xi1>, vector<1x128xf32>
    %c3_i32_186 = arith.constant 3 : i32
    %803 = arith.muli %arg0, %c3_i32_186 : i32
    %c2_i32_187 = arith.constant 2 : i32
    %804 = arith.addi %803, %c2_i32_187 : i32
    %c4_i32_188 = arith.constant 4 : i32
    %805 = arith.muli %804, %c4_i32_188 : i32
    %c0_i32_189 = arith.constant 0 : i32
    %806 = arith.addi %805, %c0_i32_189 : i32
    %807 = arith.index_cast %806 : i32 to index
    %808 = memref.load %arg3[%807] : memref<24xf32, #tpu.memory_space<smem>>
    %c1_i32_190 = arith.constant 1 : i32
    %809 = arith.addi %805, %c1_i32_190 : i32
    %810 = arith.index_cast %809 : i32 to index
    %811 = memref.load %arg3[%810] : memref<24xf32, #tpu.memory_space<smem>>
    %c2_i32_191 = arith.constant 2 : i32
    %812 = arith.addi %805, %c2_i32_191 : i32
    %813 = arith.index_cast %812 : i32 to index
    %814 = memref.load %arg3[%813] : memref<24xf32, #tpu.memory_space<smem>>
    %c3_i32_192 = arith.constant 3 : i32
    %815 = arith.addi %805, %c3_i32_192 : i32
    %816 = arith.index_cast %815 : i32 to index
    %817 = memref.load %arg3[%816] : memref<24xf32, #tpu.memory_space<smem>>
    %818 = vector.broadcast %808 : f32 to vector<1x128xf32>
    %819 = arith.maximumf %690, %818 : vector<1x128xf32>
    %820 = vector.broadcast %811 : f32 to vector<1x128xf32>
    %821 = arith.maximumf %692, %820 : vector<1x128xf32>
    %822 = vector.broadcast %814 : f32 to vector<1x128xf32>
    %823 = arith.minimumf %694, %822 : vector<1x128xf32>
    %824 = vector.broadcast %817 : f32 to vector<1x128xf32>
    %825 = arith.minimumf %696, %824 : vector<1x128xf32>
    %826 = arith.subf %823, %819 : vector<1x128xf32>
    %cst_193 = arith.constant 0.000000e+00 : f32
    %827 = vector.broadcast %cst_193 : f32 to vector<1x128xf32>
    %828 = arith.maximumf %826, %827 : vector<1x128xf32>
    %829 = arith.subf %825, %821 : vector<1x128xf32>
    %cst_194 = arith.constant 0.000000e+00 : f32
    %830 = vector.broadcast %cst_194 : f32 to vector<1x128xf32>
    %831 = arith.maximumf %829, %830 : vector<1x128xf32>
    %832 = arith.mulf %828, %831 : vector<1x128xf32>
    %833 = arith.subf %814, %808 : f32
    %834 = arith.subf %817, %811 : f32
    %835 = arith.mulf %833, %834 : f32
    %836 = vector.broadcast %835 : f32 to vector<1x128xf32>
    %837 = arith.addf %699, %836 : vector<1x128xf32>
    %838 = arith.subf %837, %832 : vector<1x128xf32>
    %cst_195 = arith.constant 9.99999997E-7 : f32
    %839 = vector.broadcast %cst_195 : f32 to vector<1x128xf32>
    %840 = arith.addf %838, %839 : vector<1x128xf32>
    %841 = arith.divf %832, %840 : vector<1x128xf32>
    %842 = arith.cmpf ogt, %841, %794 : vector<1x128xf32>
    %843 = arith.select %842, %841, %794 : vector<1x128xi1>, vector<1x128xf32>
    %844 = vector.broadcast %808 : f32 to vector<1x128xf32>
    %845 = arith.select %842, %844, %796 : vector<1x128xi1>, vector<1x128xf32>
    %846 = vector.broadcast %811 : f32 to vector<1x128xf32>
    %847 = arith.select %842, %846, %798 : vector<1x128xi1>, vector<1x128xf32>
    %848 = vector.broadcast %814 : f32 to vector<1x128xf32>
    %849 = arith.select %842, %848, %800 : vector<1x128xi1>, vector<1x128xf32>
    %850 = vector.broadcast %817 : f32 to vector<1x128xf32>
    %851 = arith.select %842, %850, %802 : vector<1x128xi1>, vector<1x128xf32>
    %cst_196 = arith.constant 5.000000e-01 : f32
    %852 = vector.broadcast %cst_196 : f32 to vector<1x128xf32>
    %853 = arith.cmpf ogt, %843, %852 : vector<1x128xf32>
    %854 = arith.extui %853 : vector<1x128xi1> to vector<1x128xi32>
    %855 = arith.sitofp %854 : vector<1x128xi32> to vector<1x128xf32>
    %856 = arith.subf %690, %845 : vector<1x128xf32>
    %857 = math.absf %856 : vector<1x128xf32>
    %cst_197 = arith.constant 1.000000e+00 : f32
    %858 = vector.broadcast %cst_197 : f32 to vector<1x128xf32>
    %859 = arith.cmpf olt, %857, %858 : vector<1x128xf32>
    %cst_198 = arith.constant 5.000000e-01 : f32
    %860 = vector.broadcast %cst_198 : f32 to vector<1x128xf32>
    %861 = arith.mulf %860, %856 : vector<1x128xf32>
    %862 = arith.mulf %861, %856 : vector<1x128xf32>
    %cst_199 = arith.constant 1.000000e+00 : f32
    %863 = vector.broadcast %cst_199 : f32 to vector<1x128xf32>
    %864 = arith.divf %862, %863 : vector<1x128xf32>
    %cst_200 = arith.constant 5.000000e-01 : f32
    %865 = vector.broadcast %cst_200 : f32 to vector<1x128xf32>
    %866 = arith.subf %857, %865 : vector<1x128xf32>
    %867 = arith.select %859, %864, %866 : vector<1x128xi1>, vector<1x128xf32>
    %868 = arith.subf %692, %847 : vector<1x128xf32>
    %869 = math.absf %868 : vector<1x128xf32>
    %cst_201 = arith.constant 1.000000e+00 : f32
    %870 = vector.broadcast %cst_201 : f32 to vector<1x128xf32>
    %871 = arith.cmpf olt, %869, %870 : vector<1x128xf32>
    %cst_202 = arith.constant 5.000000e-01 : f32
    %872 = vector.broadcast %cst_202 : f32 to vector<1x128xf32>
    %873 = arith.mulf %872, %868 : vector<1x128xf32>
    %874 = arith.mulf %873, %868 : vector<1x128xf32>
    %cst_203 = arith.constant 1.000000e+00 : f32
    %875 = vector.broadcast %cst_203 : f32 to vector<1x128xf32>
    %876 = arith.divf %874, %875 : vector<1x128xf32>
    %cst_204 = arith.constant 5.000000e-01 : f32
    %877 = vector.broadcast %cst_204 : f32 to vector<1x128xf32>
    %878 = arith.subf %869, %877 : vector<1x128xf32>
    %879 = arith.select %871, %876, %878 : vector<1x128xi1>, vector<1x128xf32>
    %880 = arith.addf %867, %879 : vector<1x128xf32>
    %881 = arith.subf %694, %849 : vector<1x128xf32>
    %882 = math.absf %881 : vector<1x128xf32>
    %cst_205 = arith.constant 1.000000e+00 : f32
    %883 = vector.broadcast %cst_205 : f32 to vector<1x128xf32>
    %884 = arith.cmpf olt, %882, %883 : vector<1x128xf32>
    %cst_206 = arith.constant 5.000000e-01 : f32
    %885 = vector.broadcast %cst_206 : f32 to vector<1x128xf32>
    %886 = arith.mulf %885, %881 : vector<1x128xf32>
    %887 = arith.mulf %886, %881 : vector<1x128xf32>
    %cst_207 = arith.constant 1.000000e+00 : f32
    %888 = vector.broadcast %cst_207 : f32 to vector<1x128xf32>
    %889 = arith.divf %887, %888 : vector<1x128xf32>
    %cst_208 = arith.constant 5.000000e-01 : f32
    %890 = vector.broadcast %cst_208 : f32 to vector<1x128xf32>
    %891 = arith.subf %882, %890 : vector<1x128xf32>
    %892 = arith.select %884, %889, %891 : vector<1x128xi1>, vector<1x128xf32>
    %893 = arith.addf %880, %892 : vector<1x128xf32>
    %894 = arith.subf %696, %851 : vector<1x128xf32>
    %895 = math.absf %894 : vector<1x128xf32>
    %cst_209 = arith.constant 1.000000e+00 : f32
    %896 = vector.broadcast %cst_209 : f32 to vector<1x128xf32>
    %897 = arith.cmpf olt, %895, %896 : vector<1x128xf32>
    %cst_210 = arith.constant 5.000000e-01 : f32
    %898 = vector.broadcast %cst_210 : f32 to vector<1x128xf32>
    %899 = arith.mulf %898, %894 : vector<1x128xf32>
    %900 = arith.mulf %899, %894 : vector<1x128xf32>
    %cst_211 = arith.constant 1.000000e+00 : f32
    %901 = vector.broadcast %cst_211 : f32 to vector<1x128xf32>
    %902 = arith.divf %900, %901 : vector<1x128xf32>
    %cst_212 = arith.constant 5.000000e-01 : f32
    %903 = vector.broadcast %cst_212 : f32 to vector<1x128xf32>
    %904 = arith.subf %895, %903 : vector<1x128xf32>
    %905 = arith.select %897, %902, %904 : vector<1x128xi1>, vector<1x128xf32>
    %906 = arith.addf %893, %905 : vector<1x128xf32>
    %907 = arith.mulf %906, %855 : vector<1x128xf32>
    %908 = vector.shape_cast %907 : vector<1x128xf32> to vector<1x1x128xf32>
    %cst_213 = arith.constant dense<0.000000e+00> : vector<1xf32>
    %909 = vector.multi_reduction <add>, %908, %cst_213 [1, 2] : vector<1x1x128xf32> to vector<1xf32>
    %910 = vector.shape_cast %909 : vector<1xf32> to vector<1x1x1xf32>
    %911 = vector.extract %910[0, 0, 0] : f32 from vector<1x1x1xf32>
    %912 = arith.addf %683, %911 : f32
    %913 = vector.shape_cast %855 : vector<1x128xf32> to vector<1x1x128xf32>
    %cst_214 = arith.constant dense<0.000000e+00> : vector<1xf32>
    %914 = vector.multi_reduction <add>, %913, %cst_214 [1, 2] : vector<1x1x128xf32> to vector<1xf32>
    %915 = vector.shape_cast %914 : vector<1xf32> to vector<1x1x1xf32>
    %916 = vector.extract %915[0, 0, 0] : f32 from vector<1x1x1xf32>
    %917 = arith.addf %688, %916 : f32
    %918 = vector.extract_strided_slice %1 {offsets = [16, 0, 0], sizes = [1, 1, 128], strides = [1, 1, 1]} : vector<36x1x128xf32> to vector<1x1x128xf32>
    %919 = vector.shape_cast %918 : vector<1x1x128xf32> to vector<1x128xf32>
    %920 = vector.extract_strided_slice %1 {offsets = [17, 0, 0], sizes = [1, 1, 128], strides = [1, 1, 1]} : vector<36x1x128xf32> to vector<1x1x128xf32>
    %921 = vector.shape_cast %920 : vector<1x1x128xf32> to vector<1x128xf32>
    %922 = vector.extract_strided_slice %1 {offsets = [18, 0, 0], sizes = [1, 1, 128], strides = [1, 1, 1]} : vector<36x1x128xf32> to vector<1x1x128xf32>
    %923 = vector.shape_cast %922 : vector<1x1x128xf32> to vector<1x128xf32>
    %924 = vector.extract_strided_slice %1 {offsets = [19, 0, 0], sizes = [1, 1, 128], strides = [1, 1, 1]} : vector<36x1x128xf32> to vector<1x1x128xf32>
    %925 = vector.shape_cast %924 : vector<1x1x128xf32> to vector<1x128xf32>
    %926 = arith.subf %923, %919 : vector<1x128xf32>
    %927 = arith.subf %925, %921 : vector<1x128xf32>
    %928 = arith.mulf %926, %927 : vector<1x128xf32>
    %cst_215 = arith.constant -1.000000e+00 : f32
    %929 = vector.broadcast %cst_215 : f32 to vector<1x128xf32>
    %cst_216 = arith.constant 0.000000e+00 : f32
    %930 = vector.broadcast %cst_216 : f32 to vector<1x128xf32>
    %cst_217 = arith.constant 0.000000e+00 : f32
    %931 = vector.broadcast %cst_217 : f32 to vector<1x128xf32>
    %cst_218 = arith.constant 0.000000e+00 : f32
    %932 = vector.broadcast %cst_218 : f32 to vector<1x128xf32>
    %cst_219 = arith.constant 0.000000e+00 : f32
    %933 = vector.broadcast %cst_219 : f32 to vector<1x128xf32>
    %c3_i32_220 = arith.constant 3 : i32
    %934 = arith.muli %arg0, %c3_i32_220 : i32
    %c0_i32_221 = arith.constant 0 : i32
    %935 = arith.addi %934, %c0_i32_221 : i32
    %c4_i32_222 = arith.constant 4 : i32
    %936 = arith.muli %935, %c4_i32_222 : i32
    %c0_i32_223 = arith.constant 0 : i32
    %937 = arith.addi %936, %c0_i32_223 : i32
    %938 = arith.index_cast %937 : i32 to index
    %939 = memref.load %arg3[%938] : memref<24xf32, #tpu.memory_space<smem>>
    %c1_i32_224 = arith.constant 1 : i32
    %940 = arith.addi %936, %c1_i32_224 : i32
    %941 = arith.index_cast %940 : i32 to index
    %942 = memref.load %arg3[%941] : memref<24xf32, #tpu.memory_space<smem>>
    %c2_i32_225 = arith.constant 2 : i32
    %943 = arith.addi %936, %c2_i32_225 : i32
    %944 = arith.index_cast %943 : i32 to index
    %945 = memref.load %arg3[%944] : memref<24xf32, #tpu.memory_space<smem>>
    %c3_i32_226 = arith.constant 3 : i32
    %946 = arith.addi %936, %c3_i32_226 : i32
    %947 = arith.index_cast %946 : i32 to index
    %948 = memref.load %arg3[%947] : memref<24xf32, #tpu.memory_space<smem>>
    %949 = vector.broadcast %939 : f32 to vector<1x128xf32>
    %950 = arith.maximumf %919, %949 : vector<1x128xf32>
    %951 = vector.broadcast %942 : f32 to vector<1x128xf32>
    %952 = arith.maximumf %921, %951 : vector<1x128xf32>
    %953 = vector.broadcast %945 : f32 to vector<1x128xf32>
    %954 = arith.minimumf %923, %953 : vector<1x128xf32>
    %955 = vector.broadcast %948 : f32 to vector<1x128xf32>
    %956 = arith.minimumf %925, %955 : vector<1x128xf32>
    %957 = arith.subf %954, %950 : vector<1x128xf32>
    %cst_227 = arith.constant 0.000000e+00 : f32
    %958 = vector.broadcast %cst_227 : f32 to vector<1x128xf32>
    %959 = arith.maximumf %957, %958 : vector<1x128xf32>
    %960 = arith.subf %956, %952 : vector<1x128xf32>
    %cst_228 = arith.constant 0.000000e+00 : f32
    %961 = vector.broadcast %cst_228 : f32 to vector<1x128xf32>
    %962 = arith.maximumf %960, %961 : vector<1x128xf32>
    %963 = arith.mulf %959, %962 : vector<1x128xf32>
    %964 = arith.subf %945, %939 : f32
    %965 = arith.subf %948, %942 : f32
    %966 = arith.mulf %964, %965 : f32
    %967 = vector.broadcast %966 : f32 to vector<1x128xf32>
    %968 = arith.addf %928, %967 : vector<1x128xf32>
    %969 = arith.subf %968, %963 : vector<1x128xf32>
    %cst_229 = arith.constant 9.99999997E-7 : f32
    %970 = vector.broadcast %cst_229 : f32 to vector<1x128xf32>
    %971 = arith.addf %969, %970 : vector<1x128xf32>
    %972 = arith.divf %963, %971 : vector<1x128xf32>
    %973 = arith.cmpf ogt, %972, %929 : vector<1x128xf32>
    %974 = arith.select %973, %972, %929 : vector<1x128xi1>, vector<1x128xf32>
    %975 = vector.broadcast %939 : f32 to vector<1x128xf32>
    %976 = arith.select %973, %975, %930 : vector<1x128xi1>, vector<1x128xf32>
    %977 = vector.broadcast %942 : f32 to vector<1x128xf32>
    %978 = arith.select %973, %977, %931 : vector<1x128xi1>, vector<1x128xf32>
    %979 = vector.broadcast %945 : f32 to vector<1x128xf32>
    %980 = arith.select %973, %979, %932 : vector<1x128xi1>, vector<1x128xf32>
    %981 = vector.broadcast %948 : f32 to vector<1x128xf32>
    %982 = arith.select %973, %981, %933 : vector<1x128xi1>, vector<1x128xf32>
    %c3_i32_230 = arith.constant 3 : i32
    %983 = arith.muli %arg0, %c3_i32_230 : i32
    %c1_i32_231 = arith.constant 1 : i32
    %984 = arith.addi %983, %c1_i32_231 : i32
    %c4_i32_232 = arith.constant 4 : i32
    %985 = arith.muli %984, %c4_i32_232 : i32
    %c0_i32_233 = arith.constant 0 : i32
    %986 = arith.addi %985, %c0_i32_233 : i32
    %987 = arith.index_cast %986 : i32 to index
    %988 = memref.load %arg3[%987] : memref<24xf32, #tpu.memory_space<smem>>
    %c1_i32_234 = arith.constant 1 : i32
    %989 = arith.addi %985, %c1_i32_234 : i32
    %990 = arith.index_cast %989 : i32 to index
    %991 = memref.load %arg3[%990] : memref<24xf32, #tpu.memory_space<smem>>
    %c2_i32_235 = arith.constant 2 : i32
    %992 = arith.addi %985, %c2_i32_235 : i32
    %993 = arith.index_cast %992 : i32 to index
    %994 = memref.load %arg3[%993] : memref<24xf32, #tpu.memory_space<smem>>
    %c3_i32_236 = arith.constant 3 : i32
    %995 = arith.addi %985, %c3_i32_236 : i32
    %996 = arith.index_cast %995 : i32 to index
    %997 = memref.load %arg3[%996] : memref<24xf32, #tpu.memory_space<smem>>
    %998 = vector.broadcast %988 : f32 to vector<1x128xf32>
    %999 = arith.maximumf %919, %998 : vector<1x128xf32>
    %1000 = vector.broadcast %991 : f32 to vector<1x128xf32>
    %1001 = arith.maximumf %921, %1000 : vector<1x128xf32>
    %1002 = vector.broadcast %994 : f32 to vector<1x128xf32>
    %1003 = arith.minimumf %923, %1002 : vector<1x128xf32>
    %1004 = vector.broadcast %997 : f32 to vector<1x128xf32>
    %1005 = arith.minimumf %925, %1004 : vector<1x128xf32>
    %1006 = arith.subf %1003, %999 : vector<1x128xf32>
    %cst_237 = arith.constant 0.000000e+00 : f32
    %1007 = vector.broadcast %cst_237 : f32 to vector<1x128xf32>
    %1008 = arith.maximumf %1006, %1007 : vector<1x128xf32>
    %1009 = arith.subf %1005, %1001 : vector<1x128xf32>
    %cst_238 = arith.constant 0.000000e+00 : f32
    %1010 = vector.broadcast %cst_238 : f32 to vector<1x128xf32>
    %1011 = arith.maximumf %1009, %1010 : vector<1x128xf32>
    %1012 = arith.mulf %1008, %1011 : vector<1x128xf32>
    %1013 = arith.subf %994, %988 : f32
    %1014 = arith.subf %997, %991 : f32
    %1015 = arith.mulf %1013, %1014 : f32
    %1016 = vector.broadcast %1015 : f32 to vector<1x128xf32>
    %1017 = arith.addf %928, %1016 : vector<1x128xf32>
    %1018 = arith.subf %1017, %1012 : vector<1x128xf32>
    %cst_239 = arith.constant 9.99999997E-7 : f32
    %1019 = vector.broadcast %cst_239 : f32 to vector<1x128xf32>
    %1020 = arith.addf %1018, %1019 : vector<1x128xf32>
    %1021 = arith.divf %1012, %1020 : vector<1x128xf32>
    %1022 = arith.cmpf ogt, %1021, %974 : vector<1x128xf32>
    %1023 = arith.select %1022, %1021, %974 : vector<1x128xi1>, vector<1x128xf32>
    %1024 = vector.broadcast %988 : f32 to vector<1x128xf32>
    %1025 = arith.select %1022, %1024, %976 : vector<1x128xi1>, vector<1x128xf32>
    %1026 = vector.broadcast %991 : f32 to vector<1x128xf32>
    %1027 = arith.select %1022, %1026, %978 : vector<1x128xi1>, vector<1x128xf32>
    %1028 = vector.broadcast %994 : f32 to vector<1x128xf32>
    %1029 = arith.select %1022, %1028, %980 : vector<1x128xi1>, vector<1x128xf32>
    %1030 = vector.broadcast %997 : f32 to vector<1x128xf32>
    %1031 = arith.select %1022, %1030, %982 : vector<1x128xi1>, vector<1x128xf32>
    %c3_i32_240 = arith.constant 3 : i32
    %1032 = arith.muli %arg0, %c3_i32_240 : i32
    %c2_i32_241 = arith.constant 2 : i32
    %1033 = arith.addi %1032, %c2_i32_241 : i32
    %c4_i32_242 = arith.constant 4 : i32
    %1034 = arith.muli %1033, %c4_i32_242 : i32
    %c0_i32_243 = arith.constant 0 : i32
    %1035 = arith.addi %1034, %c0_i32_243 : i32
    %1036 = arith.index_cast %1035 : i32 to index
    %1037 = memref.load %arg3[%1036] : memref<24xf32, #tpu.memory_space<smem>>
    %c1_i32_244 = arith.constant 1 : i32
    %1038 = arith.addi %1034, %c1_i32_244 : i32
    %1039 = arith.index_cast %1038 : i32 to index
    %1040 = memref.load %arg3[%1039] : memref<24xf32, #tpu.memory_space<smem>>
    %c2_i32_245 = arith.constant 2 : i32
    %1041 = arith.addi %1034, %c2_i32_245 : i32
    %1042 = arith.index_cast %1041 : i32 to index
    %1043 = memref.load %arg3[%1042] : memref<24xf32, #tpu.memory_space<smem>>
    %c3_i32_246 = arith.constant 3 : i32
    %1044 = arith.addi %1034, %c3_i32_246 : i32
    %1045 = arith.index_cast %1044 : i32 to index
    %1046 = memref.load %arg3[%1045] : memref<24xf32, #tpu.memory_space<smem>>
    %1047 = vector.broadcast %1037 : f32 to vector<1x128xf32>
    %1048 = arith.maximumf %919, %1047 : vector<1x128xf32>
    %1049 = vector.broadcast %1040 : f32 to vector<1x128xf32>
    %1050 = arith.maximumf %921, %1049 : vector<1x128xf32>
    %1051 = vector.broadcast %1043 : f32 to vector<1x128xf32>
    %1052 = arith.minimumf %923, %1051 : vector<1x128xf32>
    %1053 = vector.broadcast %1046 : f32 to vector<1x128xf32>
    %1054 = arith.minimumf %925, %1053 : vector<1x128xf32>
    %1055 = arith.subf %1052, %1048 : vector<1x128xf32>
    %cst_247 = arith.constant 0.000000e+00 : f32
    %1056 = vector.broadcast %cst_247 : f32 to vector<1x128xf32>
    %1057 = arith.maximumf %1055, %1056 : vector<1x128xf32>
    %1058 = arith.subf %1054, %1050 : vector<1x128xf32>
    %cst_248 = arith.constant 0.000000e+00 : f32
    %1059 = vector.broadcast %cst_248 : f32 to vector<1x128xf32>
    %1060 = arith.maximumf %1058, %1059 : vector<1x128xf32>
    %1061 = arith.mulf %1057, %1060 : vector<1x128xf32>
    %1062 = arith.subf %1043, %1037 : f32
    %1063 = arith.subf %1046, %1040 : f32
    %1064 = arith.mulf %1062, %1063 : f32
    %1065 = vector.broadcast %1064 : f32 to vector<1x128xf32>
    %1066 = arith.addf %928, %1065 : vector<1x128xf32>
    %1067 = arith.subf %1066, %1061 : vector<1x128xf32>
    %cst_249 = arith.constant 9.99999997E-7 : f32
    %1068 = vector.broadcast %cst_249 : f32 to vector<1x128xf32>
    %1069 = arith.addf %1067, %1068 : vector<1x128xf32>
    %1070 = arith.divf %1061, %1069 : vector<1x128xf32>
    %1071 = arith.cmpf ogt, %1070, %1023 : vector<1x128xf32>
    %1072 = arith.select %1071, %1070, %1023 : vector<1x128xi1>, vector<1x128xf32>
    %1073 = vector.broadcast %1037 : f32 to vector<1x128xf32>
    %1074 = arith.select %1071, %1073, %1025 : vector<1x128xi1>, vector<1x128xf32>
    %1075 = vector.broadcast %1040 : f32 to vector<1x128xf32>
    %1076 = arith.select %1071, %1075, %1027 : vector<1x128xi1>, vector<1x128xf32>
    %1077 = vector.broadcast %1043 : f32 to vector<1x128xf32>
    %1078 = arith.select %1071, %1077, %1029 : vector<1x128xi1>, vector<1x128xf32>
    %1079 = vector.broadcast %1046 : f32 to vector<1x128xf32>
    %1080 = arith.select %1071, %1079, %1031 : vector<1x128xi1>, vector<1x128xf32>
    %cst_250 = arith.constant 5.000000e-01 : f32
    %1081 = vector.broadcast %cst_250 : f32 to vector<1x128xf32>
    %1082 = arith.cmpf ogt, %1072, %1081 : vector<1x128xf32>
    %1083 = arith.extui %1082 : vector<1x128xi1> to vector<1x128xi32>
    %1084 = arith.sitofp %1083 : vector<1x128xi32> to vector<1x128xf32>
    %1085 = arith.subf %919, %1074 : vector<1x128xf32>
    %1086 = math.absf %1085 : vector<1x128xf32>
    %cst_251 = arith.constant 1.000000e+00 : f32
    %1087 = vector.broadcast %cst_251 : f32 to vector<1x128xf32>
    %1088 = arith.cmpf olt, %1086, %1087 : vector<1x128xf32>
    %cst_252 = arith.constant 5.000000e-01 : f32
    %1089 = vector.broadcast %cst_252 : f32 to vector<1x128xf32>
    %1090 = arith.mulf %1089, %1085 : vector<1x128xf32>
    %1091 = arith.mulf %1090, %1085 : vector<1x128xf32>
    %cst_253 = arith.constant 1.000000e+00 : f32
    %1092 = vector.broadcast %cst_253 : f32 to vector<1x128xf32>
    %1093 = arith.divf %1091, %1092 : vector<1x128xf32>
    %cst_254 = arith.constant 5.000000e-01 : f32
    %1094 = vector.broadcast %cst_254 : f32 to vector<1x128xf32>
    %1095 = arith.subf %1086, %1094 : vector<1x128xf32>
    %1096 = arith.select %1088, %1093, %1095 : vector<1x128xi1>, vector<1x128xf32>
    %1097 = arith.subf %921, %1076 : vector<1x128xf32>
    %1098 = math.absf %1097 : vector<1x128xf32>
    %cst_255 = arith.constant 1.000000e+00 : f32
    %1099 = vector.broadcast %cst_255 : f32 to vector<1x128xf32>
    %1100 = arith.cmpf olt, %1098, %1099 : vector<1x128xf32>
    %cst_256 = arith.constant 5.000000e-01 : f32
    %1101 = vector.broadcast %cst_256 : f32 to vector<1x128xf32>
    %1102 = arith.mulf %1101, %1097 : vector<1x128xf32>
    %1103 = arith.mulf %1102, %1097 : vector<1x128xf32>
    %cst_257 = arith.constant 1.000000e+00 : f32
    %1104 = vector.broadcast %cst_257 : f32 to vector<1x128xf32>
    %1105 = arith.divf %1103, %1104 : vector<1x128xf32>
    %cst_258 = arith.constant 5.000000e-01 : f32
    %1106 = vector.broadcast %cst_258 : f32 to vector<1x128xf32>
    %1107 = arith.subf %1098, %1106 : vector<1x128xf32>
    %1108 = arith.select %1100, %1105, %1107 : vector<1x128xi1>, vector<1x128xf32>
    %1109 = arith.addf %1096, %1108 : vector<1x128xf32>
    %1110 = arith.subf %923, %1078 : vector<1x128xf32>
    %1111 = math.absf %1110 : vector<1x128xf32>
    %cst_259 = arith.constant 1.000000e+00 : f32
    %1112 = vector.broadcast %cst_259 : f32 to vector<1x128xf32>
    %1113 = arith.cmpf olt, %1111, %1112 : vector<1x128xf32>
    %cst_260 = arith.constant 5.000000e-01 : f32
    %1114 = vector.broadcast %cst_260 : f32 to vector<1x128xf32>
    %1115 = arith.mulf %1114, %1110 : vector<1x128xf32>
    %1116 = arith.mulf %1115, %1110 : vector<1x128xf32>
    %cst_261 = arith.constant 1.000000e+00 : f32
    %1117 = vector.broadcast %cst_261 : f32 to vector<1x128xf32>
    %1118 = arith.divf %1116, %1117 : vector<1x128xf32>
    %cst_262 = arith.constant 5.000000e-01 : f32
    %1119 = vector.broadcast %cst_262 : f32 to vector<1x128xf32>
    %1120 = arith.subf %1111, %1119 : vector<1x128xf32>
    %1121 = arith.select %1113, %1118, %1120 : vector<1x128xi1>, vector<1x128xf32>
    %1122 = arith.addf %1109, %1121 : vector<1x128xf32>
    %1123 = arith.subf %925, %1080 : vector<1x128xf32>
    %1124 = math.absf %1123 : vector<1x128xf32>
    %cst_263 = arith.constant 1.000000e+00 : f32
    %1125 = vector.broadcast %cst_263 : f32 to vector<1x128xf32>
    %1126 = arith.cmpf olt, %1124, %1125 : vector<1x128xf32>
    %cst_264 = arith.constant 5.000000e-01 : f32
    %1127 = vector.broadcast %cst_264 : f32 to vector<1x128xf32>
    %1128 = arith.mulf %1127, %1123 : vector<1x128xf32>
    %1129 = arith.mulf %1128, %1123 : vector<1x128xf32>
    %cst_265 = arith.constant 1.000000e+00 : f32
    %1130 = vector.broadcast %cst_265 : f32 to vector<1x128xf32>
    %1131 = arith.divf %1129, %1130 : vector<1x128xf32>
    %cst_266 = arith.constant 5.000000e-01 : f32
    %1132 = vector.broadcast %cst_266 : f32 to vector<1x128xf32>
    %1133 = arith.subf %1124, %1132 : vector<1x128xf32>
    %1134 = arith.select %1126, %1131, %1133 : vector<1x128xi1>, vector<1x128xf32>
    %1135 = arith.addf %1122, %1134 : vector<1x128xf32>
    %1136 = arith.mulf %1135, %1084 : vector<1x128xf32>
    %1137 = vector.shape_cast %1136 : vector<1x128xf32> to vector<1x1x128xf32>
    %cst_267 = arith.constant dense<0.000000e+00> : vector<1xf32>
    %1138 = vector.multi_reduction <add>, %1137, %cst_267 [1, 2] : vector<1x1x128xf32> to vector<1xf32>
    %1139 = vector.shape_cast %1138 : vector<1xf32> to vector<1x1x1xf32>
    %1140 = vector.extract %1139[0, 0, 0] : f32 from vector<1x1x1xf32>
    %1141 = arith.addf %912, %1140 : f32
    %1142 = vector.shape_cast %1084 : vector<1x128xf32> to vector<1x1x128xf32>
    %cst_268 = arith.constant dense<0.000000e+00> : vector<1xf32>
    %1143 = vector.multi_reduction <add>, %1142, %cst_268 [1, 2] : vector<1x1x128xf32> to vector<1xf32>
    %1144 = vector.shape_cast %1143 : vector<1xf32> to vector<1x1x1xf32>
    %1145 = vector.extract %1144[0, 0, 0] : f32 from vector<1x1x1xf32>
    %1146 = arith.addf %917, %1145 : f32
    %1147 = vector.extract_strided_slice %1 {offsets = [20, 0, 0], sizes = [1, 1, 128], strides = [1, 1, 1]} : vector<36x1x128xf32> to vector<1x1x128xf32>
    %1148 = vector.shape_cast %1147 : vector<1x1x128xf32> to vector<1x128xf32>
    %1149 = vector.extract_strided_slice %1 {offsets = [21, 0, 0], sizes = [1, 1, 128], strides = [1, 1, 1]} : vector<36x1x128xf32> to vector<1x1x128xf32>
    %1150 = vector.shape_cast %1149 : vector<1x1x128xf32> to vector<1x128xf32>
    %1151 = vector.extract_strided_slice %1 {offsets = [22, 0, 0], sizes = [1, 1, 128], strides = [1, 1, 1]} : vector<36x1x128xf32> to vector<1x1x128xf32>
    %1152 = vector.shape_cast %1151 : vector<1x1x128xf32> to vector<1x128xf32>
    %1153 = vector.extract_strided_slice %1 {offsets = [23, 0, 0], sizes = [1, 1, 128], strides = [1, 1, 1]} : vector<36x1x128xf32> to vector<1x1x128xf32>
    %1154 = vector.shape_cast %1153 : vector<1x1x128xf32> to vector<1x128xf32>
    %1155 = arith.subf %1152, %1148 : vector<1x128xf32>
    %1156 = arith.subf %1154, %1150 : vector<1x128xf32>
    %1157 = arith.mulf %1155, %1156 : vector<1x128xf32>
    %cst_269 = arith.constant -1.000000e+00 : f32
    %1158 = vector.broadcast %cst_269 : f32 to vector<1x128xf32>
    %cst_270 = arith.constant 0.000000e+00 : f32
    %1159 = vector.broadcast %cst_270 : f32 to vector<1x128xf32>
    %cst_271 = arith.constant 0.000000e+00 : f32
    %1160 = vector.broadcast %cst_271 : f32 to vector<1x128xf32>
    %cst_272 = arith.constant 0.000000e+00 : f32
    %1161 = vector.broadcast %cst_272 : f32 to vector<1x128xf32>
    %cst_273 = arith.constant 0.000000e+00 : f32
    %1162 = vector.broadcast %cst_273 : f32 to vector<1x128xf32>
    %c3_i32_274 = arith.constant 3 : i32
    %1163 = arith.muli %arg0, %c3_i32_274 : i32
    %c0_i32_275 = arith.constant 0 : i32
    %1164 = arith.addi %1163, %c0_i32_275 : i32
    %c4_i32_276 = arith.constant 4 : i32
    %1165 = arith.muli %1164, %c4_i32_276 : i32
    %c0_i32_277 = arith.constant 0 : i32
    %1166 = arith.addi %1165, %c0_i32_277 : i32
    %1167 = arith.index_cast %1166 : i32 to index
    %1168 = memref.load %arg3[%1167] : memref<24xf32, #tpu.memory_space<smem>>
    %c1_i32_278 = arith.constant 1 : i32
    %1169 = arith.addi %1165, %c1_i32_278 : i32
    %1170 = arith.index_cast %1169 : i32 to index
    %1171 = memref.load %arg3[%1170] : memref<24xf32, #tpu.memory_space<smem>>
    %c2_i32_279 = arith.constant 2 : i32
    %1172 = arith.addi %1165, %c2_i32_279 : i32
    %1173 = arith.index_cast %1172 : i32 to index
    %1174 = memref.load %arg3[%1173] : memref<24xf32, #tpu.memory_space<smem>>
    %c3_i32_280 = arith.constant 3 : i32
    %1175 = arith.addi %1165, %c3_i32_280 : i32
    %1176 = arith.index_cast %1175 : i32 to index
    %1177 = memref.load %arg3[%1176] : memref<24xf32, #tpu.memory_space<smem>>
    %1178 = vector.broadcast %1168 : f32 to vector<1x128xf32>
    %1179 = arith.maximumf %1148, %1178 : vector<1x128xf32>
    %1180 = vector.broadcast %1171 : f32 to vector<1x128xf32>
    %1181 = arith.maximumf %1150, %1180 : vector<1x128xf32>
    %1182 = vector.broadcast %1174 : f32 to vector<1x128xf32>
    %1183 = arith.minimumf %1152, %1182 : vector<1x128xf32>
    %1184 = vector.broadcast %1177 : f32 to vector<1x128xf32>
    %1185 = arith.minimumf %1154, %1184 : vector<1x128xf32>
    %1186 = arith.subf %1183, %1179 : vector<1x128xf32>
    %cst_281 = arith.constant 0.000000e+00 : f32
    %1187 = vector.broadcast %cst_281 : f32 to vector<1x128xf32>
    %1188 = arith.maximumf %1186, %1187 : vector<1x128xf32>
    %1189 = arith.subf %1185, %1181 : vector<1x128xf32>
    %cst_282 = arith.constant 0.000000e+00 : f32
    %1190 = vector.broadcast %cst_282 : f32 to vector<1x128xf32>
    %1191 = arith.maximumf %1189, %1190 : vector<1x128xf32>
    %1192 = arith.mulf %1188, %1191 : vector<1x128xf32>
    %1193 = arith.subf %1174, %1168 : f32
    %1194 = arith.subf %1177, %1171 : f32
    %1195 = arith.mulf %1193, %1194 : f32
    %1196 = vector.broadcast %1195 : f32 to vector<1x128xf32>
    %1197 = arith.addf %1157, %1196 : vector<1x128xf32>
    %1198 = arith.subf %1197, %1192 : vector<1x128xf32>
    %cst_283 = arith.constant 9.99999997E-7 : f32
    %1199 = vector.broadcast %cst_283 : f32 to vector<1x128xf32>
    %1200 = arith.addf %1198, %1199 : vector<1x128xf32>
    %1201 = arith.divf %1192, %1200 : vector<1x128xf32>
    %1202 = arith.cmpf ogt, %1201, %1158 : vector<1x128xf32>
    %1203 = arith.select %1202, %1201, %1158 : vector<1x128xi1>, vector<1x128xf32>
    %1204 = vector.broadcast %1168 : f32 to vector<1x128xf32>
    %1205 = arith.select %1202, %1204, %1159 : vector<1x128xi1>, vector<1x128xf32>
    %1206 = vector.broadcast %1171 : f32 to vector<1x128xf32>
    %1207 = arith.select %1202, %1206, %1160 : vector<1x128xi1>, vector<1x128xf32>
    %1208 = vector.broadcast %1174 : f32 to vector<1x128xf32>
    %1209 = arith.select %1202, %1208, %1161 : vector<1x128xi1>, vector<1x128xf32>
    %1210 = vector.broadcast %1177 : f32 to vector<1x128xf32>
    %1211 = arith.select %1202, %1210, %1162 : vector<1x128xi1>, vector<1x128xf32>
    %c3_i32_284 = arith.constant 3 : i32
    %1212 = arith.muli %arg0, %c3_i32_284 : i32
    %c1_i32_285 = arith.constant 1 : i32
    %1213 = arith.addi %1212, %c1_i32_285 : i32
    %c4_i32_286 = arith.constant 4 : i32
    %1214 = arith.muli %1213, %c4_i32_286 : i32
    %c0_i32_287 = arith.constant 0 : i32
    %1215 = arith.addi %1214, %c0_i32_287 : i32
    %1216 = arith.index_cast %1215 : i32 to index
    %1217 = memref.load %arg3[%1216] : memref<24xf32, #tpu.memory_space<smem>>
    %c1_i32_288 = arith.constant 1 : i32
    %1218 = arith.addi %1214, %c1_i32_288 : i32
    %1219 = arith.index_cast %1218 : i32 to index
    %1220 = memref.load %arg3[%1219] : memref<24xf32, #tpu.memory_space<smem>>
    %c2_i32_289 = arith.constant 2 : i32
    %1221 = arith.addi %1214, %c2_i32_289 : i32
    %1222 = arith.index_cast %1221 : i32 to index
    %1223 = memref.load %arg3[%1222] : memref<24xf32, #tpu.memory_space<smem>>
    %c3_i32_290 = arith.constant 3 : i32
    %1224 = arith.addi %1214, %c3_i32_290 : i32
    %1225 = arith.index_cast %1224 : i32 to index
    %1226 = memref.load %arg3[%1225] : memref<24xf32, #tpu.memory_space<smem>>
    %1227 = vector.broadcast %1217 : f32 to vector<1x128xf32>
    %1228 = arith.maximumf %1148, %1227 : vector<1x128xf32>
    %1229 = vector.broadcast %1220 : f32 to vector<1x128xf32>
    %1230 = arith.maximumf %1150, %1229 : vector<1x128xf32>
    %1231 = vector.broadcast %1223 : f32 to vector<1x128xf32>
    %1232 = arith.minimumf %1152, %1231 : vector<1x128xf32>
    %1233 = vector.broadcast %1226 : f32 to vector<1x128xf32>
    %1234 = arith.minimumf %1154, %1233 : vector<1x128xf32>
    %1235 = arith.subf %1232, %1228 : vector<1x128xf32>
    %cst_291 = arith.constant 0.000000e+00 : f32
    %1236 = vector.broadcast %cst_291 : f32 to vector<1x128xf32>
    %1237 = arith.maximumf %1235, %1236 : vector<1x128xf32>
    %1238 = arith.subf %1234, %1230 : vector<1x128xf32>
    %cst_292 = arith.constant 0.000000e+00 : f32
    %1239 = vector.broadcast %cst_292 : f32 to vector<1x128xf32>
    %1240 = arith.maximumf %1238, %1239 : vector<1x128xf32>
    %1241 = arith.mulf %1237, %1240 : vector<1x128xf32>
    %1242 = arith.subf %1223, %1217 : f32
    %1243 = arith.subf %1226, %1220 : f32
    %1244 = arith.mulf %1242, %1243 : f32
    %1245 = vector.broadcast %1244 : f32 to vector<1x128xf32>
    %1246 = arith.addf %1157, %1245 : vector<1x128xf32>
    %1247 = arith.subf %1246, %1241 : vector<1x128xf32>
    %cst_293 = arith.constant 9.99999997E-7 : f32
    %1248 = vector.broadcast %cst_293 : f32 to vector<1x128xf32>
    %1249 = arith.addf %1247, %1248 : vector<1x128xf32>
    %1250 = arith.divf %1241, %1249 : vector<1x128xf32>
    %1251 = arith.cmpf ogt, %1250, %1203 : vector<1x128xf32>
    %1252 = arith.select %1251, %1250, %1203 : vector<1x128xi1>, vector<1x128xf32>
    %1253 = vector.broadcast %1217 : f32 to vector<1x128xf32>
    %1254 = arith.select %1251, %1253, %1205 : vector<1x128xi1>, vector<1x128xf32>
    %1255 = vector.broadcast %1220 : f32 to vector<1x128xf32>
    %1256 = arith.select %1251, %1255, %1207 : vector<1x128xi1>, vector<1x128xf32>
    %1257 = vector.broadcast %1223 : f32 to vector<1x128xf32>
    %1258 = arith.select %1251, %1257, %1209 : vector<1x128xi1>, vector<1x128xf32>
    %1259 = vector.broadcast %1226 : f32 to vector<1x128xf32>
    %1260 = arith.select %1251, %1259, %1211 : vector<1x128xi1>, vector<1x128xf32>
    %c3_i32_294 = arith.constant 3 : i32
    %1261 = arith.muli %arg0, %c3_i32_294 : i32
    %c2_i32_295 = arith.constant 2 : i32
    %1262 = arith.addi %1261, %c2_i32_295 : i32
    %c4_i32_296 = arith.constant 4 : i32
    %1263 = arith.muli %1262, %c4_i32_296 : i32
    %c0_i32_297 = arith.constant 0 : i32
    %1264 = arith.addi %1263, %c0_i32_297 : i32
    %1265 = arith.index_cast %1264 : i32 to index
    %1266 = memref.load %arg3[%1265] : memref<24xf32, #tpu.memory_space<smem>>
    %c1_i32_298 = arith.constant 1 : i32
    %1267 = arith.addi %1263, %c1_i32_298 : i32
    %1268 = arith.index_cast %1267 : i32 to index
    %1269 = memref.load %arg3[%1268] : memref<24xf32, #tpu.memory_space<smem>>
    %c2_i32_299 = arith.constant 2 : i32
    %1270 = arith.addi %1263, %c2_i32_299 : i32
    %1271 = arith.index_cast %1270 : i32 to index
    %1272 = memref.load %arg3[%1271] : memref<24xf32, #tpu.memory_space<smem>>
    %c3_i32_300 = arith.constant 3 : i32
    %1273 = arith.addi %1263, %c3_i32_300 : i32
    %1274 = arith.index_cast %1273 : i32 to index
    %1275 = memref.load %arg3[%1274] : memref<24xf32, #tpu.memory_space<smem>>
    %1276 = vector.broadcast %1266 : f32 to vector<1x128xf32>
    %1277 = arith.maximumf %1148, %1276 : vector<1x128xf32>
    %1278 = vector.broadcast %1269 : f32 to vector<1x128xf32>
    %1279 = arith.maximumf %1150, %1278 : vector<1x128xf32>
    %1280 = vector.broadcast %1272 : f32 to vector<1x128xf32>
    %1281 = arith.minimumf %1152, %1280 : vector<1x128xf32>
    %1282 = vector.broadcast %1275 : f32 to vector<1x128xf32>
    %1283 = arith.minimumf %1154, %1282 : vector<1x128xf32>
    %1284 = arith.subf %1281, %1277 : vector<1x128xf32>
    %cst_301 = arith.constant 0.000000e+00 : f32
    %1285 = vector.broadcast %cst_301 : f32 to vector<1x128xf32>
    %1286 = arith.maximumf %1284, %1285 : vector<1x128xf32>
    %1287 = arith.subf %1283, %1279 : vector<1x128xf32>
    %cst_302 = arith.constant 0.000000e+00 : f32
    %1288 = vector.broadcast %cst_302 : f32 to vector<1x128xf32>
    %1289 = arith.maximumf %1287, %1288 : vector<1x128xf32>
    %1290 = arith.mulf %1286, %1289 : vector<1x128xf32>
    %1291 = arith.subf %1272, %1266 : f32
    %1292 = arith.subf %1275, %1269 : f32
    %1293 = arith.mulf %1291, %1292 : f32
    %1294 = vector.broadcast %1293 : f32 to vector<1x128xf32>
    %1295 = arith.addf %1157, %1294 : vector<1x128xf32>
    %1296 = arith.subf %1295, %1290 : vector<1x128xf32>
    %cst_303 = arith.constant 9.99999997E-7 : f32
    %1297 = vector.broadcast %cst_303 : f32 to vector<1x128xf32>
    %1298 = arith.addf %1296, %1297 : vector<1x128xf32>
    %1299 = arith.divf %1290, %1298 : vector<1x128xf32>
    %1300 = arith.cmpf ogt, %1299, %1252 : vector<1x128xf32>
    %1301 = arith.select %1300, %1299, %1252 : vector<1x128xi1>, vector<1x128xf32>
    %1302 = vector.broadcast %1266 : f32 to vector<1x128xf32>
    %1303 = arith.select %1300, %1302, %1254 : vector<1x128xi1>, vector<1x128xf32>
    %1304 = vector.broadcast %1269 : f32 to vector<1x128xf32>
    %1305 = arith.select %1300, %1304, %1256 : vector<1x128xi1>, vector<1x128xf32>
    %1306 = vector.broadcast %1272 : f32 to vector<1x128xf32>
    %1307 = arith.select %1300, %1306, %1258 : vector<1x128xi1>, vector<1x128xf32>
    %1308 = vector.broadcast %1275 : f32 to vector<1x128xf32>
    %1309 = arith.select %1300, %1308, %1260 : vector<1x128xi1>, vector<1x128xf32>
    %cst_304 = arith.constant 5.000000e-01 : f32
    %1310 = vector.broadcast %cst_304 : f32 to vector<1x128xf32>
    %1311 = arith.cmpf ogt, %1301, %1310 : vector<1x128xf32>
    %1312 = arith.extui %1311 : vector<1x128xi1> to vector<1x128xi32>
    %1313 = arith.sitofp %1312 : vector<1x128xi32> to vector<1x128xf32>
    %1314 = arith.subf %1148, %1303 : vector<1x128xf32>
    %1315 = math.absf %1314 : vector<1x128xf32>
    %cst_305 = arith.constant 1.000000e+00 : f32
    %1316 = vector.broadcast %cst_305 : f32 to vector<1x128xf32>
    %1317 = arith.cmpf olt, %1315, %1316 : vector<1x128xf32>
    %cst_306 = arith.constant 5.000000e-01 : f32
    %1318 = vector.broadcast %cst_306 : f32 to vector<1x128xf32>
    %1319 = arith.mulf %1318, %1314 : vector<1x128xf32>
    %1320 = arith.mulf %1319, %1314 : vector<1x128xf32>
    %cst_307 = arith.constant 1.000000e+00 : f32
    %1321 = vector.broadcast %cst_307 : f32 to vector<1x128xf32>
    %1322 = arith.divf %1320, %1321 : vector<1x128xf32>
    %cst_308 = arith.constant 5.000000e-01 : f32
    %1323 = vector.broadcast %cst_308 : f32 to vector<1x128xf32>
    %1324 = arith.subf %1315, %1323 : vector<1x128xf32>
    %1325 = arith.select %1317, %1322, %1324 : vector<1x128xi1>, vector<1x128xf32>
    %1326 = arith.subf %1150, %1305 : vector<1x128xf32>
    %1327 = math.absf %1326 : vector<1x128xf32>
    %cst_309 = arith.constant 1.000000e+00 : f32
    %1328 = vector.broadcast %cst_309 : f32 to vector<1x128xf32>
    %1329 = arith.cmpf olt, %1327, %1328 : vector<1x128xf32>
    %cst_310 = arith.constant 5.000000e-01 : f32
    %1330 = vector.broadcast %cst_310 : f32 to vector<1x128xf32>
    %1331 = arith.mulf %1330, %1326 : vector<1x128xf32>
    %1332 = arith.mulf %1331, %1326 : vector<1x128xf32>
    %cst_311 = arith.constant 1.000000e+00 : f32
    %1333 = vector.broadcast %cst_311 : f32 to vector<1x128xf32>
    %1334 = arith.divf %1332, %1333 : vector<1x128xf32>
    %cst_312 = arith.constant 5.000000e-01 : f32
    %1335 = vector.broadcast %cst_312 : f32 to vector<1x128xf32>
    %1336 = arith.subf %1327, %1335 : vector<1x128xf32>
    %1337 = arith.select %1329, %1334, %1336 : vector<1x128xi1>, vector<1x128xf32>
    %1338 = arith.addf %1325, %1337 : vector<1x128xf32>
    %1339 = arith.subf %1152, %1307 : vector<1x128xf32>
    %1340 = math.absf %1339 : vector<1x128xf32>
    %cst_313 = arith.constant 1.000000e+00 : f32
    %1341 = vector.broadcast %cst_313 : f32 to vector<1x128xf32>
    %1342 = arith.cmpf olt, %1340, %1341 : vector<1x128xf32>
    %cst_314 = arith.constant 5.000000e-01 : f32
    %1343 = vector.broadcast %cst_314 : f32 to vector<1x128xf32>
    %1344 = arith.mulf %1343, %1339 : vector<1x128xf32>
    %1345 = arith.mulf %1344, %1339 : vector<1x128xf32>
    %cst_315 = arith.constant 1.000000e+00 : f32
    %1346 = vector.broadcast %cst_315 : f32 to vector<1x128xf32>
    %1347 = arith.divf %1345, %1346 : vector<1x128xf32>
    %cst_316 = arith.constant 5.000000e-01 : f32
    %1348 = vector.broadcast %cst_316 : f32 to vector<1x128xf32>
    %1349 = arith.subf %1340, %1348 : vector<1x128xf32>
    %1350 = arith.select %1342, %1347, %1349 : vector<1x128xi1>, vector<1x128xf32>
    %1351 = arith.addf %1338, %1350 : vector<1x128xf32>
    %1352 = arith.subf %1154, %1309 : vector<1x128xf32>
    %1353 = math.absf %1352 : vector<1x128xf32>
    %cst_317 = arith.constant 1.000000e+00 : f32
    %1354 = vector.broadcast %cst_317 : f32 to vector<1x128xf32>
    %1355 = arith.cmpf olt, %1353, %1354 : vector<1x128xf32>
    %cst_318 = arith.constant 5.000000e-01 : f32
    %1356 = vector.broadcast %cst_318 : f32 to vector<1x128xf32>
    %1357 = arith.mulf %1356, %1352 : vector<1x128xf32>
    %1358 = arith.mulf %1357, %1352 : vector<1x128xf32>
    %cst_319 = arith.constant 1.000000e+00 : f32
    %1359 = vector.broadcast %cst_319 : f32 to vector<1x128xf32>
    %1360 = arith.divf %1358, %1359 : vector<1x128xf32>
    %cst_320 = arith.constant 5.000000e-01 : f32
    %1361 = vector.broadcast %cst_320 : f32 to vector<1x128xf32>
    %1362 = arith.subf %1353, %1361 : vector<1x128xf32>
    %1363 = arith.select %1355, %1360, %1362 : vector<1x128xi1>, vector<1x128xf32>
    %1364 = arith.addf %1351, %1363 : vector<1x128xf32>
    %1365 = arith.mulf %1364, %1313 : vector<1x128xf32>
    %1366 = vector.shape_cast %1365 : vector<1x128xf32> to vector<1x1x128xf32>
    %cst_321 = arith.constant dense<0.000000e+00> : vector<1xf32>
    %1367 = vector.multi_reduction <add>, %1366, %cst_321 [1, 2] : vector<1x1x128xf32> to vector<1xf32>
    %1368 = vector.shape_cast %1367 : vector<1xf32> to vector<1x1x1xf32>
    %1369 = vector.extract %1368[0, 0, 0] : f32 from vector<1x1x1xf32>
    %1370 = arith.addf %1141, %1369 : f32
    %1371 = vector.shape_cast %1313 : vector<1x128xf32> to vector<1x1x128xf32>
    %cst_322 = arith.constant dense<0.000000e+00> : vector<1xf32>
    %1372 = vector.multi_reduction <add>, %1371, %cst_322 [1, 2] : vector<1x1x128xf32> to vector<1xf32>
    %1373 = vector.shape_cast %1372 : vector<1xf32> to vector<1x1x1xf32>
    %1374 = vector.extract %1373[0, 0, 0] : f32 from vector<1x1x1xf32>
    %1375 = arith.addf %1146, %1374 : f32
    %1376 = vector.extract_strided_slice %1 {offsets = [24, 0, 0], sizes = [1, 1, 128], strides = [1, 1, 1]} : vector<36x1x128xf32> to vector<1x1x128xf32>
    %1377 = vector.shape_cast %1376 : vector<1x1x128xf32> to vector<1x128xf32>
    %1378 = vector.extract_strided_slice %1 {offsets = [25, 0, 0], sizes = [1, 1, 128], strides = [1, 1, 1]} : vector<36x1x128xf32> to vector<1x1x128xf32>
    %1379 = vector.shape_cast %1378 : vector<1x1x128xf32> to vector<1x128xf32>
    %1380 = vector.extract_strided_slice %1 {offsets = [26, 0, 0], sizes = [1, 1, 128], strides = [1, 1, 1]} : vector<36x1x128xf32> to vector<1x1x128xf32>
    %1381 = vector.shape_cast %1380 : vector<1x1x128xf32> to vector<1x128xf32>
    %1382 = vector.extract_strided_slice %1 {offsets = [27, 0, 0], sizes = [1, 1, 128], strides = [1, 1, 1]} : vector<36x1x128xf32> to vector<1x1x128xf32>
    %1383 = vector.shape_cast %1382 : vector<1x1x128xf32> to vector<1x128xf32>
    %1384 = arith.subf %1381, %1377 : vector<1x128xf32>
    %1385 = arith.subf %1383, %1379 : vector<1x128xf32>
    %1386 = arith.mulf %1384, %1385 : vector<1x128xf32>
    %cst_323 = arith.constant -1.000000e+00 : f32
    %1387 = vector.broadcast %cst_323 : f32 to vector<1x128xf32>
    %cst_324 = arith.constant 0.000000e+00 : f32
    %1388 = vector.broadcast %cst_324 : f32 to vector<1x128xf32>
    %cst_325 = arith.constant 0.000000e+00 : f32
    %1389 = vector.broadcast %cst_325 : f32 to vector<1x128xf32>
    %cst_326 = arith.constant 0.000000e+00 : f32
    %1390 = vector.broadcast %cst_326 : f32 to vector<1x128xf32>
    %cst_327 = arith.constant 0.000000e+00 : f32
    %1391 = vector.broadcast %cst_327 : f32 to vector<1x128xf32>
    %c3_i32_328 = arith.constant 3 : i32
    %1392 = arith.muli %arg0, %c3_i32_328 : i32
    %c0_i32_329 = arith.constant 0 : i32
    %1393 = arith.addi %1392, %c0_i32_329 : i32
    %c4_i32_330 = arith.constant 4 : i32
    %1394 = arith.muli %1393, %c4_i32_330 : i32
    %c0_i32_331 = arith.constant 0 : i32
    %1395 = arith.addi %1394, %c0_i32_331 : i32
    %1396 = arith.index_cast %1395 : i32 to index
    %1397 = memref.load %arg3[%1396] : memref<24xf32, #tpu.memory_space<smem>>
    %c1_i32_332 = arith.constant 1 : i32
    %1398 = arith.addi %1394, %c1_i32_332 : i32
    %1399 = arith.index_cast %1398 : i32 to index
    %1400 = memref.load %arg3[%1399] : memref<24xf32, #tpu.memory_space<smem>>
    %c2_i32_333 = arith.constant 2 : i32
    %1401 = arith.addi %1394, %c2_i32_333 : i32
    %1402 = arith.index_cast %1401 : i32 to index
    %1403 = memref.load %arg3[%1402] : memref<24xf32, #tpu.memory_space<smem>>
    %c3_i32_334 = arith.constant 3 : i32
    %1404 = arith.addi %1394, %c3_i32_334 : i32
    %1405 = arith.index_cast %1404 : i32 to index
    %1406 = memref.load %arg3[%1405] : memref<24xf32, #tpu.memory_space<smem>>
    %1407 = vector.broadcast %1397 : f32 to vector<1x128xf32>
    %1408 = arith.maximumf %1377, %1407 : vector<1x128xf32>
    %1409 = vector.broadcast %1400 : f32 to vector<1x128xf32>
    %1410 = arith.maximumf %1379, %1409 : vector<1x128xf32>
    %1411 = vector.broadcast %1403 : f32 to vector<1x128xf32>
    %1412 = arith.minimumf %1381, %1411 : vector<1x128xf32>
    %1413 = vector.broadcast %1406 : f32 to vector<1x128xf32>
    %1414 = arith.minimumf %1383, %1413 : vector<1x128xf32>
    %1415 = arith.subf %1412, %1408 : vector<1x128xf32>
    %cst_335 = arith.constant 0.000000e+00 : f32
    %1416 = vector.broadcast %cst_335 : f32 to vector<1x128xf32>
    %1417 = arith.maximumf %1415, %1416 : vector<1x128xf32>
    %1418 = arith.subf %1414, %1410 : vector<1x128xf32>
    %cst_336 = arith.constant 0.000000e+00 : f32
    %1419 = vector.broadcast %cst_336 : f32 to vector<1x128xf32>
    %1420 = arith.maximumf %1418, %1419 : vector<1x128xf32>
    %1421 = arith.mulf %1417, %1420 : vector<1x128xf32>
    %1422 = arith.subf %1403, %1397 : f32
    %1423 = arith.subf %1406, %1400 : f32
    %1424 = arith.mulf %1422, %1423 : f32
    %1425 = vector.broadcast %1424 : f32 to vector<1x128xf32>
    %1426 = arith.addf %1386, %1425 : vector<1x128xf32>
    %1427 = arith.subf %1426, %1421 : vector<1x128xf32>
    %cst_337 = arith.constant 9.99999997E-7 : f32
    %1428 = vector.broadcast %cst_337 : f32 to vector<1x128xf32>
    %1429 = arith.addf %1427, %1428 : vector<1x128xf32>
    %1430 = arith.divf %1421, %1429 : vector<1x128xf32>
    %1431 = arith.cmpf ogt, %1430, %1387 : vector<1x128xf32>
    %1432 = arith.select %1431, %1430, %1387 : vector<1x128xi1>, vector<1x128xf32>
    %1433 = vector.broadcast %1397 : f32 to vector<1x128xf32>
    %1434 = arith.select %1431, %1433, %1388 : vector<1x128xi1>, vector<1x128xf32>
    %1435 = vector.broadcast %1400 : f32 to vector<1x128xf32>
    %1436 = arith.select %1431, %1435, %1389 : vector<1x128xi1>, vector<1x128xf32>
    %1437 = vector.broadcast %1403 : f32 to vector<1x128xf32>
    %1438 = arith.select %1431, %1437, %1390 : vector<1x128xi1>, vector<1x128xf32>
    %1439 = vector.broadcast %1406 : f32 to vector<1x128xf32>
    %1440 = arith.select %1431, %1439, %1391 : vector<1x128xi1>, vector<1x128xf32>
    %c3_i32_338 = arith.constant 3 : i32
    %1441 = arith.muli %arg0, %c3_i32_338 : i32
    %c1_i32_339 = arith.constant 1 : i32
    %1442 = arith.addi %1441, %c1_i32_339 : i32
    %c4_i32_340 = arith.constant 4 : i32
    %1443 = arith.muli %1442, %c4_i32_340 : i32
    %c0_i32_341 = arith.constant 0 : i32
    %1444 = arith.addi %1443, %c0_i32_341 : i32
    %1445 = arith.index_cast %1444 : i32 to index
    %1446 = memref.load %arg3[%1445] : memref<24xf32, #tpu.memory_space<smem>>
    %c1_i32_342 = arith.constant 1 : i32
    %1447 = arith.addi %1443, %c1_i32_342 : i32
    %1448 = arith.index_cast %1447 : i32 to index
    %1449 = memref.load %arg3[%1448] : memref<24xf32, #tpu.memory_space<smem>>
    %c2_i32_343 = arith.constant 2 : i32
    %1450 = arith.addi %1443, %c2_i32_343 : i32
    %1451 = arith.index_cast %1450 : i32 to index
    %1452 = memref.load %arg3[%1451] : memref<24xf32, #tpu.memory_space<smem>>
    %c3_i32_344 = arith.constant 3 : i32
    %1453 = arith.addi %1443, %c3_i32_344 : i32
    %1454 = arith.index_cast %1453 : i32 to index
    %1455 = memref.load %arg3[%1454] : memref<24xf32, #tpu.memory_space<smem>>
    %1456 = vector.broadcast %1446 : f32 to vector<1x128xf32>
    %1457 = arith.maximumf %1377, %1456 : vector<1x128xf32>
    %1458 = vector.broadcast %1449 : f32 to vector<1x128xf32>
    %1459 = arith.maximumf %1379, %1458 : vector<1x128xf32>
    %1460 = vector.broadcast %1452 : f32 to vector<1x128xf32>
    %1461 = arith.minimumf %1381, %1460 : vector<1x128xf32>
    %1462 = vector.broadcast %1455 : f32 to vector<1x128xf32>
    %1463 = arith.minimumf %1383, %1462 : vector<1x128xf32>
    %1464 = arith.subf %1461, %1457 : vector<1x128xf32>
    %cst_345 = arith.constant 0.000000e+00 : f32
    %1465 = vector.broadcast %cst_345 : f32 to vector<1x128xf32>
    %1466 = arith.maximumf %1464, %1465 : vector<1x128xf32>
    %1467 = arith.subf %1463, %1459 : vector<1x128xf32>
    %cst_346 = arith.constant 0.000000e+00 : f32
    %1468 = vector.broadcast %cst_346 : f32 to vector<1x128xf32>
    %1469 = arith.maximumf %1467, %1468 : vector<1x128xf32>
    %1470 = arith.mulf %1466, %1469 : vector<1x128xf32>
    %1471 = arith.subf %1452, %1446 : f32
    %1472 = arith.subf %1455, %1449 : f32
    %1473 = arith.mulf %1471, %1472 : f32
    %1474 = vector.broadcast %1473 : f32 to vector<1x128xf32>
    %1475 = arith.addf %1386, %1474 : vector<1x128xf32>
    %1476 = arith.subf %1475, %1470 : vector<1x128xf32>
    %cst_347 = arith.constant 9.99999997E-7 : f32
    %1477 = vector.broadcast %cst_347 : f32 to vector<1x128xf32>
    %1478 = arith.addf %1476, %1477 : vector<1x128xf32>
    %1479 = arith.divf %1470, %1478 : vector<1x128xf32>
    %1480 = arith.cmpf ogt, %1479, %1432 : vector<1x128xf32>
    %1481 = arith.select %1480, %1479, %1432 : vector<1x128xi1>, vector<1x128xf32>
    %1482 = vector.broadcast %1446 : f32 to vector<1x128xf32>
    %1483 = arith.select %1480, %1482, %1434 : vector<1x128xi1>, vector<1x128xf32>
    %1484 = vector.broadcast %1449 : f32 to vector<1x128xf32>
    %1485 = arith.select %1480, %1484, %1436 : vector<1x128xi1>, vector<1x128xf32>
    %1486 = vector.broadcast %1452 : f32 to vector<1x128xf32>
    %1487 = arith.select %1480, %1486, %1438 : vector<1x128xi1>, vector<1x128xf32>
    %1488 = vector.broadcast %1455 : f32 to vector<1x128xf32>
    %1489 = arith.select %1480, %1488, %1440 : vector<1x128xi1>, vector<1x128xf32>
    %c3_i32_348 = arith.constant 3 : i32
    %1490 = arith.muli %arg0, %c3_i32_348 : i32
    %c2_i32_349 = arith.constant 2 : i32
    %1491 = arith.addi %1490, %c2_i32_349 : i32
    %c4_i32_350 = arith.constant 4 : i32
    %1492 = arith.muli %1491, %c4_i32_350 : i32
    %c0_i32_351 = arith.constant 0 : i32
    %1493 = arith.addi %1492, %c0_i32_351 : i32
    %1494 = arith.index_cast %1493 : i32 to index
    %1495 = memref.load %arg3[%1494] : memref<24xf32, #tpu.memory_space<smem>>
    %c1_i32_352 = arith.constant 1 : i32
    %1496 = arith.addi %1492, %c1_i32_352 : i32
    %1497 = arith.index_cast %1496 : i32 to index
    %1498 = memref.load %arg3[%1497] : memref<24xf32, #tpu.memory_space<smem>>
    %c2_i32_353 = arith.constant 2 : i32
    %1499 = arith.addi %1492, %c2_i32_353 : i32
    %1500 = arith.index_cast %1499 : i32 to index
    %1501 = memref.load %arg3[%1500] : memref<24xf32, #tpu.memory_space<smem>>
    %c3_i32_354 = arith.constant 3 : i32
    %1502 = arith.addi %1492, %c3_i32_354 : i32
    %1503 = arith.index_cast %1502 : i32 to index
    %1504 = memref.load %arg3[%1503] : memref<24xf32, #tpu.memory_space<smem>>
    %1505 = vector.broadcast %1495 : f32 to vector<1x128xf32>
    %1506 = arith.maximumf %1377, %1505 : vector<1x128xf32>
    %1507 = vector.broadcast %1498 : f32 to vector<1x128xf32>
    %1508 = arith.maximumf %1379, %1507 : vector<1x128xf32>
    %1509 = vector.broadcast %1501 : f32 to vector<1x128xf32>
    %1510 = arith.minimumf %1381, %1509 : vector<1x128xf32>
    %1511 = vector.broadcast %1504 : f32 to vector<1x128xf32>
    %1512 = arith.minimumf %1383, %1511 : vector<1x128xf32>
    %1513 = arith.subf %1510, %1506 : vector<1x128xf32>
    %cst_355 = arith.constant 0.000000e+00 : f32
    %1514 = vector.broadcast %cst_355 : f32 to vector<1x128xf32>
    %1515 = arith.maximumf %1513, %1514 : vector<1x128xf32>
    %1516 = arith.subf %1512, %1508 : vector<1x128xf32>
    %cst_356 = arith.constant 0.000000e+00 : f32
    %1517 = vector.broadcast %cst_356 : f32 to vector<1x128xf32>
    %1518 = arith.maximumf %1516, %1517 : vector<1x128xf32>
    %1519 = arith.mulf %1515, %1518 : vector<1x128xf32>
    %1520 = arith.subf %1501, %1495 : f32
    %1521 = arith.subf %1504, %1498 : f32
    %1522 = arith.mulf %1520, %1521 : f32
    %1523 = vector.broadcast %1522 : f32 to vector<1x128xf32>
    %1524 = arith.addf %1386, %1523 : vector<1x128xf32>
    %1525 = arith.subf %1524, %1519 : vector<1x128xf32>
    %cst_357 = arith.constant 9.99999997E-7 : f32
    %1526 = vector.broadcast %cst_357 : f32 to vector<1x128xf32>
    %1527 = arith.addf %1525, %1526 : vector<1x128xf32>
    %1528 = arith.divf %1519, %1527 : vector<1x128xf32>
    %1529 = arith.cmpf ogt, %1528, %1481 : vector<1x128xf32>
    %1530 = arith.select %1529, %1528, %1481 : vector<1x128xi1>, vector<1x128xf32>
    %1531 = vector.broadcast %1495 : f32 to vector<1x128xf32>
    %1532 = arith.select %1529, %1531, %1483 : vector<1x128xi1>, vector<1x128xf32>
    %1533 = vector.broadcast %1498 : f32 to vector<1x128xf32>
    %1534 = arith.select %1529, %1533, %1485 : vector<1x128xi1>, vector<1x128xf32>
    %1535 = vector.broadcast %1501 : f32 to vector<1x128xf32>
    %1536 = arith.select %1529, %1535, %1487 : vector<1x128xi1>, vector<1x128xf32>
    %1537 = vector.broadcast %1504 : f32 to vector<1x128xf32>
    %1538 = arith.select %1529, %1537, %1489 : vector<1x128xi1>, vector<1x128xf32>
    %cst_358 = arith.constant 5.000000e-01 : f32
    %1539 = vector.broadcast %cst_358 : f32 to vector<1x128xf32>
    %1540 = arith.cmpf ogt, %1530, %1539 : vector<1x128xf32>
    %1541 = arith.extui %1540 : vector<1x128xi1> to vector<1x128xi32>
    %1542 = arith.sitofp %1541 : vector<1x128xi32> to vector<1x128xf32>
    %1543 = arith.subf %1377, %1532 : vector<1x128xf32>
    %1544 = math.absf %1543 : vector<1x128xf32>
    %cst_359 = arith.constant 1.000000e+00 : f32
    %1545 = vector.broadcast %cst_359 : f32 to vector<1x128xf32>
    %1546 = arith.cmpf olt, %1544, %1545 : vector<1x128xf32>
    %cst_360 = arith.constant 5.000000e-01 : f32
    %1547 = vector.broadcast %cst_360 : f32 to vector<1x128xf32>
    %1548 = arith.mulf %1547, %1543 : vector<1x128xf32>
    %1549 = arith.mulf %1548, %1543 : vector<1x128xf32>
    %cst_361 = arith.constant 1.000000e+00 : f32
    %1550 = vector.broadcast %cst_361 : f32 to vector<1x128xf32>
    %1551 = arith.divf %1549, %1550 : vector<1x128xf32>
    %cst_362 = arith.constant 5.000000e-01 : f32
    %1552 = vector.broadcast %cst_362 : f32 to vector<1x128xf32>
    %1553 = arith.subf %1544, %1552 : vector<1x128xf32>
    %1554 = arith.select %1546, %1551, %1553 : vector<1x128xi1>, vector<1x128xf32>
    %1555 = arith.subf %1379, %1534 : vector<1x128xf32>
    %1556 = math.absf %1555 : vector<1x128xf32>
    %cst_363 = arith.constant 1.000000e+00 : f32
    %1557 = vector.broadcast %cst_363 : f32 to vector<1x128xf32>
    %1558 = arith.cmpf olt, %1556, %1557 : vector<1x128xf32>
    %cst_364 = arith.constant 5.000000e-01 : f32
    %1559 = vector.broadcast %cst_364 : f32 to vector<1x128xf32>
    %1560 = arith.mulf %1559, %1555 : vector<1x128xf32>
    %1561 = arith.mulf %1560, %1555 : vector<1x128xf32>
    %cst_365 = arith.constant 1.000000e+00 : f32
    %1562 = vector.broadcast %cst_365 : f32 to vector<1x128xf32>
    %1563 = arith.divf %1561, %1562 : vector<1x128xf32>
    %cst_366 = arith.constant 5.000000e-01 : f32
    %1564 = vector.broadcast %cst_366 : f32 to vector<1x128xf32>
    %1565 = arith.subf %1556, %1564 : vector<1x128xf32>
    %1566 = arith.select %1558, %1563, %1565 : vector<1x128xi1>, vector<1x128xf32>
    %1567 = arith.addf %1554, %1566 : vector<1x128xf32>
    %1568 = arith.subf %1381, %1536 : vector<1x128xf32>
    %1569 = math.absf %1568 : vector<1x128xf32>
    %cst_367 = arith.constant 1.000000e+00 : f32
    %1570 = vector.broadcast %cst_367 : f32 to vector<1x128xf32>
    %1571 = arith.cmpf olt, %1569, %1570 : vector<1x128xf32>
    %cst_368 = arith.constant 5.000000e-01 : f32
    %1572 = vector.broadcast %cst_368 : f32 to vector<1x128xf32>
    %1573 = arith.mulf %1572, %1568 : vector<1x128xf32>
    %1574 = arith.mulf %1573, %1568 : vector<1x128xf32>
    %cst_369 = arith.constant 1.000000e+00 : f32
    %1575 = vector.broadcast %cst_369 : f32 to vector<1x128xf32>
    %1576 = arith.divf %1574, %1575 : vector<1x128xf32>
    %cst_370 = arith.constant 5.000000e-01 : f32
    %1577 = vector.broadcast %cst_370 : f32 to vector<1x128xf32>
    %1578 = arith.subf %1569, %1577 : vector<1x128xf32>
    %1579 = arith.select %1571, %1576, %1578 : vector<1x128xi1>, vector<1x128xf32>
    %1580 = arith.addf %1567, %1579 : vector<1x128xf32>
    %1581 = arith.subf %1383, %1538 : vector<1x128xf32>
    %1582 = math.absf %1581 : vector<1x128xf32>
    %cst_371 = arith.constant 1.000000e+00 : f32
    %1583 = vector.broadcast %cst_371 : f32 to vector<1x128xf32>
    %1584 = arith.cmpf olt, %1582, %1583 : vector<1x128xf32>
    %cst_372 = arith.constant 5.000000e-01 : f32
    %1585 = vector.broadcast %cst_372 : f32 to vector<1x128xf32>
    %1586 = arith.mulf %1585, %1581 : vector<1x128xf32>
    %1587 = arith.mulf %1586, %1581 : vector<1x128xf32>
    %cst_373 = arith.constant 1.000000e+00 : f32
    %1588 = vector.broadcast %cst_373 : f32 to vector<1x128xf32>
    %1589 = arith.divf %1587, %1588 : vector<1x128xf32>
    %cst_374 = arith.constant 5.000000e-01 : f32
    %1590 = vector.broadcast %cst_374 : f32 to vector<1x128xf32>
    %1591 = arith.subf %1582, %1590 : vector<1x128xf32>
    %1592 = arith.select %1584, %1589, %1591 : vector<1x128xi1>, vector<1x128xf32>
    %1593 = arith.addf %1580, %1592 : vector<1x128xf32>
    %1594 = arith.mulf %1593, %1542 : vector<1x128xf32>
    %1595 = vector.shape_cast %1594 : vector<1x128xf32> to vector<1x1x128xf32>
    %cst_375 = arith.constant dense<0.000000e+00> : vector<1xf32>
    %1596 = vector.multi_reduction <add>, %1595, %cst_375 [1, 2] : vector<1x1x128xf32> to vector<1xf32>
    %1597 = vector.shape_cast %1596 : vector<1xf32> to vector<1x1x1xf32>
    %1598 = vector.extract %1597[0, 0, 0] : f32 from vector<1x1x1xf32>
    %1599 = arith.addf %1370, %1598 : f32
    %1600 = vector.shape_cast %1542 : vector<1x128xf32> to vector<1x1x128xf32>
    %cst_376 = arith.constant dense<0.000000e+00> : vector<1xf32>
    %1601 = vector.multi_reduction <add>, %1600, %cst_376 [1, 2] : vector<1x1x128xf32> to vector<1xf32>
    %1602 = vector.shape_cast %1601 : vector<1xf32> to vector<1x1x1xf32>
    %1603 = vector.extract %1602[0, 0, 0] : f32 from vector<1x1x1xf32>
    %1604 = arith.addf %1375, %1603 : f32
    %1605 = vector.extract_strided_slice %1 {offsets = [28, 0, 0], sizes = [1, 1, 128], strides = [1, 1, 1]} : vector<36x1x128xf32> to vector<1x1x128xf32>
    %1606 = vector.shape_cast %1605 : vector<1x1x128xf32> to vector<1x128xf32>
    %1607 = vector.extract_strided_slice %1 {offsets = [29, 0, 0], sizes = [1, 1, 128], strides = [1, 1, 1]} : vector<36x1x128xf32> to vector<1x1x128xf32>
    %1608 = vector.shape_cast %1607 : vector<1x1x128xf32> to vector<1x128xf32>
    %1609 = vector.extract_strided_slice %1 {offsets = [30, 0, 0], sizes = [1, 1, 128], strides = [1, 1, 1]} : vector<36x1x128xf32> to vector<1x1x128xf32>
    %1610 = vector.shape_cast %1609 : vector<1x1x128xf32> to vector<1x128xf32>
    %1611 = vector.extract_strided_slice %1 {offsets = [31, 0, 0], sizes = [1, 1, 128], strides = [1, 1, 1]} : vector<36x1x128xf32> to vector<1x1x128xf32>
    %1612 = vector.shape_cast %1611 : vector<1x1x128xf32> to vector<1x128xf32>
    %1613 = arith.subf %1610, %1606 : vector<1x128xf32>
    %1614 = arith.subf %1612, %1608 : vector<1x128xf32>
    %1615 = arith.mulf %1613, %1614 : vector<1x128xf32>
    %cst_377 = arith.constant -1.000000e+00 : f32
    %1616 = vector.broadcast %cst_377 : f32 to vector<1x128xf32>
    %cst_378 = arith.constant 0.000000e+00 : f32
    %1617 = vector.broadcast %cst_378 : f32 to vector<1x128xf32>
    %cst_379 = arith.constant 0.000000e+00 : f32
    %1618 = vector.broadcast %cst_379 : f32 to vector<1x128xf32>
    %cst_380 = arith.constant 0.000000e+00 : f32
    %1619 = vector.broadcast %cst_380 : f32 to vector<1x128xf32>
    %cst_381 = arith.constant 0.000000e+00 : f32
    %1620 = vector.broadcast %cst_381 : f32 to vector<1x128xf32>
    %c3_i32_382 = arith.constant 3 : i32
    %1621 = arith.muli %arg0, %c3_i32_382 : i32
    %c0_i32_383 = arith.constant 0 : i32
    %1622 = arith.addi %1621, %c0_i32_383 : i32
    %c4_i32_384 = arith.constant 4 : i32
    %1623 = arith.muli %1622, %c4_i32_384 : i32
    %c0_i32_385 = arith.constant 0 : i32
    %1624 = arith.addi %1623, %c0_i32_385 : i32
    %1625 = arith.index_cast %1624 : i32 to index
    %1626 = memref.load %arg3[%1625] : memref<24xf32, #tpu.memory_space<smem>>
    %c1_i32_386 = arith.constant 1 : i32
    %1627 = arith.addi %1623, %c1_i32_386 : i32
    %1628 = arith.index_cast %1627 : i32 to index
    %1629 = memref.load %arg3[%1628] : memref<24xf32, #tpu.memory_space<smem>>
    %c2_i32_387 = arith.constant 2 : i32
    %1630 = arith.addi %1623, %c2_i32_387 : i32
    %1631 = arith.index_cast %1630 : i32 to index
    %1632 = memref.load %arg3[%1631] : memref<24xf32, #tpu.memory_space<smem>>
    %c3_i32_388 = arith.constant 3 : i32
    %1633 = arith.addi %1623, %c3_i32_388 : i32
    %1634 = arith.index_cast %1633 : i32 to index
    %1635 = memref.load %arg3[%1634] : memref<24xf32, #tpu.memory_space<smem>>
    %1636 = vector.broadcast %1626 : f32 to vector<1x128xf32>
    %1637 = arith.maximumf %1606, %1636 : vector<1x128xf32>
    %1638 = vector.broadcast %1629 : f32 to vector<1x128xf32>
    %1639 = arith.maximumf %1608, %1638 : vector<1x128xf32>
    %1640 = vector.broadcast %1632 : f32 to vector<1x128xf32>
    %1641 = arith.minimumf %1610, %1640 : vector<1x128xf32>
    %1642 = vector.broadcast %1635 : f32 to vector<1x128xf32>
    %1643 = arith.minimumf %1612, %1642 : vector<1x128xf32>
    %1644 = arith.subf %1641, %1637 : vector<1x128xf32>
    %cst_389 = arith.constant 0.000000e+00 : f32
    %1645 = vector.broadcast %cst_389 : f32 to vector<1x128xf32>
    %1646 = arith.maximumf %1644, %1645 : vector<1x128xf32>
    %1647 = arith.subf %1643, %1639 : vector<1x128xf32>
    %cst_390 = arith.constant 0.000000e+00 : f32
    %1648 = vector.broadcast %cst_390 : f32 to vector<1x128xf32>
    %1649 = arith.maximumf %1647, %1648 : vector<1x128xf32>
    %1650 = arith.mulf %1646, %1649 : vector<1x128xf32>
    %1651 = arith.subf %1632, %1626 : f32
    %1652 = arith.subf %1635, %1629 : f32
    %1653 = arith.mulf %1651, %1652 : f32
    %1654 = vector.broadcast %1653 : f32 to vector<1x128xf32>
    %1655 = arith.addf %1615, %1654 : vector<1x128xf32>
    %1656 = arith.subf %1655, %1650 : vector<1x128xf32>
    %cst_391 = arith.constant 9.99999997E-7 : f32
    %1657 = vector.broadcast %cst_391 : f32 to vector<1x128xf32>
    %1658 = arith.addf %1656, %1657 : vector<1x128xf32>
    %1659 = arith.divf %1650, %1658 : vector<1x128xf32>
    %1660 = arith.cmpf ogt, %1659, %1616 : vector<1x128xf32>
    %1661 = arith.select %1660, %1659, %1616 : vector<1x128xi1>, vector<1x128xf32>
    %1662 = vector.broadcast %1626 : f32 to vector<1x128xf32>
    %1663 = arith.select %1660, %1662, %1617 : vector<1x128xi1>, vector<1x128xf32>
    %1664 = vector.broadcast %1629 : f32 to vector<1x128xf32>
    %1665 = arith.select %1660, %1664, %1618 : vector<1x128xi1>, vector<1x128xf32>
    %1666 = vector.broadcast %1632 : f32 to vector<1x128xf32>
    %1667 = arith.select %1660, %1666, %1619 : vector<1x128xi1>, vector<1x128xf32>
    %1668 = vector.broadcast %1635 : f32 to vector<1x128xf32>
    %1669 = arith.select %1660, %1668, %1620 : vector<1x128xi1>, vector<1x128xf32>
    %c3_i32_392 = arith.constant 3 : i32
    %1670 = arith.muli %arg0, %c3_i32_392 : i32
    %c1_i32_393 = arith.constant 1 : i32
    %1671 = arith.addi %1670, %c1_i32_393 : i32
    %c4_i32_394 = arith.constant 4 : i32
    %1672 = arith.muli %1671, %c4_i32_394 : i32
    %c0_i32_395 = arith.constant 0 : i32
    %1673 = arith.addi %1672, %c0_i32_395 : i32
    %1674 = arith.index_cast %1673 : i32 to index
    %1675 = memref.load %arg3[%1674] : memref<24xf32, #tpu.memory_space<smem>>
    %c1_i32_396 = arith.constant 1 : i32
    %1676 = arith.addi %1672, %c1_i32_396 : i32
    %1677 = arith.index_cast %1676 : i32 to index
    %1678 = memref.load %arg3[%1677] : memref<24xf32, #tpu.memory_space<smem>>
    %c2_i32_397 = arith.constant 2 : i32
    %1679 = arith.addi %1672, %c2_i32_397 : i32
    %1680 = arith.index_cast %1679 : i32 to index
    %1681 = memref.load %arg3[%1680] : memref<24xf32, #tpu.memory_space<smem>>
    %c3_i32_398 = arith.constant 3 : i32
    %1682 = arith.addi %1672, %c3_i32_398 : i32
    %1683 = arith.index_cast %1682 : i32 to index
    %1684 = memref.load %arg3[%1683] : memref<24xf32, #tpu.memory_space<smem>>
    %1685 = vector.broadcast %1675 : f32 to vector<1x128xf32>
    %1686 = arith.maximumf %1606, %1685 : vector<1x128xf32>
    %1687 = vector.broadcast %1678 : f32 to vector<1x128xf32>
    %1688 = arith.maximumf %1608, %1687 : vector<1x128xf32>
    %1689 = vector.broadcast %1681 : f32 to vector<1x128xf32>
    %1690 = arith.minimumf %1610, %1689 : vector<1x128xf32>
    %1691 = vector.broadcast %1684 : f32 to vector<1x128xf32>
    %1692 = arith.minimumf %1612, %1691 : vector<1x128xf32>
    %1693 = arith.subf %1690, %1686 : vector<1x128xf32>
    %cst_399 = arith.constant 0.000000e+00 : f32
    %1694 = vector.broadcast %cst_399 : f32 to vector<1x128xf32>
    %1695 = arith.maximumf %1693, %1694 : vector<1x128xf32>
    %1696 = arith.subf %1692, %1688 : vector<1x128xf32>
    %cst_400 = arith.constant 0.000000e+00 : f32
    %1697 = vector.broadcast %cst_400 : f32 to vector<1x128xf32>
    %1698 = arith.maximumf %1696, %1697 : vector<1x128xf32>
    %1699 = arith.mulf %1695, %1698 : vector<1x128xf32>
    %1700 = arith.subf %1681, %1675 : f32
    %1701 = arith.subf %1684, %1678 : f32
    %1702 = arith.mulf %1700, %1701 : f32
    %1703 = vector.broadcast %1702 : f32 to vector<1x128xf32>
    %1704 = arith.addf %1615, %1703 : vector<1x128xf32>
    %1705 = arith.subf %1704, %1699 : vector<1x128xf32>
    %cst_401 = arith.constant 9.99999997E-7 : f32
    %1706 = vector.broadcast %cst_401 : f32 to vector<1x128xf32>
    %1707 = arith.addf %1705, %1706 : vector<1x128xf32>
    %1708 = arith.divf %1699, %1707 : vector<1x128xf32>
    %1709 = arith.cmpf ogt, %1708, %1661 : vector<1x128xf32>
    %1710 = arith.select %1709, %1708, %1661 : vector<1x128xi1>, vector<1x128xf32>
    %1711 = vector.broadcast %1675 : f32 to vector<1x128xf32>
    %1712 = arith.select %1709, %1711, %1663 : vector<1x128xi1>, vector<1x128xf32>
    %1713 = vector.broadcast %1678 : f32 to vector<1x128xf32>
    %1714 = arith.select %1709, %1713, %1665 : vector<1x128xi1>, vector<1x128xf32>
    %1715 = vector.broadcast %1681 : f32 to vector<1x128xf32>
    %1716 = arith.select %1709, %1715, %1667 : vector<1x128xi1>, vector<1x128xf32>
    %1717 = vector.broadcast %1684 : f32 to vector<1x128xf32>
    %1718 = arith.select %1709, %1717, %1669 : vector<1x128xi1>, vector<1x128xf32>
    %c3_i32_402 = arith.constant 3 : i32
    %1719 = arith.muli %arg0, %c3_i32_402 : i32
    %c2_i32_403 = arith.constant 2 : i32
    %1720 = arith.addi %1719, %c2_i32_403 : i32
    %c4_i32_404 = arith.constant 4 : i32
    %1721 = arith.muli %1720, %c4_i32_404 : i32
    %c0_i32_405 = arith.constant 0 : i32
    %1722 = arith.addi %1721, %c0_i32_405 : i32
    %1723 = arith.index_cast %1722 : i32 to index
    %1724 = memref.load %arg3[%1723] : memref<24xf32, #tpu.memory_space<smem>>
    %c1_i32_406 = arith.constant 1 : i32
    %1725 = arith.addi %1721, %c1_i32_406 : i32
    %1726 = arith.index_cast %1725 : i32 to index
    %1727 = memref.load %arg3[%1726] : memref<24xf32, #tpu.memory_space<smem>>
    %c2_i32_407 = arith.constant 2 : i32
    %1728 = arith.addi %1721, %c2_i32_407 : i32
    %1729 = arith.index_cast %1728 : i32 to index
    %1730 = memref.load %arg3[%1729] : memref<24xf32, #tpu.memory_space<smem>>
    %c3_i32_408 = arith.constant 3 : i32
    %1731 = arith.addi %1721, %c3_i32_408 : i32
    %1732 = arith.index_cast %1731 : i32 to index
    %1733 = memref.load %arg3[%1732] : memref<24xf32, #tpu.memory_space<smem>>
    %1734 = vector.broadcast %1724 : f32 to vector<1x128xf32>
    %1735 = arith.maximumf %1606, %1734 : vector<1x128xf32>
    %1736 = vector.broadcast %1727 : f32 to vector<1x128xf32>
    %1737 = arith.maximumf %1608, %1736 : vector<1x128xf32>
    %1738 = vector.broadcast %1730 : f32 to vector<1x128xf32>
    %1739 = arith.minimumf %1610, %1738 : vector<1x128xf32>
    %1740 = vector.broadcast %1733 : f32 to vector<1x128xf32>
    %1741 = arith.minimumf %1612, %1740 : vector<1x128xf32>
    %1742 = arith.subf %1739, %1735 : vector<1x128xf32>
    %cst_409 = arith.constant 0.000000e+00 : f32
    %1743 = vector.broadcast %cst_409 : f32 to vector<1x128xf32>
    %1744 = arith.maximumf %1742, %1743 : vector<1x128xf32>
    %1745 = arith.subf %1741, %1737 : vector<1x128xf32>
    %cst_410 = arith.constant 0.000000e+00 : f32
    %1746 = vector.broadcast %cst_410 : f32 to vector<1x128xf32>
    %1747 = arith.maximumf %1745, %1746 : vector<1x128xf32>
    %1748 = arith.mulf %1744, %1747 : vector<1x128xf32>
    %1749 = arith.subf %1730, %1724 : f32
    %1750 = arith.subf %1733, %1727 : f32
    %1751 = arith.mulf %1749, %1750 : f32
    %1752 = vector.broadcast %1751 : f32 to vector<1x128xf32>
    %1753 = arith.addf %1615, %1752 : vector<1x128xf32>
    %1754 = arith.subf %1753, %1748 : vector<1x128xf32>
    %cst_411 = arith.constant 9.99999997E-7 : f32
    %1755 = vector.broadcast %cst_411 : f32 to vector<1x128xf32>
    %1756 = arith.addf %1754, %1755 : vector<1x128xf32>
    %1757 = arith.divf %1748, %1756 : vector<1x128xf32>
    %1758 = arith.cmpf ogt, %1757, %1710 : vector<1x128xf32>
    %1759 = arith.select %1758, %1757, %1710 : vector<1x128xi1>, vector<1x128xf32>
    %1760 = vector.broadcast %1724 : f32 to vector<1x128xf32>
    %1761 = arith.select %1758, %1760, %1712 : vector<1x128xi1>, vector<1x128xf32>
    %1762 = vector.broadcast %1727 : f32 to vector<1x128xf32>
    %1763 = arith.select %1758, %1762, %1714 : vector<1x128xi1>, vector<1x128xf32>
    %1764 = vector.broadcast %1730 : f32 to vector<1x128xf32>
    %1765 = arith.select %1758, %1764, %1716 : vector<1x128xi1>, vector<1x128xf32>
    %1766 = vector.broadcast %1733 : f32 to vector<1x128xf32>
    %1767 = arith.select %1758, %1766, %1718 : vector<1x128xi1>, vector<1x128xf32>
    %cst_412 = arith.constant 5.000000e-01 : f32
    %1768 = vector.broadcast %cst_412 : f32 to vector<1x128xf32>
    %1769 = arith.cmpf ogt, %1759, %1768 : vector<1x128xf32>
    %1770 = arith.extui %1769 : vector<1x128xi1> to vector<1x128xi32>
    %1771 = arith.sitofp %1770 : vector<1x128xi32> to vector<1x128xf32>
    %1772 = arith.subf %1606, %1761 : vector<1x128xf32>
    %1773 = math.absf %1772 : vector<1x128xf32>
    %cst_413 = arith.constant 1.000000e+00 : f32
    %1774 = vector.broadcast %cst_413 : f32 to vector<1x128xf32>
    %1775 = arith.cmpf olt, %1773, %1774 : vector<1x128xf32>
    %cst_414 = arith.constant 5.000000e-01 : f32
    %1776 = vector.broadcast %cst_414 : f32 to vector<1x128xf32>
    %1777 = arith.mulf %1776, %1772 : vector<1x128xf32>
    %1778 = arith.mulf %1777, %1772 : vector<1x128xf32>
    %cst_415 = arith.constant 1.000000e+00 : f32
    %1779 = vector.broadcast %cst_415 : f32 to vector<1x128xf32>
    %1780 = arith.divf %1778, %1779 : vector<1x128xf32>
    %cst_416 = arith.constant 5.000000e-01 : f32
    %1781 = vector.broadcast %cst_416 : f32 to vector<1x128xf32>
    %1782 = arith.subf %1773, %1781 : vector<1x128xf32>
    %1783 = arith.select %1775, %1780, %1782 : vector<1x128xi1>, vector<1x128xf32>
    %1784 = arith.subf %1608, %1763 : vector<1x128xf32>
    %1785 = math.absf %1784 : vector<1x128xf32>
    %cst_417 = arith.constant 1.000000e+00 : f32
    %1786 = vector.broadcast %cst_417 : f32 to vector<1x128xf32>
    %1787 = arith.cmpf olt, %1785, %1786 : vector<1x128xf32>
    %cst_418 = arith.constant 5.000000e-01 : f32
    %1788 = vector.broadcast %cst_418 : f32 to vector<1x128xf32>
    %1789 = arith.mulf %1788, %1784 : vector<1x128xf32>
    %1790 = arith.mulf %1789, %1784 : vector<1x128xf32>
    %cst_419 = arith.constant 1.000000e+00 : f32
    %1791 = vector.broadcast %cst_419 : f32 to vector<1x128xf32>
    %1792 = arith.divf %1790, %1791 : vector<1x128xf32>
    %cst_420 = arith.constant 5.000000e-01 : f32
    %1793 = vector.broadcast %cst_420 : f32 to vector<1x128xf32>
    %1794 = arith.subf %1785, %1793 : vector<1x128xf32>
    %1795 = arith.select %1787, %1792, %1794 : vector<1x128xi1>, vector<1x128xf32>
    %1796 = arith.addf %1783, %1795 : vector<1x128xf32>
    %1797 = arith.subf %1610, %1765 : vector<1x128xf32>
    %1798 = math.absf %1797 : vector<1x128xf32>
    %cst_421 = arith.constant 1.000000e+00 : f32
    %1799 = vector.broadcast %cst_421 : f32 to vector<1x128xf32>
    %1800 = arith.cmpf olt, %1798, %1799 : vector<1x128xf32>
    %cst_422 = arith.constant 5.000000e-01 : f32
    %1801 = vector.broadcast %cst_422 : f32 to vector<1x128xf32>
    %1802 = arith.mulf %1801, %1797 : vector<1x128xf32>
    %1803 = arith.mulf %1802, %1797 : vector<1x128xf32>
    %cst_423 = arith.constant 1.000000e+00 : f32
    %1804 = vector.broadcast %cst_423 : f32 to vector<1x128xf32>
    %1805 = arith.divf %1803, %1804 : vector<1x128xf32>
    %cst_424 = arith.constant 5.000000e-01 : f32
    %1806 = vector.broadcast %cst_424 : f32 to vector<1x128xf32>
    %1807 = arith.subf %1798, %1806 : vector<1x128xf32>
    %1808 = arith.select %1800, %1805, %1807 : vector<1x128xi1>, vector<1x128xf32>
    %1809 = arith.addf %1796, %1808 : vector<1x128xf32>
    %1810 = arith.subf %1612, %1767 : vector<1x128xf32>
    %1811 = math.absf %1810 : vector<1x128xf32>
    %cst_425 = arith.constant 1.000000e+00 : f32
    %1812 = vector.broadcast %cst_425 : f32 to vector<1x128xf32>
    %1813 = arith.cmpf olt, %1811, %1812 : vector<1x128xf32>
    %cst_426 = arith.constant 5.000000e-01 : f32
    %1814 = vector.broadcast %cst_426 : f32 to vector<1x128xf32>
    %1815 = arith.mulf %1814, %1810 : vector<1x128xf32>
    %1816 = arith.mulf %1815, %1810 : vector<1x128xf32>
    %cst_427 = arith.constant 1.000000e+00 : f32
    %1817 = vector.broadcast %cst_427 : f32 to vector<1x128xf32>
    %1818 = arith.divf %1816, %1817 : vector<1x128xf32>
    %cst_428 = arith.constant 5.000000e-01 : f32
    %1819 = vector.broadcast %cst_428 : f32 to vector<1x128xf32>
    %1820 = arith.subf %1811, %1819 : vector<1x128xf32>
    %1821 = arith.select %1813, %1818, %1820 : vector<1x128xi1>, vector<1x128xf32>
    %1822 = arith.addf %1809, %1821 : vector<1x128xf32>
    %1823 = arith.mulf %1822, %1771 : vector<1x128xf32>
    %1824 = vector.shape_cast %1823 : vector<1x128xf32> to vector<1x1x128xf32>
    %cst_429 = arith.constant dense<0.000000e+00> : vector<1xf32>
    %1825 = vector.multi_reduction <add>, %1824, %cst_429 [1, 2] : vector<1x1x128xf32> to vector<1xf32>
    %1826 = vector.shape_cast %1825 : vector<1xf32> to vector<1x1x1xf32>
    %1827 = vector.extract %1826[0, 0, 0] : f32 from vector<1x1x1xf32>
    %1828 = arith.addf %1599, %1827 : f32
    %1829 = vector.shape_cast %1771 : vector<1x128xf32> to vector<1x1x128xf32>
    %cst_430 = arith.constant dense<0.000000e+00> : vector<1xf32>
    %1830 = vector.multi_reduction <add>, %1829, %cst_430 [1, 2] : vector<1x1x128xf32> to vector<1xf32>
    %1831 = vector.shape_cast %1830 : vector<1xf32> to vector<1x1x1xf32>
    %1832 = vector.extract %1831[0, 0, 0] : f32 from vector<1x1x1xf32>
    %1833 = arith.addf %1604, %1832 : f32
    %1834 = vector.extract_strided_slice %1 {offsets = [32, 0, 0], sizes = [1, 1, 128], strides = [1, 1, 1]} : vector<36x1x128xf32> to vector<1x1x128xf32>
    %1835 = vector.shape_cast %1834 : vector<1x1x128xf32> to vector<1x128xf32>
    %1836 = vector.extract_strided_slice %1 {offsets = [33, 0, 0], sizes = [1, 1, 128], strides = [1, 1, 1]} : vector<36x1x128xf32> to vector<1x1x128xf32>
    %1837 = vector.shape_cast %1836 : vector<1x1x128xf32> to vector<1x128xf32>
    %1838 = vector.extract_strided_slice %1 {offsets = [34, 0, 0], sizes = [1, 1, 128], strides = [1, 1, 1]} : vector<36x1x128xf32> to vector<1x1x128xf32>
    %1839 = vector.shape_cast %1838 : vector<1x1x128xf32> to vector<1x128xf32>
    %1840 = vector.extract_strided_slice %1 {offsets = [35, 0, 0], sizes = [1, 1, 128], strides = [1, 1, 1]} : vector<36x1x128xf32> to vector<1x1x128xf32>
    %1841 = vector.shape_cast %1840 : vector<1x1x128xf32> to vector<1x128xf32>
    %1842 = arith.subf %1839, %1835 : vector<1x128xf32>
    %1843 = arith.subf %1841, %1837 : vector<1x128xf32>
    %1844 = arith.mulf %1842, %1843 : vector<1x128xf32>
    %cst_431 = arith.constant -1.000000e+00 : f32
    %1845 = vector.broadcast %cst_431 : f32 to vector<1x128xf32>
    %cst_432 = arith.constant 0.000000e+00 : f32
    %1846 = vector.broadcast %cst_432 : f32 to vector<1x128xf32>
    %cst_433 = arith.constant 0.000000e+00 : f32
    %1847 = vector.broadcast %cst_433 : f32 to vector<1x128xf32>
    %cst_434 = arith.constant 0.000000e+00 : f32
    %1848 = vector.broadcast %cst_434 : f32 to vector<1x128xf32>
    %cst_435 = arith.constant 0.000000e+00 : f32
    %1849 = vector.broadcast %cst_435 : f32 to vector<1x128xf32>
    %c3_i32_436 = arith.constant 3 : i32
    %1850 = arith.muli %arg0, %c3_i32_436 : i32
    %c0_i32_437 = arith.constant 0 : i32
    %1851 = arith.addi %1850, %c0_i32_437 : i32
    %c4_i32_438 = arith.constant 4 : i32
    %1852 = arith.muli %1851, %c4_i32_438 : i32
    %c0_i32_439 = arith.constant 0 : i32
    %1853 = arith.addi %1852, %c0_i32_439 : i32
    %1854 = arith.index_cast %1853 : i32 to index
    %1855 = memref.load %arg3[%1854] : memref<24xf32, #tpu.memory_space<smem>>
    %c1_i32_440 = arith.constant 1 : i32
    %1856 = arith.addi %1852, %c1_i32_440 : i32
    %1857 = arith.index_cast %1856 : i32 to index
    %1858 = memref.load %arg3[%1857] : memref<24xf32, #tpu.memory_space<smem>>
    %c2_i32_441 = arith.constant 2 : i32
    %1859 = arith.addi %1852, %c2_i32_441 : i32
    %1860 = arith.index_cast %1859 : i32 to index
    %1861 = memref.load %arg3[%1860] : memref<24xf32, #tpu.memory_space<smem>>
    %c3_i32_442 = arith.constant 3 : i32
    %1862 = arith.addi %1852, %c3_i32_442 : i32
    %1863 = arith.index_cast %1862 : i32 to index
    %1864 = memref.load %arg3[%1863] : memref<24xf32, #tpu.memory_space<smem>>
    %1865 = vector.broadcast %1855 : f32 to vector<1x128xf32>
    %1866 = arith.maximumf %1835, %1865 : vector<1x128xf32>
    %1867 = vector.broadcast %1858 : f32 to vector<1x128xf32>
    %1868 = arith.maximumf %1837, %1867 : vector<1x128xf32>
    %1869 = vector.broadcast %1861 : f32 to vector<1x128xf32>
    %1870 = arith.minimumf %1839, %1869 : vector<1x128xf32>
    %1871 = vector.broadcast %1864 : f32 to vector<1x128xf32>
    %1872 = arith.minimumf %1841, %1871 : vector<1x128xf32>
    %1873 = arith.subf %1870, %1866 : vector<1x128xf32>
    %cst_443 = arith.constant 0.000000e+00 : f32
    %1874 = vector.broadcast %cst_443 : f32 to vector<1x128xf32>
    %1875 = arith.maximumf %1873, %1874 : vector<1x128xf32>
    %1876 = arith.subf %1872, %1868 : vector<1x128xf32>
    %cst_444 = arith.constant 0.000000e+00 : f32
    %1877 = vector.broadcast %cst_444 : f32 to vector<1x128xf32>
    %1878 = arith.maximumf %1876, %1877 : vector<1x128xf32>
    %1879 = arith.mulf %1875, %1878 : vector<1x128xf32>
    %1880 = arith.subf %1861, %1855 : f32
    %1881 = arith.subf %1864, %1858 : f32
    %1882 = arith.mulf %1880, %1881 : f32
    %1883 = vector.broadcast %1882 : f32 to vector<1x128xf32>
    %1884 = arith.addf %1844, %1883 : vector<1x128xf32>
    %1885 = arith.subf %1884, %1879 : vector<1x128xf32>
    %cst_445 = arith.constant 9.99999997E-7 : f32
    %1886 = vector.broadcast %cst_445 : f32 to vector<1x128xf32>
    %1887 = arith.addf %1885, %1886 : vector<1x128xf32>
    %1888 = arith.divf %1879, %1887 : vector<1x128xf32>
    %1889 = arith.cmpf ogt, %1888, %1845 : vector<1x128xf32>
    %1890 = arith.select %1889, %1888, %1845 : vector<1x128xi1>, vector<1x128xf32>
    %1891 = vector.broadcast %1855 : f32 to vector<1x128xf32>
    %1892 = arith.select %1889, %1891, %1846 : vector<1x128xi1>, vector<1x128xf32>
    %1893 = vector.broadcast %1858 : f32 to vector<1x128xf32>
    %1894 = arith.select %1889, %1893, %1847 : vector<1x128xi1>, vector<1x128xf32>
    %1895 = vector.broadcast %1861 : f32 to vector<1x128xf32>
    %1896 = arith.select %1889, %1895, %1848 : vector<1x128xi1>, vector<1x128xf32>
    %1897 = vector.broadcast %1864 : f32 to vector<1x128xf32>
    %1898 = arith.select %1889, %1897, %1849 : vector<1x128xi1>, vector<1x128xf32>
    %c3_i32_446 = arith.constant 3 : i32
    %1899 = arith.muli %arg0, %c3_i32_446 : i32
    %c1_i32_447 = arith.constant 1 : i32
    %1900 = arith.addi %1899, %c1_i32_447 : i32
    %c4_i32_448 = arith.constant 4 : i32
    %1901 = arith.muli %1900, %c4_i32_448 : i32
    %c0_i32_449 = arith.constant 0 : i32
    %1902 = arith.addi %1901, %c0_i32_449 : i32
    %1903 = arith.index_cast %1902 : i32 to index
    %1904 = memref.load %arg3[%1903] : memref<24xf32, #tpu.memory_space<smem>>
    %c1_i32_450 = arith.constant 1 : i32
    %1905 = arith.addi %1901, %c1_i32_450 : i32
    %1906 = arith.index_cast %1905 : i32 to index
    %1907 = memref.load %arg3[%1906] : memref<24xf32, #tpu.memory_space<smem>>
    %c2_i32_451 = arith.constant 2 : i32
    %1908 = arith.addi %1901, %c2_i32_451 : i32
    %1909 = arith.index_cast %1908 : i32 to index
    %1910 = memref.load %arg3[%1909] : memref<24xf32, #tpu.memory_space<smem>>
    %c3_i32_452 = arith.constant 3 : i32
    %1911 = arith.addi %1901, %c3_i32_452 : i32
    %1912 = arith.index_cast %1911 : i32 to index
    %1913 = memref.load %arg3[%1912] : memref<24xf32, #tpu.memory_space<smem>>
    %1914 = vector.broadcast %1904 : f32 to vector<1x128xf32>
    %1915 = arith.maximumf %1835, %1914 : vector<1x128xf32>
    %1916 = vector.broadcast %1907 : f32 to vector<1x128xf32>
    %1917 = arith.maximumf %1837, %1916 : vector<1x128xf32>
    %1918 = vector.broadcast %1910 : f32 to vector<1x128xf32>
    %1919 = arith.minimumf %1839, %1918 : vector<1x128xf32>
    %1920 = vector.broadcast %1913 : f32 to vector<1x128xf32>
    %1921 = arith.minimumf %1841, %1920 : vector<1x128xf32>
    %1922 = arith.subf %1919, %1915 : vector<1x128xf32>
    %cst_453 = arith.constant 0.000000e+00 : f32
    %1923 = vector.broadcast %cst_453 : f32 to vector<1x128xf32>
    %1924 = arith.maximumf %1922, %1923 : vector<1x128xf32>
    %1925 = arith.subf %1921, %1917 : vector<1x128xf32>
    %cst_454 = arith.constant 0.000000e+00 : f32
    %1926 = vector.broadcast %cst_454 : f32 to vector<1x128xf32>
    %1927 = arith.maximumf %1925, %1926 : vector<1x128xf32>
    %1928 = arith.mulf %1924, %1927 : vector<1x128xf32>
    %1929 = arith.subf %1910, %1904 : f32
    %1930 = arith.subf %1913, %1907 : f32
    %1931 = arith.mulf %1929, %1930 : f32
    %1932 = vector.broadcast %1931 : f32 to vector<1x128xf32>
    %1933 = arith.addf %1844, %1932 : vector<1x128xf32>
    %1934 = arith.subf %1933, %1928 : vector<1x128xf32>
    %cst_455 = arith.constant 9.99999997E-7 : f32
    %1935 = vector.broadcast %cst_455 : f32 to vector<1x128xf32>
    %1936 = arith.addf %1934, %1935 : vector<1x128xf32>
    %1937 = arith.divf %1928, %1936 : vector<1x128xf32>
    %1938 = arith.cmpf ogt, %1937, %1890 : vector<1x128xf32>
    %1939 = arith.select %1938, %1937, %1890 : vector<1x128xi1>, vector<1x128xf32>
    %1940 = vector.broadcast %1904 : f32 to vector<1x128xf32>
    %1941 = arith.select %1938, %1940, %1892 : vector<1x128xi1>, vector<1x128xf32>
    %1942 = vector.broadcast %1907 : f32 to vector<1x128xf32>
    %1943 = arith.select %1938, %1942, %1894 : vector<1x128xi1>, vector<1x128xf32>
    %1944 = vector.broadcast %1910 : f32 to vector<1x128xf32>
    %1945 = arith.select %1938, %1944, %1896 : vector<1x128xi1>, vector<1x128xf32>
    %1946 = vector.broadcast %1913 : f32 to vector<1x128xf32>
    %1947 = arith.select %1938, %1946, %1898 : vector<1x128xi1>, vector<1x128xf32>
    %c3_i32_456 = arith.constant 3 : i32
    %1948 = arith.muli %arg0, %c3_i32_456 : i32
    %c2_i32_457 = arith.constant 2 : i32
    %1949 = arith.addi %1948, %c2_i32_457 : i32
    %c4_i32_458 = arith.constant 4 : i32
    %1950 = arith.muli %1949, %c4_i32_458 : i32
    %c0_i32_459 = arith.constant 0 : i32
    %1951 = arith.addi %1950, %c0_i32_459 : i32
    %1952 = arith.index_cast %1951 : i32 to index
    %1953 = memref.load %arg3[%1952] : memref<24xf32, #tpu.memory_space<smem>>
    %c1_i32_460 = arith.constant 1 : i32
    %1954 = arith.addi %1950, %c1_i32_460 : i32
    %1955 = arith.index_cast %1954 : i32 to index
    %1956 = memref.load %arg3[%1955] : memref<24xf32, #tpu.memory_space<smem>>
    %c2_i32_461 = arith.constant 2 : i32
    %1957 = arith.addi %1950, %c2_i32_461 : i32
    %1958 = arith.index_cast %1957 : i32 to index
    %1959 = memref.load %arg3[%1958] : memref<24xf32, #tpu.memory_space<smem>>
    %c3_i32_462 = arith.constant 3 : i32
    %1960 = arith.addi %1950, %c3_i32_462 : i32
    %1961 = arith.index_cast %1960 : i32 to index
    %1962 = memref.load %arg3[%1961] : memref<24xf32, #tpu.memory_space<smem>>
    %1963 = vector.broadcast %1953 : f32 to vector<1x128xf32>
    %1964 = arith.maximumf %1835, %1963 : vector<1x128xf32>
    %1965 = vector.broadcast %1956 : f32 to vector<1x128xf32>
    %1966 = arith.maximumf %1837, %1965 : vector<1x128xf32>
    %1967 = vector.broadcast %1959 : f32 to vector<1x128xf32>
    %1968 = arith.minimumf %1839, %1967 : vector<1x128xf32>
    %1969 = vector.broadcast %1962 : f32 to vector<1x128xf32>
    %1970 = arith.minimumf %1841, %1969 : vector<1x128xf32>
    %1971 = arith.subf %1968, %1964 : vector<1x128xf32>
    %cst_463 = arith.constant 0.000000e+00 : f32
    %1972 = vector.broadcast %cst_463 : f32 to vector<1x128xf32>
    %1973 = arith.maximumf %1971, %1972 : vector<1x128xf32>
    %1974 = arith.subf %1970, %1966 : vector<1x128xf32>
    %cst_464 = arith.constant 0.000000e+00 : f32
    %1975 = vector.broadcast %cst_464 : f32 to vector<1x128xf32>
    %1976 = arith.maximumf %1974, %1975 : vector<1x128xf32>
    %1977 = arith.mulf %1973, %1976 : vector<1x128xf32>
    %1978 = arith.subf %1959, %1953 : f32
    %1979 = arith.subf %1962, %1956 : f32
    %1980 = arith.mulf %1978, %1979 : f32
    %1981 = vector.broadcast %1980 : f32 to vector<1x128xf32>
    %1982 = arith.addf %1844, %1981 : vector<1x128xf32>
    %1983 = arith.subf %1982, %1977 : vector<1x128xf32>
    %cst_465 = arith.constant 9.99999997E-7 : f32
    %1984 = vector.broadcast %cst_465 : f32 to vector<1x128xf32>
    %1985 = arith.addf %1983, %1984 : vector<1x128xf32>
    %1986 = arith.divf %1977, %1985 : vector<1x128xf32>
    %1987 = arith.cmpf ogt, %1986, %1939 : vector<1x128xf32>
    %1988 = arith.select %1987, %1986, %1939 : vector<1x128xi1>, vector<1x128xf32>
    %1989 = vector.broadcast %1953 : f32 to vector<1x128xf32>
    %1990 = arith.select %1987, %1989, %1941 : vector<1x128xi1>, vector<1x128xf32>
    %1991 = vector.broadcast %1956 : f32 to vector<1x128xf32>
    %1992 = arith.select %1987, %1991, %1943 : vector<1x128xi1>, vector<1x128xf32>
    %1993 = vector.broadcast %1959 : f32 to vector<1x128xf32>
    %1994 = arith.select %1987, %1993, %1945 : vector<1x128xi1>, vector<1x128xf32>
    %1995 = vector.broadcast %1962 : f32 to vector<1x128xf32>
    %1996 = arith.select %1987, %1995, %1947 : vector<1x128xi1>, vector<1x128xf32>
    %cst_466 = arith.constant 5.000000e-01 : f32
    %1997 = vector.broadcast %cst_466 : f32 to vector<1x128xf32>
    %1998 = arith.cmpf ogt, %1988, %1997 : vector<1x128xf32>
    %1999 = arith.extui %1998 : vector<1x128xi1> to vector<1x128xi32>
    %2000 = arith.sitofp %1999 : vector<1x128xi32> to vector<1x128xf32>
    %2001 = arith.subf %1835, %1990 : vector<1x128xf32>
    %2002 = math.absf %2001 : vector<1x128xf32>
    %cst_467 = arith.constant 1.000000e+00 : f32
    %2003 = vector.broadcast %cst_467 : f32 to vector<1x128xf32>
    %2004 = arith.cmpf olt, %2002, %2003 : vector<1x128xf32>
    %cst_468 = arith.constant 5.000000e-01 : f32
    %2005 = vector.broadcast %cst_468 : f32 to vector<1x128xf32>
    %2006 = arith.mulf %2005, %2001 : vector<1x128xf32>
    %2007 = arith.mulf %2006, %2001 : vector<1x128xf32>
    %cst_469 = arith.constant 1.000000e+00 : f32
    %2008 = vector.broadcast %cst_469 : f32 to vector<1x128xf32>
    %2009 = arith.divf %2007, %2008 : vector<1x128xf32>
    %cst_470 = arith.constant 5.000000e-01 : f32
    %2010 = vector.broadcast %cst_470 : f32 to vector<1x128xf32>
    %2011 = arith.subf %2002, %2010 : vector<1x128xf32>
    %2012 = arith.select %2004, %2009, %2011 : vector<1x128xi1>, vector<1x128xf32>
    %2013 = arith.subf %1837, %1992 : vector<1x128xf32>
    %2014 = math.absf %2013 : vector<1x128xf32>
    %cst_471 = arith.constant 1.000000e+00 : f32
    %2015 = vector.broadcast %cst_471 : f32 to vector<1x128xf32>
    %2016 = arith.cmpf olt, %2014, %2015 : vector<1x128xf32>
    %cst_472 = arith.constant 5.000000e-01 : f32
    %2017 = vector.broadcast %cst_472 : f32 to vector<1x128xf32>
    %2018 = arith.mulf %2017, %2013 : vector<1x128xf32>
    %2019 = arith.mulf %2018, %2013 : vector<1x128xf32>
    %cst_473 = arith.constant 1.000000e+00 : f32
    %2020 = vector.broadcast %cst_473 : f32 to vector<1x128xf32>
    %2021 = arith.divf %2019, %2020 : vector<1x128xf32>
    %cst_474 = arith.constant 5.000000e-01 : f32
    %2022 = vector.broadcast %cst_474 : f32 to vector<1x128xf32>
    %2023 = arith.subf %2014, %2022 : vector<1x128xf32>
    %2024 = arith.select %2016, %2021, %2023 : vector<1x128xi1>, vector<1x128xf32>
    %2025 = arith.addf %2012, %2024 : vector<1x128xf32>
    %2026 = arith.subf %1839, %1994 : vector<1x128xf32>
    %2027 = math.absf %2026 : vector<1x128xf32>
    %cst_475 = arith.constant 1.000000e+00 : f32
    %2028 = vector.broadcast %cst_475 : f32 to vector<1x128xf32>
    %2029 = arith.cmpf olt, %2027, %2028 : vector<1x128xf32>
    %cst_476 = arith.constant 5.000000e-01 : f32
    %2030 = vector.broadcast %cst_476 : f32 to vector<1x128xf32>
    %2031 = arith.mulf %2030, %2026 : vector<1x128xf32>
    %2032 = arith.mulf %2031, %2026 : vector<1x128xf32>
    %cst_477 = arith.constant 1.000000e+00 : f32
    %2033 = vector.broadcast %cst_477 : f32 to vector<1x128xf32>
    %2034 = arith.divf %2032, %2033 : vector<1x128xf32>
    %cst_478 = arith.constant 5.000000e-01 : f32
    %2035 = vector.broadcast %cst_478 : f32 to vector<1x128xf32>
    %2036 = arith.subf %2027, %2035 : vector<1x128xf32>
    %2037 = arith.select %2029, %2034, %2036 : vector<1x128xi1>, vector<1x128xf32>
    %2038 = arith.addf %2025, %2037 : vector<1x128xf32>
    %2039 = arith.subf %1841, %1996 : vector<1x128xf32>
    %2040 = math.absf %2039 : vector<1x128xf32>
    %cst_479 = arith.constant 1.000000e+00 : f32
    %2041 = vector.broadcast %cst_479 : f32 to vector<1x128xf32>
    %2042 = arith.cmpf olt, %2040, %2041 : vector<1x128xf32>
    %cst_480 = arith.constant 5.000000e-01 : f32
    %2043 = vector.broadcast %cst_480 : f32 to vector<1x128xf32>
    %2044 = arith.mulf %2043, %2039 : vector<1x128xf32>
    %2045 = arith.mulf %2044, %2039 : vector<1x128xf32>
    %cst_481 = arith.constant 1.000000e+00 : f32
    %2046 = vector.broadcast %cst_481 : f32 to vector<1x128xf32>
    %2047 = arith.divf %2045, %2046 : vector<1x128xf32>
    %cst_482 = arith.constant 5.000000e-01 : f32
    %2048 = vector.broadcast %cst_482 : f32 to vector<1x128xf32>
    %2049 = arith.subf %2040, %2048 : vector<1x128xf32>
    %2050 = arith.select %2042, %2047, %2049 : vector<1x128xi1>, vector<1x128xf32>
    %2051 = arith.addf %2038, %2050 : vector<1x128xf32>
    %2052 = arith.mulf %2051, %2000 : vector<1x128xf32>
    %2053 = vector.shape_cast %2052 : vector<1x128xf32> to vector<1x1x128xf32>
    %cst_483 = arith.constant dense<0.000000e+00> : vector<1xf32>
    %2054 = vector.multi_reduction <add>, %2053, %cst_483 [1, 2] : vector<1x1x128xf32> to vector<1xf32>
    %2055 = vector.shape_cast %2054 : vector<1xf32> to vector<1x1x1xf32>
    %2056 = vector.extract %2055[0, 0, 0] : f32 from vector<1x1x1xf32>
    %2057 = arith.addf %1828, %2056 : f32
    %2058 = vector.shape_cast %2000 : vector<1x128xf32> to vector<1x1x128xf32>
    %cst_484 = arith.constant dense<0.000000e+00> : vector<1xf32>
    %2059 = vector.multi_reduction <add>, %2058, %cst_484 [1, 2] : vector<1x1x128xf32> to vector<1xf32>
    %2060 = vector.shape_cast %2059 : vector<1xf32> to vector<1x1x1xf32>
    %2061 = vector.extract %2060[0, 0, 0] : f32 from vector<1x1x1xf32>
    %2062 = arith.addf %1833, %2061 : f32
    %cst_485 = arith.constant 0.000000e+00 : f32
    %2063 = vector.broadcast %cst_485 : f32 to vector<1x1x8x128xf32>
    %2064 = vector.broadcast %2057 : f32 to vector<1x1x8x128xf32>
    %2065 = arith.addf %2063, %2064 : vector<1x1x8x128xf32>
    %c0_486 = arith.constant 0 : index
    %c0_487 = arith.constant 0 : index
    %c0_488 = arith.constant 0 : index
    %c0_489 = arith.constant 0 : index
    %2066 = vector.load %arg4[%c0_486, %c0_487, %c0_488, %c0_489] : memref<1x1x8x128xf32, #tpu.memory_space<vmem>>, vector<1x1x8x128xf32>
    tpu.vector_store %arg4[%c0_486, %c0_487, %c0_488, %c0_489], %2065 {strides = array<i32>} : memref<1x1x8x128xf32, #tpu.memory_space<vmem>>, vector<1x1x8x128xf32>,
    %cst_490 = arith.constant 0.000000e+00 : f32
    %2067 = vector.broadcast %cst_490 : f32 to vector<1x1x8x128xf32>
    %2068 = vector.broadcast %2062 : f32 to vector<1x1x8x128xf32>
    %2069 = arith.addf %2067, %2068 : vector<1x1x8x128xf32>
    %c0_491 = arith.constant 0 : index
    %c0_492 = arith.constant 0 : index
    %c0_493 = arith.constant 0 : index
    %c0_494 = arith.constant 0 : index
    %2070 = vector.load %arg5[%c0_491, %c0_492, %c0_493, %c0_494] : memref<1x1x8x128xf32, #tpu.memory_space<vmem>>, vector<1x1x8x128xf32>
    tpu.vector_store %arg5[%c0_491, %c0_492, %c0_493, %c0_494], %2069 {strides = array<i32>} : memref<1x1x8x128xf32, #tpu.memory_space<vmem>>, vector<1x1x8x128xf32>,
    return
  }
  func.func @transform_0(%arg0: i32, %arg1: i32) -> (i32, i32, i32, i32) {
    %c0_i32 = arith.constant 0 : i32
    %c0_i32_0 = arith.constant 0 : i32
    %c0_i32_1 = arith.constant 0 : i32
    return %arg0, %c0_i32, %arg1, %c0_i32_0 : i32, i32, i32, i32
  }
  func.func @transform_1(%arg0: i32, %arg1: i32) -> i32 {
    %c0_i32 = arith.constant 0 : i32
    %c0_i32_0 = arith.constant 0 : i32
    return %c0_i32 : i32
  }
  func.func @transform_2(%arg0: i32, %arg1: i32) -> (i32, i32, i32, i32) {
    %c0_i32 = arith.constant 0 : i32
    %c0_i32_0 = arith.constant 0 : i32
    %c0_i32_1 = arith.constant 0 : i32
    return %arg0, %arg1, %c0_i32, %c0_i32_0 : i32, i32, i32, i32
  }
  func.func @transform_3(%arg0: i32, %arg1: i32) -> (i32, i32, i32, i32) {
    %c0_i32 = arith.constant 0 : i32
    %c0_i32_0 = arith.constant 0 : i32
    %c0_i32_1 = arith.constant 0 : i32
    return %arg0, %arg1, %c0_i32, %c0_i32_0 : i32, i32, i32, i32
  }
}

module attributes {stable_mosaic.version = 11 : i64} {
  func.func @_cls_ce_kernel(%arg0: memref<2x8xf32, #tpu.memory_space<vmem>>, %arg1: memref<2x1xi32, #tpu.memory_space<vmem>>, %arg2: memref<1xf32, #tpu.memory_space<smem>>) attributes {dimension_semantics = [], scalar_prefetch = 0 : i64, scratch_operands = 0 : i64, tpu.core_type = #tpu.core_type<tc>} {
    %c0 = arith.constant 0 : index
    %c0_0 = arith.constant 0 : index
    %0 = vector.load %arg0[%c0, %c0_0] : memref<2x8xf32, #tpu.memory_space<vmem>>, vector<2x8xf32>
    %c0_1 = arith.constant 0 : index
    %c0_2 = arith.constant 0 : index
    %1 = vector.load %arg1[%c0_1, %c0_2] : memref<2x1xi32, #tpu.memory_space<vmem>>, vector<2x1xi32>
    %cst = arith.constant dense<0xFF800000> : vector<2xf32>
    %2 = vector.multi_reduction <maximumf>, %0, %cst [1] : vector<2x8xf32> to vector<2xf32>
    %3 = vector.shape_cast %2 : vector<2xf32> to vector<2x1xf32>
    %4 = vector.broadcast %3 : vector<2x1xf32> to vector<2x8xf32>
    %5 = arith.subf %0, %4 : vector<2x8xf32>
    %6 = math.exp %5 : vector<2x8xf32>
    %cst_3 = arith.constant dense<0.000000e+00> : vector<2xf32>
    %7 = vector.multi_reduction <add>, %6, %cst_3 [1] : vector<2x8xf32> to vector<2xf32>
    %8 = vector.shape_cast %7 : vector<2xf32> to vector<2x1xf32>
    %9 = math.log %8 : vector<2x1xf32>
    %10 = arith.addf %9, %3 : vector<2x1xf32>
    %11 = tpu.iota {dimensions = array<i32: 1>} : vector<2x8xi32>
    %12 = vector.broadcast %1 : vector<2x1xi32> to vector<2x8xi32>
    %13 = arith.cmpi eq, %11, %12 : vector<2x8xi32>
    %cst_4 = arith.constant 0.000000e+00 : f32
    %14 = vector.broadcast %cst_4 : f32 to vector<2x8xf32>
    %15 = arith.select %13, %0, %14 : vector<2x8xi1>, vector<2x8xf32>
    %cst_5 = arith.constant dense<0.000000e+00> : vector<2xf32>
    %16 = vector.multi_reduction <add>, %15, %cst_5 [1] : vector<2x8xf32> to vector<2xf32>
    %17 = vector.shape_cast %16 : vector<2xf32> to vector<2x1xf32>
    %18 = arith.subf %10, %17 : vector<2x1xf32>
    %19 = vector.shape_cast %18 : vector<2x1xf32> to vector<1x2x1xf32>
    %cst_6 = arith.constant dense<0.000000e+00> : vector<1xf32>
    %20 = vector.multi_reduction <add>, %19, %cst_6 [1, 2] : vector<1x2x1xf32> to vector<1xf32>
    %21 = vector.shape_cast %20 : vector<1xf32> to vector<1x1x1xf32>
    %22 = vector.extract %21[0, 0, 0] : f32 from vector<1x1x1xf32>
    %c0_7 = arith.constant 0 : index
    %23 = memref.load %arg2[%c0_7] : memref<1xf32, #tpu.memory_space<smem>>
    memref.store %22, %arg2[%c0_7] : memref<1xf32, #tpu.memory_space<smem>>
    return
  }
}

</mosaic_0001>

<bundles_post_ra>
// kernel: _loss.6
= control target key start
LH: loop header
LB: loop body
LE: loop exit
PB: predicated region body
PF: predicated region fallthrough
CT: control target
= control target key end

     0   :  { %s676_s9 = smov 0   ;;  %s678_s10 = smov 0   ;;  %s853_s0 = inlined_call_operand.vmem [shape: f32[2,36,128], index: 0, kind: input, shape index: {}]   ;;  %s854_s1 = inlined_call_operand.vmem [shape: f32[2,36,1], index: 1, kind: input, shape index: {}]   ;;  %s855_s2 = inlined_call_operand.vmem [shape: f32[2,1,8,128], index: 2, kind: output, shape index: {}]  }
   0x1   :  { %s680_s11 = smov 0  }
   0x2 LB: > { %s24_s12 = sadd.s32 1, %s653_s10  ;;  %p567_p0 = scmp.ge.s32.totalorder %s657_s11, 1  ;;  %s657_s11 = sphi %s680_s11, %s12_s11   ;;  %s653_s10 = sphi %s678_s10, %s867_s10   ;;  %s649_s9 = sphi %s676_s9, %s866_s9  }
   0x3   : > { %p26_p1 = scmp.ge.s32.totalorder %s24_s12, 2  ;;  %p141_p2 = scmp.lt.s32.totalorder %s657_s11, 3 }
   0x5   : > { %s869_s12 = smov (%p26_p1, %s24_s12), 0  ;;  %p142_p3 = pnand %p567_p0, %p141_p2 }
   0x6   : > { %p173_p4 = scmp.lt.s32.totalorder (!%p142_p3), %s649_s9, 1  ;;  %v659_v0 = vmov (!%p142_p3), 0   ;;  %v438_v60 = vlaneseq (!%p142_p3)  ;;  %vm459_vm11 = vcmask (!%p142_p3), 1043456  }
   0x7   : > { %145 = sbr.rel (%p142_p3) target bundleno = 390 (0x186), region = 28  ;;  %603 = vset.pattern.permute.xlu0 (!%p142_p3), %v659_v0  ;;  %604 = vset.pattern.permute.xlu1 (!%p142_p3), %v659_v0 }
   0xe   : > { %s871_s9 = smov (!%p173_p4, %s649_s9), 1 }
   0xf   : > { %s574_s13 = smul.u32 40, %s871_s9  ;;  %s570_s20 = sshll.u32 %s871_s9, 3 }
  0x10   : > { %s192_s23 = scalar_lea.vmem %s855_s2, %s570_s20 }
  0x11   : > { %s185_s16 = scalar_lea.vmem %s854_s1, %s574_s13  ;;  %s180_s19 = scalar_lea.vmem %s853_s0, %s574_s13 }
  0x12   : > { %v198_v1 = vld [vmem:[%s185_s16] sm:$0xff]  ;;  %v199_v2 = vld [vmem:[%s185_s16 + $0x8] sm:$0xff]  ;;  %v200_v5 = vld [vmem:[%s185_s16 + $0x10] sm:$0xff] }
  0x13   : > { %230 = vperm.xlu0 %603, %v198_v1   ;;  %v348_v3 = vsub.f32 1.0, %v198_v1  ;;  %v349_v4 = vsub.f32 1.0, %v199_v2  ;;  %v350_v6 = vsub.f32 1.0, %v200_v5  ;;  %v201_v7 = vld [vmem:[%s185_s16 + $0x18] sm:$0xff]  ;;  %v202_v9 = vld [vmem:[%s185_s16 + $0x20] sm:$0xf] }
  0x14   : > { %v351_v8 = vsub.f32 1.0, %v201_v7  ;;  %v393_v10 = vmul.f32 0.25, %v198_v1  ;;  %v394_v12 = vmul.f32 0.25, %v199_v2  ;;  %v352_v13 = vsub.f32 1.0, %v202_v9  ;;  %v707_v26 = vld [vmem:[%s180_s19] sm:$0xff]  ;;  %v709_v27 = vld [vmem:[%s180_s19 + $0x8] sm:$0xff] }
  0x15   : > { %355 = vperm.xlu1 %604, %v348_v3   ;;  %v398_v11 = vmul.f32 0.75, %v348_v3  ;;  %v399_v14 = vmul.f32 0.75, %v349_v4  ;;  %v395_v15 = vmul.f32 0.25, %v200_v5  ;;  %v400_v17 = vmul.f32 0.75, %v350_v6  ;;  %v712_v29 = vld [vmem:[%s180_s19 + $0x10] sm:$0xff]  ;;  %v715_v31 = vld [vmem:[%s180_s19 + $0x18] sm:$0xff] }
  0x16   : > { %v396_v18 = vmul.f32 0.25, %v201_v7  ;;  %v401_v20 = vmul.f32 0.75, %v351_v8  ;;  %v397_v21 = vmul.f32 0.25, %v202_v9  ;;  %v402_v23 = vmul.f32 0.75, %v352_v13  ;;  %v718_v34 = vld [vmem:[%s180_s19 + $0x20] sm:$0xf] }
  0x17   : > { %235 = vperm.xlu0 %603, %v199_v2   ;;  %v403_v16 = vadd.f32 %v398_v11, %v393_v10  ;;  %v404_v19 = vadd.f32 %v399_v14, %v394_v12  ;;  %v405_v22 = vadd.f32 %v400_v17, %v395_v15  ;;  %v203_v28 = vand.u32 2147483647, %v707_v26 }
  0x18   : > { %v406_v24 = vadd.f32 %v401_v20, %v396_v18  ;;  %v407_v25 = vadd.f32 %v402_v23, %v397_v21  ;;  %v204_v30 = vand.u32 2147483647, %v709_v27  ;;  %v205_v33 = vand.u32 2147483647, %v712_v29 }
  0x19   : > { %360 = vperm.xlu1 %604, %v349_v4   ;;  %v208_v32 = vsub.f32 0.0, %v203_v28  ;;  %v206_v36 = vand.u32 2147483647, %v715_v31  ;;  %v207_v37 = vand.u32 2147483647, %v718_v34  ;;  %v223_v57 = vmax.f32 %v707_v26, 0.0 }
  0x1a   : > { %v209_v35 = vsub.f32 0.0, %v204_v30  ;;  %v210_v39 = vsub.f32 0.0, %v205_v33  ;;  %vm323_vm0 = vcmp.ge.f32.partialorder %v707_v26, 0.0  ;;  %v224_v59 = vmax.f32 %v709_v27, 0.0 }
  0x1b   : > { %240 = vperm.xlu0 %603, %v200_v5   ;;  %v213_v38 = vmul.f32 1.442695, %v208_v32  ;;  %v211_v41 = vsub.f32 0.0, %v206_v36  ;;  %v212_v42 = vsub.f32 0.0, %v207_v37  ;;  %vm324_vm1 = vcmp.ge.f32.partialorder %v709_v27, 0.0 }
  0x1c   : > { %v215_v40 = vmul.f32 1.442695, %v209_v35  ;;  %v217_v43 = vmul.f32 1.442695, %v210_v39  ;;  %v225_v62 = vmax.f32 %v712_v29, 0.0  ;;  %vm325_vm2 = vcmp.ge.f32.partialorder %v712_v29, 0.0 }
  0x1d   : > { %365 = vperm.xlu1 %604, %v350_v6   ;;  %605 = vpow2.f32 %v213_v38  ;;  %v219_v44 = vmul.f32 1.442695, %v211_v41  ;;  %v221_v45 = vmul.f32 1.442695, %v212_v42  ;;  %v226_v2 = vmax.f32 %v715_v31, 0.0 }
  0x1e   : > { %607 = vpow2.f32 %v215_v40  ;;  %vm326_vm3 = vcmp.ge.f32.partialorder %v715_v31, 0.0  ;;  %v227_v5 = vmax.f32 %v718_v34, 0.0  ;;  %vm327_vm4 = vcmp.ge.f32.partialorder %v718_v34, 0.0 }
  0x1f   : > { %245 = vperm.xlu0 %603, %v201_v7   ;;  %609 = vpow2.f32 %v217_v43 }
  0x20   : > { %611 = vpow2.f32 %v219_v44 }
  0x21   : > { %370 = vperm.xlu1 %604, %v351_v8   ;;  %613 = vpow2.f32 %v221_v45 }
  0x23   : > { %250 = vperm.xlu0 %603, %v202_v9   ;;  %v754_v9 = vand.u32 127, %v438_v60 }
  0x25   : > { %375 = vperm.xlu1 %604, %v352_v13   ;;  %vm443_vm9 = vcmp.lt.s32.totalorder %v754_v9, 64 }
  0x27   : > { %410 = vperm.xlu0 %603, %v403_v16   ;;  %v722_v46 = vpop.eup %605 }
  0x28   : > { %v724_v47 = vpop.eup %607  ;;  %v263_v48 = vadd.f32 1.0, %v722_v46  ;;  %v266_v63 = vmul.f32 -0.5, %v722_v46  ;;  %v269_v10 = vand.u32 2147483647, %v722_v46 }
  0x29   : > { %415 = vperm.xlu1 %604, %v404_v19   ;;  %v727_v49 = vpop.eup %609  ;;  %v272_v50 = vadd.f32 1.0, %v724_v47  ;;  %v275_v3 = vmul.f32 -0.5, %v724_v47  ;;  %v278_v14 = vand.u32 2147483647, %v724_v47 }
  0x2a   : > { %v730_v51 = vpop.eup %611  ;;  %615 = vrcp.f32 %v263_v48  ;;  %v281_v53 = vadd.f32 1.0, %v727_v49  ;;  %v284_v6 = vmul.f32 -0.5, %v727_v49  ;;  %v267_v13 = vadd.f32 1.0, %v266_v63 }
  0x2b   : > { %420 = vperm.xlu0 %603, %v405_v22   ;;  %v732_v52 = vpop.eup %613  ;;  %617 = vrcp.f32 %v272_v50  ;;  %v290_v54 = vadd.f32 1.0, %v730_v51  ;;  %v293_v11 = vmul.f32 -0.5, %v730_v51  ;;  %v276_v19 = vadd.f32 1.0, %v275_v3 }
  0x2c   : > { %v299_v55 = vadd.f32 1.0, %v732_v52  ;;  %619 = vrcp.f32 %v281_v53  ;;  %v302_v20 = vmul.f32 -0.5, %v732_v52  ;;  %v285_v21 = vadd.f32 1.0, %v284_v6 }
  0x2d   : > { %425 = vperm.xlu1 %604, %v406_v24   ;;  %621 = vrcp.f32 %v290_v54  ;;  %v287_v22 = vand.u32 2147483647, %v727_v49  ;;  %v296_v23 = vand.u32 2147483647, %v730_v51  ;;  %vm768_vm5 = vcmp.lt.f32.partialorder %v269_v10, 0.0004427343 }
  0x2e   : > { %623 = vrcp.f32 %v299_v55  ;;  %v294_v32 = vadd.f32 1.0, %v293_v11  ;;  %v268_v37 = vmul.f32 %v722_v46, %v267_v13  ;;  %vm774_vm6 = vcmp.lt.f32.partialorder %v278_v14, 0.0004427343 }
  0x2f   : > { %430 = vperm.xlu0 %603, %v407_v25   ;;  %625 = vlog2.f32 %v263_v48  ;;  %v781_v41 = vmul.f32 %v724_v47, %v276_v19  ;;  %v303_v42 = vadd.f32 1.0, %v302_v20  ;;  %v305_v43 = vand.u32 2147483647, %v732_v52 }
  0x30   : > { %627 = vlog2.f32 %v272_v50  ;;  %v785_v50 = vmul.f32 %v727_v49, %v285_v21  ;;  %vm787_vm7 = vcmp.lt.f32.partialorder %v287_v22, 0.0004427343  ;;  %vm791_vm8 = vcmp.lt.f32.partialorder %v296_v23, 0.0004427343 }
  0x31   : > { %629 = vlog2.f32 %v281_v53  ;;  %v800_v60 = vmul.f32 %v730_v51, %v294_v32  ;;  %vm808_vm10 = vcmp.lt.f32.partialorder %v305_v43, 0.0004427343 }
  0x32   : > { %631 = vlog2.f32 %v290_v54 }
  0x33   : > { %633 = vlog2.f32 %v299_v55 }
  0x34   : > { %v616_v56 = vpop.eup %615 }
  0x35   : > { %v618_v61 = vpop.eup %617  ;;  %v328_v1 = vmul.f32 %v616_v56, %v722_v46 }
  0x36   : > { %v620_v4 = vpop.eup %619  ;;  %v329_v8 = vmul.f32 %v618_v61, %v724_v47 }
  0x37   : > { %v622_v12 = vpop.eup %621  ;;  %v333_v16 = vsel %vm323_vm0, %v616_v56, %v328_v1  ;;  %v330_v18 = vmul.f32 %v620_v4, %v727_v49 }
  0x38   : > { %v624_v15 = vpop.eup %623  ;;  %v334_v24 = vsel %vm324_vm1, %v618_v61, %v329_v8  ;;  %v331_v28 = vmul.f32 %v622_v12, %v730_v51  ;;  %v338_v35 = vsub.f32 1.0, %v333_v16  ;;  %v304_v8 = vmul.f32 %v732_v52, %v303_v42 }
  0x39   : > { %v626_v33 = vpop.eup %625  ;;  %v332_v36 = vmul.f32 %v624_v15, %v732_v52  ;;  %v335_v40 = vsel %vm325_vm2, %v620_v4, %v330_v18  ;;  %v339_v48 = vsub.f32 1.0, %v334_v24 }
  0x3a   : > { %v628_v44 = vpop.eup %627  ;;  %v336_v55 = vsel %vm326_vm3, %v622_v12, %v331_v28  ;;  %v265_v56 = vmul.f32 0.6931472, %v626_v33 }
  0x3b   : > { %v630_v49 = vpop.eup %629  ;;  %v337_v1 = vsel %vm327_vm4, %v624_v15, %v332_v36  ;;  %v274_v6 = vmul.f32 0.6931472, %v628_v44  ;;  %v341_v13 = vsub.f32 1.0, %v336_v55 }
  0x3c   : > { %v632_v51 = vpop.eup %631  ;;  %v283_v18 = vmul.f32 0.6931472, %v630_v49 }
  0x3d   : > { %v634_v19 = vpop.eup %633 }
  0x3e   : > { %v289_v44 = vsel %vm787_vm7, %v785_v50, %v283_v18 }
  0x92   : > { %v738_v58 = vpop.permute.xlu0 %230 }
  0x93   : > { %v253_v47 = vmul.f32 %v738_v58, %v707_v26  ;;  %v343_v61 = vmul.f32 %v338_v35, %v738_v58  ;;  %v280_v26 = vsel %vm774_vm6, %v781_v41, %v274_v6 }
  0x94   : > { %v356_v0 = vpop.permute.xlu1 %355 }
  0x95   : > { %v378_v45 = vmul.f32 %v356_v0, %v333_v16  ;;  %v340_v0 = vsub.f32 1.0, %v335_v40  ;;  %v258_v14 = vsub.f32 %v223_v57, %v253_v47  ;;  %v342_v16 = vsub.f32 1.0, %v337_v1 }
  0x96   : > { %v236_v7 = vpop.permute.xlu0 %235  ;;  %v292_v57 = vmul.f32 0.6931472, %v632_v51 }
  0x97   : > { %v254_v3 = vmul.f32 %v236_v7, %v709_v27  ;;  %v383_v11 = vadd.f32 %v378_v45, %v343_v61  ;;  %v344_v58 = vmul.f32 %v339_v48, %v236_v7 }
  0x98   : > { %v361_v17 = vpop.permute.xlu1 %360  ;;  %v298_v45 = vsel %vm791_vm8, %v800_v60, %v292_v57 }
  0x99   : > { %v379_v63 = vmul.f32 %v361_v17, %v334_v24  ;;  %v271_v17 = vsel %vm768_vm5, %v268_v37, %v265_v56  ;;  %v259_v7 = vsub.f32 %v224_v59, %v254_v3  ;;  %v388_v33 = vmul.f32 %v383_v11, %v383_v11 }
  0x9a   : > { %v241_v25 = vpop.permute.xlu0 %240  ;;  %v308_v37 = vadd.f32 %v271_v17, %v258_v14 }
  0x9b   : > { %v384_v52 = vadd.f32 %v379_v63, %v344_v58  ;;  %v255_v20 = vmul.f32 %v241_v25, %v712_v29  ;;  %v345_v21 = vmul.f32 %v340_v0, %v241_v25  ;;  %v309_v47 = vadd.f32 %v280_v26, %v259_v7 }
  0x9c   : > { %v366_v39 = vpop.permute.xlu1 %365 }
  0x9d   : > { %v380_v12 = vmul.f32 %v366_v39, %v335_v40  ;;  %v301_v39 = vmul.f32 0.6931472, %v634_v19  ;;  %v260_v27 = vsub.f32 %v225_v62, %v255_v20  ;;  %v389_v42 = vmul.f32 %v384_v52, %v384_v52 }
  0x9e   : > { %v246_v54 = vpop.permute.xlu0 %245 }
  0x9f   : > { %v256_v23 = vmul.f32 %v246_v54, %v715_v31  ;;  %v385_v28 = vadd.f32 %v380_v12, %v345_v21  ;;  %v346_v30 = vmul.f32 %v341_v13, %v246_v54  ;;  %v307_v46 = vsel %vm808_vm10, %v304_v8, %v301_v39 }
  0xa0   : > { %v371_v4 = vpop.permute.xlu1 %370  ;;  %v310_v56 = vadd.f32 %v289_v44, %v260_v27 }
  0xa1   : > { %v381_v22 = vmul.f32 %v371_v4, %v336_v55  ;;  %v261_v38 = vsub.f32 %v226_v2, %v256_v23  ;;  %v390_v62 = vmul.f32 %v385_v28, %v385_v28  ;;  %v660_v55 = vmov 0.0  }
  0xa2   : > { %v251_v15 = vpop.permute.xlu0 %250  ;;  %v571_v31 = vsel %vm443_vm9, 1.0, %v660_v55 }
  0xa3   : > { %v257_v35 = vmul.f32 %v251_v15, %v718_v34  ;;  %v347_v36 = vmul.f32 %v342_v16, %v251_v15  ;;  %v386_v59 = vadd.f32 %v381_v22, %v346_v30  ;;  %v311_v61 = vadd.f32 %v298_v45, %v261_v38 }
  0xa4   : > { %v376_v24 = vpop.permute.xlu1 %375 }
  0xa5   : > { %v382_v32 = vmul.f32 %v376_v24, %v337_v1  ;;  %v262_v54 = vsub.f32 %v227_v5, %v257_v35  ;;  %v391_v53 = vmul.f32 %v386_v59, %v386_v59 }
  0xa6   : > { %v411_v25 = vpop.permute.xlu0 %410 }
  0xa7   : > { %v433_v40 = vmul.f32 %v411_v25, %v388_v33  ;;  %v387_v41 = vadd.f32 %v382_v32, %v347_v36  ;;  %v312_v4 = vadd.f32 %v307_v46, %v262_v54 }
  0xa8   : > { %v416_v43 = vpop.permute.xlu1 %415 }
  0xa9   : > { %v446_v48 = vmul.f32 %v433_v40, %v308_v37  ;;  %v434_v29 = vmul.f32 %v416_v43, %v389_v42  ;;  %v392_v63 = vmul.f32 %v387_v41, %v387_v41 }
  0xaa   : > { %v421_v2 = vpop.permute.xlu0 %420 }
  0xab   : > { %v447_v50 = vmul.f32 %v434_v29, %v309_v47  ;;  %v435_v49 = vmul.f32 %v421_v2, %v390_v62  ;;  %v451_v0 = vmul.f32 %v571_v31, %v446_v48 }
  0xac   : > { %v426_v60 = vpop.permute.xlu1 %425 }
  0xad   : > { %v452_v1 = vmul.f32 %v571_v31, %v447_v50  ;;  %v448_v3 = vmul.f32 %v435_v49, %v310_v56  ;;  %v436_v34 = vmul.f32 %v426_v60, %v391_v53 }
  0xae   : > { %v431_v5 = vpop.permute.xlu0 %430 }
  0xaf   : > { %v456_v6 = vadd.f32 %v452_v1, %v451_v0  ;;  %v453_v9 = vmul.f32 %v571_v31, %v448_v3  ;;  %v449_v51 = vmul.f32 %v436_v34, %v311_v61  ;;  %v437_v11 = vmul.f32 %v431_v5, %v392_v63 }
  0xb1   : > { %v454_v58 = vmul.f32 %v571_v31, %v449_v51  ;;  %v450_v10 = vmul.f32 %v437_v11, %v312_v4  ;;  %v457_v8 = vadd.f32 %v456_v6, %v453_v9 }
  0xb3   : > { %v455_v12 = vmul.f32 %v571_v31, %v450_v10  ;;  %v458_v13 = vadd.f32 %v457_v8, %v454_v58 }
  0xb5   : > { %v460_v14 = vsel %vm459_vm11, %v455_v12, 0.0 }
  0xb6   : > { %v461_v15 = vadd.f32 %v460_v14, %v458_v13 }
  0xb8   : > { %462 = vadd.xlane.f32.xlu1 %v461_v15 }
 0x145   : > { %v463_v16 = vpop.xlane.xlu1 %462 }
 0x146   : > { %v464_v17 = vrot.slane %v463_v16, 4 }
 0x148   : > { %v465_v18 = vadd.f32 %v464_v17, %v463_v16 }
 0x14a   : > { %v466_v19 = vrot.slane %v465_v18, 2 }
 0x14c   : > { %v467_v52 = vadd.f32 %v466_v19, %v465_v18 }
 0x14e   : > { %v468_v20 = vrot.slane %v467_v52, 1 }
 0x150   : > { %v469_v21 = vadd.f32 %v468_v20, %v467_v52 }
 0x152   : > { %575 = vpush %v469_v21 }
 0x183   : > { %s576_s24 = spop %575 }
 0x184   : > { %v471_v22 = vstv %s576_s24 }
 0x185   : > { %473 = vst [vmem:[%s192_s23] sm:$0xff] %v471_v22 }
 0x186 PF: > { %s12_s11 = sadd.s32 1, %s657_s11   ;;  %s866_s9 = smov %s653_s10 }
 0x187   : > { %p9_p5 = scmp.ge.s32.totalorder %s12_s11, 4   ;;  %s867_s10 = smov %s869_s12 }
 0x189   :  { %11 = sbr.rel (!%p9_p5) target bundleno = 2 (0x2), region = 61 }

// kernel: _loss.5
= control target key start
LH: loop header
LB: loop body
LE: loop exit
PB: predicated region body
PF: predicated region fallthrough
CT: control target
= control target key end

     0   :  { %s504_s9 = smov 0   ;;  %s506_s10 = smov 0   ;;  %s552_s0 = inlined_call_operand.vmem [shape: f32[2,8,256], index: 0, kind: input, shape index: {}]   ;;  %s553_s1 = inlined_call_operand.vmem [shape: s32[2,1,256], index: 1, kind: input, shape index: {}]   ;;  %s554_s2 = inlined_call_operand.vmem [shape: f32[2,1,8,128], index: 2, kind: output, shape index: {}]  }
   0x1   :  { %s508_s11 = smov 0  }
   0x2 LB: > { %s24_s12 = sadd.s32 1, %s482_s10  ;;  %p421_p0 = scmp.ge.s32.totalorder %s486_s11, 1  ;;  %s486_s11 = sphi %s508_s11, %s12_s11   ;;  %s482_s10 = sphi %s506_s10, %s556_s10   ;;  %s478_s9 = sphi %s504_s9, %s555_s9  }
   0x3   : > { %p26_p1 = scmp.ge.s32.totalorder %s24_s12, 2  ;;  %p149_p2 = scmp.lt.s32.totalorder %s486_s11, 3 }
   0x5   : > { %s558_s12 = smov (%p26_p1, %s24_s12), 0  ;;  %p150_p3 = pnand %p421_p0, %p149_p2 }
   0x6   : > { %p186_p4 = scmp.lt.s32.totalorder (!%p150_p3), %s478_s9, 1  ;;  %v250_v12 = vlaneseq (!%p150_p3)  ;;  %v488_v51 = vmov (!%p150_p3), 1966171168   ;;  %vm309_vm3 = vcmask (!%p150_p3), 1040384  }
   0x7   : > { %153 = sbr.rel (%p150_p3) target bundleno = 293 (0x125), region = 28  ;;  %v283_v52 = vunpack.c.l.s4 (!%p150_p3), %v488_v51 }
   0x8   : > { %v529_v17 = vshrl.u32 (!%p150_p3), %v250_v12, 7 }
   0x9   : > { %v284_v59 = vunpack.c.0.s8 (!%p150_p3), %v283_v52 }
   0xa   : > { %v254_v20 = vsub.s32 (!%p150_p3), 0, %v529_v17  ;;  %v258_v22 = vsub.s32 (!%p150_p3), 1, %v529_v17 }
   0xe   : > { %s560_s9 = smov (!%p186_p4, %s478_s9), 1 }
   0xf   : > { %s428_s13 = sshll.u32 %s560_s9, 4  ;;  %s424_s17 = sshll.u32 %s560_s9, 1 }
  0x10   : > { %s193_s16 = scalar_lea.vmem %s552_s0, %s428_s13  ;;  %s202_s20 = scalar_lea.vmem %s553_s1, %s424_s17 }
  0x11   : > { %v211_v0 = vld [vmem:[%s193_s16] sm:$0xff]  ;;  %v212_v1 = vld [vmem:[%s193_s16 + $0x8] sm:$0xff]  ;;  %s425_s21 = sshll.u32 %s560_s9, 3 }
  0x12   : > { %v214_v2 = vrot.slane %v211_v0, 4  ;;  %v220_v3 = vrot.slane %v212_v1, 4  ;;  %v213_v21 = vld [vmem:[%s202_s20] sm:$0x3]  ;;  %s210_s24 = scalar_lea.vmem %s554_s2, %s425_s21 }
  0x13   : > { %v255_v23 = vrot.slane %v213_v21, %v254_v20  ;;  %v259_v24 = vrot.slane %v213_v21, %v258_v22  ;;  %vm276_vm2 = vcmp.ge.s32.totalorder %v213_v21, 0 }
  0x14   : > { %v215_v4 = vmax.f32 %v211_v0, %v214_v2  ;;  %v221_v5 = vmax.f32 %v212_v1, %v220_v3 }
  0x15   : > { %vm260_vm0 = vcmp.eq.s32.totalorder %v529_v17, %v255_v23  ;;  %vm261_vm1 = vcmp.eq.s32.totalorder %v529_v17, %v259_v24 }
  0x16   : > { %v216_v6 = vrot.slane %v215_v4, 2  ;;  %v222_v7 = vrot.slane %v221_v5, 2  ;;  %v262_v28 = vsel %vm260_vm0, %v211_v0, 0.0  ;;  %v263_v30 = vsel %vm261_vm1, %v212_v1, 0.0 }
  0x17   : > { %v264_v33 = vrot.slane %v262_v28, 4  ;;  %v270_v35 = vrot.slane %v263_v30, 4 }
  0x18   : > { %v217_v8 = vmax.f32 %v215_v4, %v216_v6  ;;  %v223_v9 = vmax.f32 %v221_v5, %v222_v7 }
  0x19   : > { %v265_v39 = vadd.f32 %v264_v33, %v262_v28  ;;  %v271_v41 = vadd.f32 %v270_v35, %v263_v30 }
  0x1a   : > { %v218_v10 = vrot.slane %v217_v8, 1  ;;  %v224_v11 = vrot.slane %v223_v9, 1 }
  0x1b   : > { %v266_v45 = vrot.slane %v265_v39, 2  ;;  %v272_v46 = vrot.slane %v271_v41, 2 }
  0x1c   : > { %v219_v13 = vmax.f32 %v217_v8, %v218_v10  ;;  %v225_v14 = vmax.f32 %v223_v9, %v224_v11 }
  0x1d   : > { %v267_v47 = vadd.f32 %v266_v45, %v265_v39  ;;  %v273_v48 = vadd.f32 %v272_v46, %v271_v41 }
  0x1e   : > { %v226_v15 = vsub.f32 %v211_v0, %v219_v13  ;;  %v227_v16 = vsub.f32 %v212_v1, %v225_v14  ;;  %v287_v0 = vsub.s32 %v284_v59, %v529_v17 }
  0x1f   : > { %v268_v49 = vrot.slane %v267_v47, 1  ;;  %v274_v50 = vrot.slane %v273_v48, 1 }
  0x20   : > { %v228_v18 = vmul.f32 1.442695, %v226_v15  ;;  %v230_v19 = vmul.f32 1.442695, %v227_v16 }
  0x21   : > { %v269_v56 = vadd.f32 %v268_v49, %v267_v47  ;;  %v275_v58 = vadd.f32 %v274_v50, %v273_v48 }
  0x22   : > { %456 = vpow2.f32 %v228_v18 }
  0x23   : > { %458 = vpow2.f32 %v230_v19 }
  0x2c   : > { %v457_v25 = vpop.eup %456 }
  0x2d   : > { %v459_v26 = vpop.eup %458  ;;  %v232_v27 = vrot.slane %v457_v25, 4 }
  0x2e   : > { %v238_v29 = vrot.slane %v459_v26, 4 }
  0x2f   : > { %v233_v31 = vadd.f32 %v457_v25, %v232_v27 }
  0x30   : > { %v239_v32 = vadd.f32 %v459_v26, %v238_v29 }
  0x31   : > { %v234_v34 = vrot.slane %v233_v31, 2 }
  0x32   : > { %v240_v36 = vrot.slane %v239_v32, 2 }
  0x33   : > { %v235_v37 = vadd.f32 %v234_v34, %v233_v31 }
  0x34   : > { %v241_v38 = vadd.f32 %v240_v36, %v239_v32 }
  0x35   : > { %v236_v40 = vrot.slane %v235_v37, 1 }
  0x36   : > { %v242_v42 = vrot.slane %v241_v38, 1 }
  0x37   : > { %v237_v43 = vadd.f32 %v236_v40, %v235_v37 }
  0x38   : > { %v243_v44 = vadd.f32 %v242_v42, %v241_v38 }
  0x39   : > { %460 = vlog2.f32 %v237_v43 }
  0x3a   : > { %462 = vlog2.f32 %v243_v44 }
  0x43   : > { %v461_v53 = vpop.eup %460 }
  0x44   : > { %v463_v54 = vpop.eup %462  ;;  %v245_v55 = vmul.f32 0.6931472, %v461_v53 }
  0x45   : > { %v247_v57 = vmul.f32 0.6931472, %v463_v54 }
  0x46   : > { %v248_v60 = vadd.f32 %v245_v55, %v219_v13 }
  0x47   : > { %v249_v61 = vadd.f32 %v247_v57, %v225_v14 }
  0x48   : > { %v277_v62 = vsub.f32 %v248_v60, %v269_v56 }
  0x49   : > { %v278_v63 = vsub.f32 %v249_v61, %v275_v58 }
  0x4b   : > { %v281_v1 = vcombine.low %v277_v62, %v278_v63 }
  0x4d   : > { %v288_v2 = vrot.slane %v281_v1, %v287_v0 }
  0x4f   : > { %v295_v3 = vrot.slane %v288_v2, %v287_v0 }
  0x51   : > { %v297_v4 = vsel %vm276_vm2, %v295_v3, 0.0 }
  0x52   : > { %v302_v5 = vrot.slane %v297_v4, %v254_v20  ;;  %v306_v6 = vrot.slane %v297_v4, %v258_v22 }
  0x54   : > { %v310_v7 = vsel %vm309_vm3, %v302_v5, 0.0  ;;  %v311_v8 = vsel %vm309_vm3, %v306_v6, 0.0 }
  0x55   : > { %v312_v9 = vadd.f32 %v311_v8, %v310_v7 }
  0x57   : > { %313 = vadd.xlane.f32.xlu0 %v312_v9 }
  0xe4   : > { %v314_v10 = vpop.xlane.xlu0 %313 }
  0xe5   : > { %v315_v11 = vrot.slane %v314_v10, 4 }
  0xe7   : > { %v316_v12 = vadd.f32 %v315_v11, %v314_v10 }
  0xe9   : > { %v317_v13 = vrot.slane %v316_v12, 2 }
  0xeb   : > { %v318_v14 = vadd.f32 %v317_v13, %v316_v12 }
  0xed   : > { %v319_v15 = vrot.slane %v318_v14, 1 }
  0xef   : > { %v320_v16 = vadd.f32 %v319_v15, %v318_v14 }
  0xf1   : > { %429 = vpush %v320_v16 }
 0x122   : > { %s430_s25 = spop %429 }
 0x123   : > { %v322_v17 = vstv %s430_s25 }
 0x124   : > { %324 = vst [vmem:[%s210_s24] sm:$0xff] %v322_v17 }
 0x125 PF: > { %s12_s11 = sadd.s32 1, %s486_s11   ;;  %s555_s9 = smov %s482_s10 }
 0x126   : > { %p9_p5 = scmp.ge.s32.totalorder %s12_s11, 4   ;;  %s556_s10 = smov %s558_s12 }
 0x128   :  { %11 = sbr.rel (!%p9_p5) target bundleno = 2 (0x2), region = 61 }

// kernel: _loss.9
= control target key start
LH: loop header
LB: loop body
LE: loop exit
PB: predicated region body
PF: predicated region fallthrough
CT: control target
= control target key end

     0   :  { %s486_s15 = smov 0   ;;  %s522_s0 = inlined_call_operand.vmem [shape: f32[2,8,8], index: 0, kind: input, shape index: {}]   ;;  %s523_s1 = inlined_call_operand.vmem [shape: f32[2,16,16], index: 1, kind: input, shape index: {}]   ;;  %s524_s2 = inlined_call_operand.vmem [shape: bf16[16,8], index: 2, kind: input, shape index: {}]   ;;  %s525_s3 = inlined_call_operand.vmem [shape: bf16[8,16], index: 3, kind: input, shape index: {}]   ;;  %s526_s4 = inlined_call_operand.vmem [shape: f32[2,8,128], index: 4, kind: output, shape index: {}]  }
   0x1 LB: > { %s407_s16 = sadd.s32 4294967295, %s457_s15   ;;  %p411_p0 = scmp.ge.s32.totalorder %s457_s15, 1  ;;  %s457_s15 = sphi %s486_s15, %s14_s15  }
   0x2   : > { %p171_p1 = scmp.lt.s32.totalorder %s457_s15, 3 }
   0x4   : > { %p172_p2 = pnand %p411_p0, %p171_p1 }
   0x5   : > { %v216_v0 = vld [vmem:[%s525_s3] sm:$0xf] (!%p172_p2)  ;;  %vm221_vm0 = vcmask (!%p172_p2), 1043456   ;;  %p200_p3 = scmp.lt.s32.totalorder (!%p172_p2), %s407_s16, 1  ;;  %v459_v1 = vmov (!%p172_p2), 0.0   ;;  %vm460_vm1 = vmmov (!%p172_p2), 0  }
   0x6   : > { %175 = sbr.rel (%p172_p2) target bundleno = 664 (0x298), region = 36  ;;  %426 = vmatprep.subr.bf16.mxu0 (!%p172_p2), %v459_v1  ;;  %v223_v2 = vsel (!%p172_p2), %vm221_vm0, %v216_v0, 0  ;;  %428 = vmatprep.mubr.msk.bf16.mxu0 (!%p172_p2), %vm460_vm1, %v459_v1  ;;  %vm217_vm2 = vcmask (!%p172_p2), 64512   ;;  %v450_v11 = vld [vmem:[%s524_s2] sm:$0xff] (!%p172_p2)   ;;  %vm326_vm3 = vcmask (!%p172_p2), 130048  }
   0x7   : > { %427 = vmatpush3.bf16.msra.mxu0 (!%p172_p2), %v223_v2  ;;  %432 = vmatprep.subr.bf16.mxu1 (!%p172_p2), %v459_v1 }
   0x8   : > { %434 = vmatprep.mubr.msk.bf16.mxu1 (!%p172_p2), %vm460_vm1, %v459_v1 }
   0xd   : > { %s528_s16 = smov (!%p200_p3, %s407_s16), 1 }
   0xe   : > { %s412_s19 = sshll.u32 %s528_s16, 3  ;;  %s421_s25 = sshll.u32 %s528_s16, 4 }
   0xf   : > { %s203_s22 = scalar_lea.vmem %s522_s0, %s412_s19  ;;  %s208_s28 = scalar_lea.vmem %s523_s1, %s421_s25 }
  0x10   : > { %v214_v3 = vld [vmem:[%s203_s22] sm:$0xff]  ;;  %v321_v14 = vld [vmem:[%s208_s28 + $0x8] sm:$0xff]  ;;  %s212_s5 = scalar_lea.vmem %s526_s4, %s412_s19 }
  0x11   : > { %v215_v4 = vpack.c.bf16 %v214_v3, %v214_v3  ;;  %v320_v12 = vld [vmem:[%s208_s28] sm:$0xff] }
  0x13   : > { %429 = vmatmul.mubr.msk.bf16.vlgmr.msra.gmra.mrb[0].mxu0 %vm217_vm2, %v215_v4 }
  0xe6   : > { %v259_v5 = vpop.f32.mrb[0].mxu0 }
  0xe7   : > { %v267_v6 = vpack.c.bf16 %v259_v5, %v259_v5  ;;  %v430_v7 = vpop.f32.mrb[1].mxu0 }
  0xe8   : > { %v262_v8 = vpop.f32.mrb[2].mxu0 }
  0xe9   : > { %v431_v9 = vpop.f32.mrb[3].mxu0  ;;  %v277_v10 = vsel %vm221_vm0, %v267_v6, 0 }
  0xea   : > { %433 = vmatpush3.bf16.msra.mxu1 %v277_v10 }
  0xed   : > { %435 = vmatmul.mubr.msk.bf16.vlgmr.msra.gmra.mrb[0].mxu1 %vm217_vm2, %v450_v11 }
 0x1c0   : > { %v313_v13 = vpop.f32.mrb[0].mxu1 }
 0x1c1   : > { %v322_v15 = vsub.f32 %v313_v13, %v320_v12  ;;  %v436_v16 = vpop.f32.mrb[1].mxu1 }
 0x1c2   : > { %v316_v17 = vpop.f32.mrb[2].mxu1 }
 0x1c3   : > { %v324_v18 = vand.u32 2147483647, %v322_v15  ;;  %v323_v19 = vsub.f32 %v316_v17, %v321_v14  ;;  %v437_v20 = vpop.f32.mrb[3].mxu1 }
 0x1c5   : > { %v325_v21 = vand.u32 2147483647, %v323_v19  ;;  %v327_v22 = vsel %vm326_vm3, %v324_v18, 0.0 }
 0x1c7   : > { %v328_v23 = vsel %vm326_vm3, %v325_v21, 0.0 }
 0x1c8   : > { %v329_v24 = vadd.f32 %v328_v23, %v327_v22 }
 0x1ca   : > { %330 = vadd.xlane.f32.xlu0 %v329_v24 }
 0x257   : > { %v331_v25 = vpop.xlane.xlu0 %330 }
 0x258   : > { %v332_v26 = vrot.slane %v331_v25, 4 }
 0x25a   : > { %v333_v27 = vadd.f32 %v332_v26, %v331_v25 }
 0x25c   : > { %v334_v28 = vrot.slane %v333_v27, 2 }
 0x25e   : > { %v335_v29 = vadd.f32 %v334_v28, %v333_v27 }
 0x260   : > { %v336_v30 = vrot.slane %v335_v29, 1 }
 0x262   : > { %v337_v31 = vadd.f32 %v336_v30, %v335_v29 }
 0x264   : > { %438 = vpush %v337_v31 }
 0x295   : > { %s439_s6 = spop %438 }
 0x296   : > { %v339_v32 = vstv %s439_s6 }
 0x297   : > { %341 = vst [vmem:[%s212_s5] sm:$0xff] %v339_v32 }
 0x298 PF: > { %s14_s15 = sadd.s32 1, %s457_s15  }
 0x299   : > { %p11_p4 = scmp.ge.s32.totalorder %s14_s15, 4  }
 0x29b   :  { %13 = sbr.rel (!%p11_p4) target bundleno = 1 (0x1), region = 69 }

// kernel: _loss.8
= control target key start
LH: loop header
LB: loop body
LE: loop exit
PB: predicated region body
PF: predicated region fallthrough
CT: control target
= control target key end

     0   :  { %vm14_vm0 = vcmask 58368   ;;  %v85_v2 = vmov 0   ;;  %s123_s0 = inlined_call_operand.vmem [shape: f32[2,8], index: 0, kind: input, shape index: {}]   ;;  %s124_s1 = inlined_call_operand.vmem [shape: s32[2,1], index: 1, kind: input, shape index: {}]   ;;  %s125_s2 = inlined_call_operand.hbm [shape: f32[1], index: 2, kind: output, shape index: {}]  }
   0x1   :  { %v12_v0 = vld [vmem:[%s123_s0] sm:$0x3]  ;;  %68 = vset.pattern.permute.xlu0 %v85_v2 }
   0x2   :  { %v15_v1 = vsel %vm14_vm0, %v12_v0, -inf }
   0x3   :  { %7 = vsyncpa [#allocation3], 0  ;;  %16 = vmax.xlane.f32.xlu0 %v15_v1  ;;  %v13_v3 = vld [vmem:[%s124_s1] sm:$0x3]  ;;  %v27_v7 = vlaneseq  ;;  %vm38_vm2 = vcmask 1024   ;;  %s73_s14 = scalar_lea.hbm %s125_s2, 16 }
   0x4   :  { %p74_p0 = scmp.ne.s32.totalorder %s125_s2, %s73_s14  ;;  %p77_p1 = scmp.lt.u32.totalorder %s73_s14, %s125_s2 }
   0x5   :  { %v28_v8 = vand.u32 127, %v27_v7 }
   0x6   :  { %p79_p2 = pnand %p77_p1, %p74_p0 }
  0x19   :  { %30 = vperm.xlu0 %68, %v13_v3  }
  0x90   :  { %v17_v4 = vpop.xlane.xlu0 %16 }
  0x91   :  { %v18_v5 = vsub.f32 %v12_v0, %v17_v4 }
  0x93   :  { %v19_v6 = vmul.f32 1.442695, %v18_v5 }
  0x95   :  { %69 = vpow2.f32 %v19_v6 }
  0x98   :  { %v31_v9 = vpop.permute.xlu0 %30 }
  0x99   :  { %vm32_vm1 = vcmp.eq.s32.totalorder %v28_v8, %v31_v9 }
  0x9a   :  { %v33_v11 = vsel %vm32_vm1, %v12_v0, 0.0 }
  0x9b   :  { %v34_v13 = vsel %vm14_vm0, %v33_v11, 0.0 }
  0x9f   :  { %v70_v10 = vpop.eup %69 }
  0xa0   :  { %v21_v12 = vsel %vm14_vm0, %v70_v10, 0.0 }
  0xa1   :  { %22 = vadd.xlane.f32.xlu1 %v21_v12 }
  0xa5   :  { %35 = vadd.xlane.f32.xlu1 %v34_v13 }
 0x12e   :  { %v23_v14 = vpop.xlane.xlu1 %22 }
 0x12f   :  { %71 = vlog2.f32 %v23_v14 }
 0x132   :  { %v36_v17 = vpop.xlane.xlu1 %35 }
 0x139   :  { %v72_v15 = vpop.eup %71 }
 0x13a   :  { %v25_v16 = vmul.f32 0.6931472, %v72_v15 }
 0x13c   :  { %v26_v18 = vadd.f32 %v25_v16, %v17_v4 }
 0x13e   :  { %v37_v19 = vsub.f32 %v26_v18, %v36_v17 }
 0x140   :  { %v39_v20 = vsel %vm38_vm2, %v37_v19, 0.0 }
 0x141   :  { %40 = vadd.xlane.f32.xlu1 %v39_v20 }
 0x1ce   :  { %v41_v21 = vpop.xlane.xlu1 %40 }
 0x1cf   :  { %v42_v22 = vrot.slane %v41_v21, 4 }
 0x1d1   :  { %v43_v23 = vadd.f32 %v42_v22, %v41_v21 }
 0x1d3   :  { %v44_v24 = vrot.slane %v43_v23, 2 }
 0x1d5   :  { %v45_v25 = vadd.f32 %v44_v24, %v43_v23 }
 0x1d7   :  { %v46_v26 = vrot.slane %v45_v25, 1 }
 0x1d9   :  { %v47_v27 = vadd.f32 %v46_v26, %v45_v25 }
 0x1db   :  { %64 = vpush %v47_v27 }
 0x20c   :  { %s65_s0 = spop %64 }
 0x20d   :  { %50 = sst [smem:[#allocation2]] %s65_s0 }
 0x20e   :  { %82 = shalt.err (!%p79_p2)
}
 0x20f   :  { %s86_s19 = smov [#allocation2]  }
 0x210   :  { %58 = dma.smem_to_hbm %s86_s19, 16, %s125_s2, [#allocation3]  }
 0x211   :  { %83 = dma.done.wait [#allocation3], 16  }
 0x212   :  { %84 = vsyncadd [#allocation3], 4294967280 }
 0x213   :  { %62 = sfence }
 0x214   :  { %63 = vsyncpa [#allocation3], 1 }

// kernel: _loss.7
= control target key start
LH: loop header
LB: loop body
LE: loop exit
PB: predicated region body
PF: predicated region fallthrough
CT: control target
= control target key end

     0   :  { %s3027_s0 = inlined_call_operand.vmem [shape: f32[2,36,1,128], index: 0, kind: input, shape index: {}]   ;;  %s3028_s1 = inlined_call_operand.vmem [shape: f32[24], index: 1, kind: input, shape index: {}]   ;;  %s3029_s2 = inlined_call_operand.vmem [shape: f32[2,1,8,128], index: 2, kind: output, shape index: {0}]   ;;  %s3030_s3 = inlined_call_operand.vmem [shape: f32[2,1,8,128], index: 3, kind: output, shape index: {1}]  }
   0x1   :  { %3036 = sst [smem:[#allocation9_spill]] %s3027_s0 }
   0x2   :  { %3037 = sst [smem:[#allocation10_spill]] %s3028_s1 }
   0x3   :  { %9 = vsyncpa [#allocation3], 0  ;;  %s1788_s12 = smov 0   ;;  %s1790_s13 = smov 0  }
   0x4   :  { %s1792_s14 = smov 0  }
   0x5 LB: > { %3038 = sst [smem:[#allocation5_spill]] %s1760_s13  ;;  %s1532_s15 = sadd.s32 4294967295, %s1764_s14   ;;  %s1764_s14 = sphi %s1792_s14, %s15_s14   ;;  %s1760_s13 = sphi %s1790_s13, %s3116_s13   ;;  %s1756_s12 = sphi %s1788_s12, %s3115_s12  }
   0x6   : > { %s27_s16 = sadd.s32 1, %s1760_s13  ;;  %p1534_p1 = scmp.ge.s32.totalorder %s1764_s14, 1 }
   0x7   : > { %p29_p0 = scmp.ge.s32.totalorder %s27_s16, 2  ;;  %p137_p2 = scmp.lt.s32.totalorder %s1764_s14, 3 }
   0x8   : > { %p1813_p4 = scmp.eq.s32.totalorder %s1532_s15, 0  ;;  %s3042_s1 = sld [smem:[#allocation10_spill]] }
   0x9   : > { %s3118_s16 = smov (%p29_p0, %s27_s16), 0  ;;  %p1809_p3 = pnand %p1534_p1, %p137_p2 }
   0xa   : > { %3039 = sst [smem:[#allocation6_spill]] %s3118_s16 }
   0xb   : > { %p1637_p5 = pneg %p1809_p3 }
   0xd   : > { %p1638_p6 = pnand %p1813_p4, %p1637_p5 }
   0xe   : > { %s150_s21 = sshll.u32 %s3042_s1, 4  ;;  %s151_s21 = int_to_ptr.vmem [resolvable:$true] %s150_s21 }
   0xf   : > { %s1723_s22 = scalar_lea.vmem %s151_s21, 16  ;;  %p1725_p8 = pneg %p1638_p6 }
  0x10   : > { %p1724_p7 = scmp.ne.s32.totalorder %s151_s21, %s1723_s22  ;;  %p1731_p11 = scmp.lt.s32.totalorder %s151_s21, %s151_s21 }
  0x11   : > { %p1732_p12 = scmp.lt.s32.totalorder %s1723_s22, %s1723_s22 }
  0x12   : > { %p1726_p9 = pnand %p1725_p8, %p1724_p7 }
  0x13   : > { %p1733_p13 = por %p1732_p12, %p1731_p11 }
  0x14   : > { %p1727_p10 = pneg %p1726_p9 }
  0x16   : > { %p1734_p0 = pnand %p1733_p13, %p1727_p10 }
  0x18   : > { %1737 = shalt.err (!%p1734_p0)
}
  0x19   : > { %s1766_s23 = smov [#allocation2]   ;;  %173 = sbr.rel (%p1809_p3) target bundleno = 499 (0x1f3), region = 28 }
  0x1a   : > { %1640 = dma.vmem_to_smem (!%p1638_p6), %s151_s21, 16, %s1766_s23, [#allocation3]  }
  0x20   : > { %1751 = dma.done.wait (%p1813_p4), [#allocation3], 16  }
  0x21   : > { %1753 = vsyncadd (%p1813_p4), [#allocation3], 4294967280 }
  0x22   : > { %179 = sfence }
  0x23   : > { %p209_p1 = scmp.lt.s32.totalorder %s1756_s12, 1  ;;  %s1832_s24 = smul.u32 12, %s1756_s12  ;;  %vm415_vm3 = vcmask 1040384  }
  0x24   : > { %s3043_s0 = sld [smem:[#allocation9_spill]] }
  0x25   : > { %s3120_s12 = smov (!%p209_p1, %s1756_s12), 1  ;;  %s1838_s25 = sld [smem:[#allocation2 + %s1832_s24]] }
  0x26   : > { %s271_s26 = sadd.s32 1, %s1832_s24  ;;  %s1596_s27 = smul.u32 36, %s3120_s12 }
  0x27   : > { %s1842_s28 = sld [smem:[#allocation2 + %s271_s26]]  ;;  %s273_s29 = sadd.s32 2, %s1832_s24 }
  0x28   : > { %s275_s30 = sadd.s32 3, %s1832_s24  ;;  %s1851_s7 = sld [smem:[#allocation2 + %s273_s29]] }
  0x29   : > { %s1865_s8 = sld [smem:[#allocation2 + %s275_s30]]  ;;  %s1591_s9 = sadd.s32 4, %s1832_s24 }
  0x2a   : > { %s1849_s6 = scalar_lea.vmem %s3043_s0, %s1596_s27  ;;  %s1876_s10 = sld [smem:[#allocation2 + %s1591_s9]] }
  0x2b   : > { %v1854_v0 = vld [vmem:[%s1849_s6 + $0x4] sm:$0x1]  ;;  %v1857_v1 = vld [vmem:[%s1849_s6 + $0x5] sm:$0x1]  ;;  %v1860_v2 = vld [vmem:[%s1849_s6 + $0x6] sm:$0x1]  ;;  %v1874_v6 = vstv %s1838_s25 }
  0x2c   : > { %v1863_v3 = vld [vmem:[%s1849_s6 + $0x7] sm:$0x1]  ;;  %v438_v4 = vsub.f32 %v1860_v2, %v1854_v0  ;;  %v1871_v5 = vld [vmem:[%s1849_s6] sm:$0x1]  ;;  %s309_s11 = sadd.s32 1, %s1591_s9  ;;  %s311_s17 = sadd.s32 2, %s1591_s9  ;;  %v441_v11 = vmax.f32 %v1854_v0, %v1874_v6 }
  0x2d   : > { %v439_v7 = vsub.f32 %v1863_v3, %v1857_v1  ;;  %v1881_v8 = vld [vmem:[%s1849_s6 + $0x1] sm:$0x1]  ;;  %v1884_v9 = vld [vmem:[%s1849_s6 + $0x2] sm:$0x1]  ;;  %v1887_v10 = vstv %s1842_s28  ;;  %s1889_s15 = sld [smem:[#allocation2 + %s309_s11]]  ;;  %v278_v14 = vmax.f32 %v1871_v5, %v1874_v6  ;;  %s313_s19 = sadd.s32 3, %s1591_s9 }
  0x2e   : > { %v1894_v12 = vld [vmem:[%s1849_s6 + $0x3] sm:$0x1]  ;;  %v266_v13 = vsub.f32 %v1884_v9, %v1871_v5  ;;  %v1901_v15 = vld [vmem:[%s1849_s6 + $0x8] sm:$0x1]  ;;  %s1903_s18 = sld [smem:[#allocation2 + %s311_s17]]  ;;  %v442_v17 = vmax.f32 %v1857_v1, %v1887_v10  ;;  %v280_v19 = vmax.f32 %v1881_v8, %v1887_v10  ;;  %v1920_v22 = vstv %s1851_s7  ;;  %s290_s20 = ssub.f32 %s1851_s7, %s1838_s25 }
  0x2f   : > { %v1905_v16 = vmul.f32 %v439_v7, %v438_v4  ;;  %v267_v18 = vsub.f32 %v1894_v12, %v1881_v8  ;;  %v1914_v20 = vld [vmem:[%s1849_s6 + $0x9] sm:$0x1]  ;;  %v1917_v21 = vld [vmem:[%s1849_s6 + $0xa] sm:$0x1]  ;;  %s1924_s21 = sld [smem:[#allocation2 + %s313_s19]]  ;;  %v561_v25 = vmax.f32 %v1901_v15, %v1874_v6  ;;  %s1939_s22 = sadd.s32 8, %s1832_s24  ;;  %v443_v28 = vmin.f32 %v1860_v2, %v1920_v22 }
  0x30   : > { %3044 = vst [vmem:[#allocation7_spill] sm:$0xff] %v1917_v21  ;;  %v1927_v23 = vld [vmem:[%s1849_s6 + $0xb] sm:$0x1]  ;;  %v558_v24 = vsub.f32 %v1917_v21, %v1901_v15  ;;  %v562_v26 = vmax.f32 %v1914_v20, %v1887_v10  ;;  %v1936_v27 = vld [vmem:[%s1849_s6 + $0xc] sm:$0x1]  ;;  %v282_v30 = vmin.f32 %v1884_v9, %v1920_v22  ;;  %v1953_v33 = vstv %s1865_s8  ;;  %s291_s23 = ssub.f32 %s1865_s8, %s1842_s28  ;;  %s1958_s24 = sld [smem:[#allocation2 + %s1939_s22]] }
  0x31   : > { %3045 = vst [vmem:[#allocation8_spill] sm:$0xff] %v1927_v23  ;;  %v1943_v29 = vmul.f32 %v267_v18, %v266_v13  ;;  %v559_v31 = vsub.f32 %v1927_v23, %v1914_v20  ;;  %v1950_v32 = vld [vmem:[%s1849_s6 + $0xe] sm:$0x1]  ;;  %v563_v34 = vmin.f32 %v1917_v21, %v1920_v22  ;;  %v1967_v37 = vstv %s1876_s10  ;;  %s346_s25 = sadd.s32 1, %s1939_s22  ;;  %s348_s26 = sadd.s32 2, %s1939_s22 }
  0x32   : > { %v444_v38 = vmin.f32 %v1863_v3, %v1953_v33  ;;  %v445_v39 = vsub.f32 %v443_v28, %v441_v11  ;;  %v284_v40 = vmin.f32 %v1894_v12, %v1953_v33  ;;  %s292_s27 = smul.f32 %s291_s23, %s290_s20  ;;  %s1978_s28 = sld [smem:[#allocation2 + %s346_s25]]  ;;  %v461_v42 = vmax.f32 %v1854_v0, %v1967_v37 }
  0x33   : > { %v1976_v41 = vstv %s1889_s15  ;;  %v285_v43 = vsub.f32 %v282_v30, %v278_v14  ;;  %v316_v44 = vmax.f32 %v1871_v5, %v1967_v37  ;;  %s1989_s30 = sld [smem:[#allocation2 + %s348_s26]]  ;;  %s350_s5 = sadd.s32 3, %s1939_s22 }
  0x34   : > { %v1985_v45 = vstv %s1903_s18  ;;  %s328_s29 = ssub.f32 %s1903_s18, %s1876_s10  ;;  %v446_v46 = vmax.f32 %v445_v39, 0.0  ;;  %v447_v47 = vsub.f32 %v444_v38, %v442_v17  ;;  %v462_v48 = vmax.f32 %v1857_v1, %v1976_v41  ;;  %s2003_s7 = sld [smem:[#allocation2 + %s350_s5]] }
  0x35   : > { %v1993_v49 = vstv %s292_s27  ;;  %v1996_v50 = vstv %s1924_s21  ;;  %s329_s4 = ssub.f32 %s1924_s21, %s1889_s15  ;;  %v463_v51 = vmin.f32 %v1860_v2, %v1985_v45  ;;  %v286_v52 = vmax.f32 %v285_v43, 0.0 }
  0x36   : > { %v448_v53 = vmax.f32 %v447_v47, 0.0  ;;  %v450_v54 = vadd.f32 %v1905_v16, %v1993_v49  ;;  %v464_v55 = vmin.f32 %v1863_v3, %v1996_v50  ;;  %v287_v56 = vsub.f32 %v284_v40, %v280_v19 }
  0x37   : > { %s330_s8 = smul.f32 %s329_s4, %s328_s29  ;;  %v2010_v57 = vstv %s1958_s24  ;;  %v465_v58 = vsub.f32 %v463_v51, %v461_v42  ;;  %v294_v59 = vadd.f32 %v1993_v49, %v1943_v29  ;;  %v318_v60 = vmax.f32 %v1881_v8, %v1976_v41 }
  0x38   : > { %v2016_v61 = vmul.f32 %v448_v53, %v446_v46  ;;  %v467_v62 = vsub.f32 %v464_v55, %v462_v48  ;;  %v481_v63 = vmax.f32 %v1854_v0, %v2010_v57  ;;  %v288_v4 = vmax.f32 %v287_v56, 0.0 }
  0x39   : > { %v2020_v7 = vstv %s330_s8  ;;  %v2023_v11 = vstv %s1978_s28  ;;  %v466_v13 = vmax.f32 %v465_v58, 0.0  ;;  %v320_v14 = vmin.f32 %v1884_v9, %v1985_v45  ;;  %s365_s9 = ssub.f32 %s1989_s30, %s1958_s24 }
  0x3a   : > { %v2028_v17 = vstv %s1989_s30  ;;  %v451_v18 = vsub.f32 %v450_v54, %v2016_v61  ;;  %v468_v19 = vmax.f32 %v467_v62, 0.0  ;;  %v470_v28 = vadd.f32 %v1905_v16, %v2020_v7  ;;  %s366_s10 = ssub.f32 %s2003_s7, %s1978_s28 }
  0x3b   : > { %v482_v30 = vmax.f32 %v1857_v1, %v2023_v11  ;;  %v483_v38 = vmin.f32 %v1860_v2, %v2028_v17  ;;  %v2039_v39 = vmul.f32 %v288_v4, %v286_v52  ;;  %v322_v40 = vmin.f32 %v1894_v12, %v1996_v50 }
  0x3c   : > { %v2044_v42 = vstv %s2003_s7  ;;  %v452_v43 = vadd.f32 1e-06, %v451_v18  ;;  %v2048_v46 = vmul.f32 %v468_v19, %v466_v13  ;;  %v323_v47 = vsub.f32 %v320_v14, %v316_v44  ;;  %s367_s11 = smul.f32 %s366_s10, %s365_s9 }
  0x3d   : > { %v484_v48 = vmin.f32 %v1863_v3, %v2044_v42  ;;  %v485_v51 = vsub.f32 %v483_v38, %v481_v63  ;;  %v295_v53 = vsub.f32 %v294_v59, %v2039_v39  ;;  %v325_v54 = vsub.f32 %v322_v40, %v318_v60 }
  0x3e   : > { %1669 = vrcp.f32 %v452_v43  ;;  %v471_v52 = vsub.f32 %v470_v28, %v2048_v46  ;;  %v324_v55 = vmax.f32 %v323_v47, 0.0  ;;  %v332_v56 = vadd.f32 %v2020_v7, %v1943_v29 }
  0x3f   : > { %v486_v58 = vmax.f32 %v485_v51, 0.0  ;;  %v487_v62 = vsub.f32 %v484_v48, %v482_v30  ;;  %v296_v4 = vadd.f32 1e-06, %v295_v53  ;;  %v326_v13 = vmax.f32 %v325_v54, 0.0 }
  0x40   : > { %v2056_v44 = vstv %s367_s11  ;;  %v472_v14 = vadd.f32 1e-06, %v471_v52  ;;  %v353_v63 = vmax.f32 %v1871_v5, %v2010_v57  ;;  %v355_v59 = vmax.f32 %v1881_v8, %v2023_v11 }
  0x41   : > { %v488_v60 = vmax.f32 %v487_v62, 0.0  ;;  %v490_v18 = vadd.f32 %v1905_v16, %v2056_v44  ;;  %1671 = vrcp.f32 %v296_v4  ;;  %v2064_v19 = vmul.f32 %v326_v13, %v324_v55 }
  0x42   : > { %1673 = vrcp.f32 %v472_v14  ;;  %v357_v28 = vmin.f32 %v1884_v9, %v2028_v17  ;;  %v359_v30 = vmin.f32 %v1894_v12, %v2044_v42  ;;  %v369_v38 = vadd.f32 %v2056_v44, %v1943_v29 }
  0x43   : > { %v2072_v40 = vmul.f32 %v488_v60, %v486_v58  ;;  %v333_v43 = vsub.f32 %v332_v56, %v2064_v19  ;;  %v560_v16 = vmul.f32 %v559_v31, %v558_v24  ;;  %v564_v47 = vmin.f32 %v1927_v23, %v1953_v33 }
  0x44   : > { %v360_v48 = vsub.f32 %v357_v28, %v353_v63  ;;  %v362_v51 = vsub.f32 %v359_v30, %v355_v59  ;;  %v565_v29 = vsub.f32 %v563_v34, %v561_v25  ;;  %v581_v53 = vmax.f32 %v1901_v15, %v1967_v37 }
  0x45   : > { %v491_v54 = vsub.f32 %v490_v18, %v2072_v40  ;;  %v334_v52 = vadd.f32 1e-06, %v333_v43  ;;  %v567_v24 = vsub.f32 %v564_v47, %v562_v26  ;;  %v570_v31 = vadd.f32 %v560_v16, %v1993_v49 }
  0x46   : > { %v361_v55 = vmax.f32 %v360_v48, 0.0  ;;  %v363_v56 = vmax.f32 %v362_v51, 0.0  ;;  %v566_v58 = vmax.f32 %v565_v29, 0.0  ;;  %v582_v62 = vmax.f32 %v1914_v20, %v1976_v41 }
  0x47   : > { %v492_v4 = vadd.f32 1e-06, %v491_v54  ;;  %1675 = vrcp.f32 %v334_v52  ;;  %v568_v25 = vmax.f32 %v567_v24, 0.0  ;;  %v583_v34 = vmin.f32 %v1917_v21, %v1985_v45 }
  0x48   : > { %v1670_v13 = vpop.eup %1669  ;;  %v2100_v14 = vmul.f32 %v363_v56, %v361_v55  ;;  %v584_v26 = vmin.f32 %v1927_v23, %v1996_v50  ;;  %v2105_v63 = vadd.f32 %v560_v16, %v2020_v7  ;;  %v601_v59 = vmax.f32 %v1901_v15, %v2010_v57 }
  0x49   : > { %v454_v60 = vmul.f32 %v1670_v13, %v2016_v61  ;;  %1677 = vrcp.f32 %v492_v4  ;;  %v2110_v18 = vmul.f32 %v568_v25, %v566_v58  ;;  %v585_v28 = vsub.f32 %v583_v34, %v581_v53 }
  0x4a   : > { %v370_v30 = vsub.f32 %v369_v38, %v2100_v14  ;;  %v587_v43 = vsub.f32 %v584_v26, %v582_v62  ;;  %v602_v47 = vmax.f32 %v1914_v20, %v2023_v11  ;;  %v603_v48 = vmin.f32 %v1917_v21, %v2028_v17 }
  0x4b   : > { %v1672_v51 = vpop.eup %1671  ;;  %vm455_vm0 = vcmp.gt.f32.partialorder %v454_v60, -1.0  ;;  %v571_v29 = vsub.f32 %v570_v31, %v2110_v18  ;;  %v586_v54 = vmax.f32 %v585_v28, 0.0  ;;  %v604_v61 = vmin.f32 %v1927_v23, %v2044_v42 }
  0x4c   : > { %v1674_v52 = vpop.eup %1673  ;;  %v456_v24 = vsel %vm455_vm0, %v454_v60, -1.0  ;;  %v457_v53 = vsel %vm455_vm0, %v1874_v6, 0.0  ;;  %v458_v38 = vsel %vm455_vm0, %v1887_v10, 0.0  ;;  %v459_v55 = vsel %vm455_vm0, %v1920_v22, 0.0 }
  0x4d   : > { %v460_v56 = vsel %vm455_vm0, %v1953_v33, 0.0  ;;  %v474_v58 = vmul.f32 %v1674_v52, %v2048_v46  ;;  %v298_v62 = vmul.f32 %v1672_v51, %v2039_v39  ;;  %v371_v4 = vadd.f32 1e-06, %v370_v30  ;;  %v2154_v51 = vld [vmem:[%s1849_s6 + $0xd] sm:$0x1] }
  0x4e   : > { %v572_v31 = vadd.f32 1e-06, %v571_v29  ;;  %v588_v25 = vmax.f32 %v587_v43, 0.0  ;;  %v605_v34 = vsub.f32 %v603_v48, %v601_v59  ;;  %v607_v13 = vsub.f32 %v604_v61, %v602_v47 }
  0x4f   : > { %vm2126_vm1 = vcmp.gt.f32.partialorder %v474_v58, %v456_v24  ;;  %vm299_vm2 = vcmp.gt.f32.partialorder %v298_v62, -1.0  ;;  %1679 = vrcp.f32 %v371_v4  ;;  %v2131_v60 = vadd.f32 %v560_v16, %v2056_v44 }
  0x50   : > { %v476_v46 = vsel %vm2126_vm1, %v474_v58, %v456_v24  ;;  %v477_v39 = vsel %vm2126_vm1, %v1967_v37, %v457_v53  ;;  %v478_v59 = vsel %vm2126_vm1, %v1976_v41, %v458_v38  ;;  %v479_v28 = vsel %vm2126_vm1, %v1985_v45, %v459_v55  ;;  %v2164_v24 = vld [vmem:[%s1849_s6 + $0xf] sm:$0x1] }
  0x51   : > { %v1676_v30 = vpop.eup %1675  ;;  %v480_v16 = vsel %vm2126_vm1, %v1996_v50, %v460_v56  ;;  %v300_v43 = vsel %vm299_vm2, %v298_v62, -1.0  ;;  %v2148_v47 = vsel %vm299_vm2, %v1874_v6, 0.0  ;;  %v2151_v48 = vsel %vm299_vm2, %v1887_v10, 0.0 }
  0x52   : > { %v2157_v29 = vsel %vm299_vm2, %v1920_v22, 0.0  ;;  %v2160_v61 = vsel %vm299_vm2, %v1953_v33, 0.0  ;;  %v336_v52 = vmul.f32 %v1676_v30, %v2064_v19  ;;  %1681 = vrcp.f32 %v572_v31 }
  0x53   : > { %v1678_v53 = vpop.eup %1677  ;;  %v2166_v38 = vmul.f32 %v588_v25, %v586_v54  ;;  %v606_v55 = vmax.f32 %v605_v34, 0.0  ;;  %v608_v56 = vmax.f32 %v607_v13, 0.0  ;;  %v679_v58 = vsub.f32 %v2164_v24, %v2154_v51 }
  0x54   : > { %v494_v62 = vmul.f32 %v1678_v53, %v2072_v40  ;;  %vm2171_vm4 = vcmp.gt.f32.partialorder %v336_v52, %v300_v43  ;;  %v3031_v19 = vmov 0.0  }
  0x55   : > { %v2181_v54 = vsel %vm2171_vm4, %v336_v52, %v300_v43  ;;  %v339_v25 = vsel %vm2171_vm4, %v1967_v37, %v2148_v47  ;;  %v340_v40 = vsel %vm2171_vm4, %v1976_v41, %v2151_v48  ;;  %v341_v34 = vsel %vm2171_vm4, %v1985_v45, %v2157_v29 }
  0x56   : > { %vm495_vm5 = vcmp.gt.f32.partialorder %v494_v62, %v476_v46  ;;  %v342_v13 = vsel %vm2171_vm4, %v1996_v50, %v2160_v61  ;;  %v591_v26 = vsub.f32 %v2105_v63, %v2166_v38  ;;  %v2201_v30 = vmul.f32 %v608_v56, %v606_v55 }
  0x57   : > { %v496_v43 = vsel %vm495_vm5, %v494_v62, %v476_v46  ;;  %v497_v47 = vsel %vm495_vm5, %v2010_v57, %v477_v39  ;;  %v498_v48 = vsel %vm495_vm5, %v2023_v11, %v478_v59  ;;  %v499_v52 = vsel %vm495_vm5, %v2028_v17, %v479_v28 }
  0x58   : > { %v500_v29 = vsel %vm495_vm5, %v2044_v42, %v480_v16  ;;  %vm501_vm6 = vcmp.gt.f32.partialorder %v496_v43, 0.5  ;;  %v504_v53 = vsub.f32 %v1854_v0, %v497_v47  ;;  %v511_v4 = vsub.f32 %v1857_v1, %v498_v48 }
  0x59   : > { %v1680_v61 = vpop.eup %1679  ;;  %v1548_v63 = vsel %vm501_vm6, 1.0, %v3031_v19  ;;  %v519_v55 = vsub.f32 %v1860_v2, %v499_v52  ;;  %v527_v46 = vsub.f32 %v1863_v3, %v500_v29  ;;  %v592_v39 = vadd.f32 1e-06, %v591_v26 }
  0x5a   : > { %v505_v56 = vand.u32 2147483647, %v504_v53  ;;  %v507_v59 = vmul.f32 0.5, %v504_v53  ;;  %v512_v62 = vand.u32 2147483647, %v511_v4  ;;  %v514_v28 = vmul.f32 0.5, %v511_v4 }
  0x5b   : > { %v520_v31 = vand.u32 2147483647, %v519_v55  ;;  %v522_v16 = vmul.f32 0.5, %v519_v55  ;;  %v528_v43 = vand.u32 2147483647, %v527_v46  ;;  %v530_v36 = vmul.f32 0.5, %v527_v46 }
  0x5c   : > { %v1682_v0 = vpop.eup %1681  ;;  %vm2212_vm7 = vcmp.lt.f32.partialorder %v505_v56, 1.0  ;;  %v508_v47 = vmul.f32 %v507_v59, %v504_v53  ;;  %v1549_v48 = vadd.f32 -0.5, %v505_v56  ;;  %vm513_vm8 = vcmp.lt.f32.partialorder %v512_v62, 1.0 }
  0x5d   : > { %v515_v2 = vmul.f32 %v514_v28, %v511_v4  ;;  %v1550_v52 = vadd.f32 -0.5, %v512_v62  ;;  %vm2216_vm9 = vcmp.lt.f32.partialorder %v520_v31, 1.0  ;;  %v523_v26 = vmul.f32 %v522_v16, %v519_v55 }
  0x5e   : > { %v510_v29 = vsel %vm2212_vm7, %v508_v47, %v1549_v48  ;;  %v1551_v19 = vadd.f32 -0.5, %v520_v31  ;;  %vm2222_vm10 = vcmp.lt.f32.partialorder %v528_v43, 1.0  ;;  %v531_v23 = vmul.f32 %v530_v36, %v527_v46 }
  0x5f   : > { %v517_v21 = vsel %vm513_vm8, %v515_v2, %v1550_v52  ;;  %v1552_v53 = vadd.f32 -0.5, %v528_v43  ;;  %v547_v56 = vsel %vm415_vm3, %v1548_v63, 0.0  ;;  %v373_v4 = vmul.f32 %v1680_v61, %v2100_v14 }
  0x60   : > { %v518_v59 = vadd.f32 %v517_v21, %v510_v29  ;;  %v525_v62 = vsel %vm2216_vm9, %v523_v26, %v1551_v19  ;;  %548 = vadd.xlane.f32.xlu1 %v547_v56  ;;  %v574_v55 = vmul.f32 %v1682_v0, %v2110_v18  ;;  %1683 = vrcp.f32 %v592_v39 }
  0x61   : > { %v533_v31 = vsel %vm2222_vm10, %v531_v23, %v1552_v53  ;;  %vm374_vm11 = vcmp.gt.f32.partialorder %v373_v4, %v2181_v54  ;;  %v611_v36 = vsub.f32 %v2131_v60, %v2201_v30  ;;  %v3056_v46 = vsub.f32 %v1950_v32, %v1936_v27 }
  0x62   : > { %v526_v21 = vadd.f32 %v525_v62, %v518_v59  ;;  %v375_v19 = vsel %vm374_vm11, %v373_v4, %v2181_v54  ;;  %v376_v61 = vsel %vm374_vm11, %v2010_v57, %v339_v25  ;;  %v377_v18 = vsel %vm374_vm11, %v2023_v11, %v340_v40 }
  0x63   : > { %v2239_v14 = vmul.f32 %v679_v58, %v3056_v46  ;;  %v378_v35 = vsel %vm374_vm11, %v2028_v17, %v341_v34  ;;  %v379_v23 = vsel %vm374_vm11, %v2044_v42, %v342_v13  ;;  %vm380_vm12 = vcmp.gt.f32.partialorder %v375_v19, 0.5 }
  0x64   : > { %v383_v39 = vsub.f32 %v1871_v5, %v376_v61  ;;  %v534_v60 = vadd.f32 %v533_v31, %v526_v21  ;;  %v3057_v28 = vmov 0.0   ;;  %v390_v58 = vsub.f32 %v1881_v8, %v377_v18 }
  0x65   : > { %v1543_v16 = vsel %vm380_vm12, 1.0, %v3057_v28  ;;  %v398_v43 = vsub.f32 %v1884_v9, %v378_v35  ;;  %v406_v25 = vsub.f32 %v1894_v12, %v379_v23  ;;  %vm575_vm0 = vcmp.gt.f32.partialorder %v574_v55, -1.0 }
  0x66   : > { %v384_v0 = vand.u32 2147483647, %v383_v39  ;;  %v386_v54 = vmul.f32 0.5, %v383_v39  ;;  %v427_v40 = vsel %vm415_vm3, %v1543_v16, 0.0  ;;  %v2252_v1 = vmul.f32 %v1548_v63, %v534_v60 }
  0x67   : > { %v391_v34 = vand.u32 2147483647, %v390_v58  ;;  %v393_v13 = vmul.f32 0.5, %v390_v58  ;;  %v399_v47 = vand.u32 2147483647, %v398_v43  ;;  %428 = vadd.xlane.f32.xlu0 %v427_v40  ;;  %v401_v2 = vmul.f32 0.5, %v398_v43 }
  0x68   : > { %vm2254_vm13 = vcmp.lt.f32.partialorder %v384_v0, 1.0  ;;  %v387_v48 = vmul.f32 %v386_v54, %v383_v39  ;;  %v1544_v8 = vadd.f32 -0.5, %v384_v0  ;;  %v407_v29 = vand.u32 2147483647, %v406_v25 }
  0x69   : > { %vm392_vm14 = vcmp.lt.f32.partialorder %v391_v34, 1.0  ;;  %v394_v9 = vmul.f32 %v393_v13, %v390_v58  ;;  %v1545_v52 = vadd.f32 -0.5, %v391_v34  ;;  %vm2258_vm15 = vcmp.lt.f32.partialorder %v399_v47, 1.0 }
  0x6a   : > { %v389_v63 = vsel %vm2254_vm13, %v387_v48, %v1544_v8  ;;  %v402_v3 = vmul.f32 %v401_v2, %v398_v43  ;;  %v1546_v26 = vadd.f32 -0.5, %v399_v47  ;;  %v1684_v53 = vpop.eup %1683  ;;  %v409_v4 = vmul.f32 0.5, %v406_v25 }
  0x6b   : > { %v396_v56 = vsel %vm392_vm14, %v394_v9, %v1545_v52  ;;  %v612_v59 = vadd.f32 1e-06, %v611_v36  ;;  %vm408_vm1 = vcmp.lt.f32.partialorder %v407_v29, 1.0  ;;  %v1547_v46 = vadd.f32 -0.5, %v407_v29 }
  0x6c   : > { %v397_v62 = vadd.f32 %v396_v56, %v389_v63  ;;  %v404_v31 = vsel %vm2258_vm15, %v402_v3, %v1546_v26  ;;  %v410_v21 = vmul.f32 %v409_v4, %v406_v25  ;;  %v576_v19 = vsel %vm575_vm0, %v574_v55, -1.0  ;;  %v2333_v4 = vld [vmem:[%s1849_s6 + $0x10] sm:$0x1] }
  0x6d   : > { %v2267_v61 = vsel %vm575_vm0, %v1874_v6, 0.0  ;;  %v2270_v18 = vsel %vm575_vm0, %v1887_v10, 0.0  ;;  %v2273_v23 = vsel %vm575_vm0, %v1920_v22, 0.0  ;;  %v2276_v36 = vsel %vm575_vm0, %v1953_v33, 0.0 }
  0x6e   : > { %v405_v35 = vadd.f32 %v404_v31, %v397_v62  ;;  %v594_v39 = vmul.f32 %v1684_v53, %v2166_v38  ;;  %v412_v60 = vsel %vm408_vm1, %v410_v21, %v1547_v46  ;;  %1685 = vrcp.f32 %v612_v59  ;;  %v2340_v21 = vld [vmem:[%s1849_s6 + $0x11] sm:$0x1] }
  0x6f   : > { %v684_v55 = vmin.f32 %v2164_v24, %v1953_v33  ;;  %v3062_v58 = vmax.f32 %v1936_v27, %v1874_v6  ;;  %v3063_v43 = vmin.f32 %v1950_v32, %v1920_v22  ;;  %v690_v38 = vadd.f32 %v2239_v14, %v1993_v49 }
  0x70   : > { %v413_v54 = vadd.f32 %v412_v60, %v405_v35  ;;  %vm2287_vm2 = vcmp.gt.f32.partialorder %v594_v39, %v576_v19  ;;  %v701_v40 = vmax.f32 %v1936_v27, %v1967_v37  ;;  %v3066_v9 = vmax.f32 %v2154_v51, %v1887_v10 }
  0x71   : > { %v685_v0 = vsub.f32 %v3063_v43, %v3062_v58  ;;  %v596_v34 = vsel %vm2287_vm2, %v594_v39, %v576_v19  ;;  %v597_v13 = vsel %vm2287_vm2, %v1967_v37, %v2267_v61  ;;  %v598_v47 = vsel %vm2287_vm2, %v1976_v41, %v2270_v18  ;;  %v2343_v19 = vld [vmem:[%s1849_s6 + $0x12] sm:$0x1]  ;;  %v2346_v61 = vld [vmem:[%s1849_s6 + $0x13] sm:$0x1] }
  0x72   : > { %v599_v5 = vsel %vm2287_vm2, %v1985_v45, %v2273_v23  ;;  %v2309_v48 = vmul.f32 %v1543_v16, %v413_v54  ;;  %v600_v8 = vsel %vm2287_vm2, %v1996_v50, %v2276_v36  ;;  %v687_v52 = vsub.f32 %v684_v55, %v3066_v9 }
  0x73   : > { %v686_v2 = vmax.f32 %v685_v0, 0.0  ;;  %v702_v12 = vmax.f32 %v2154_v51, %v1976_v41  ;;  %v703_v16 = vmin.f32 %v1950_v32, %v1985_v45  ;;  %v704_v63 = vmin.f32 %v2164_v24, %v1996_v50 }
  0x74   : > { %v710_v3 = vadd.f32 %v2239_v14, %v2020_v7  ;;  %v688_v26 = vmax.f32 %v687_v52, 0.0  ;;  %v721_v29 = vmax.f32 %v1936_v27, %v2010_v57  ;;  %v722_v53 = vmax.f32 %v2154_v51, %v2023_v11 }
  0x75   : > { %v723_v56 = vmin.f32 %v1950_v32, %v2028_v17  ;;  %v705_v59 = vsub.f32 %v703_v16, %v701_v40  ;;  %v707_v62 = vsub.f32 %v704_v63, %v702_v12  ;;  %v724_v31 = vmin.f32 %v2164_v24, %v2044_v42 }
  0x76   : > { %v730_v46 = vadd.f32 %v2239_v14, %v2056_v44  ;;  %v2348_v18 = vmul.f32 %v688_v26, %v686_v2  ;;  %v798_v23 = vsub.f32 %v2343_v19, %v2333_v4  ;;  %v799_v36 = vsub.f32 %v2346_v61, %v2340_v21 }
  0x77   : > { %v725_v35 = vsub.f32 %v723_v56, %v721_v29  ;;  %v706_v39 = vmax.f32 %v705_v59, 0.0  ;;  %v708_v60 = vmax.f32 %v707_v62, 0.0  ;;  %v727_v55 = vsub.f32 %v724_v31, %v722_v53 }
  0x78   : > { %v801_v14 = vmax.f32 %v2333_v4, %v1874_v6  ;;  %v691_v58 = vsub.f32 %v690_v38, %v2348_v18  ;;  %v800_v0 = vmul.f32 %v799_v36, %v798_v23  ;;  %v802_v54 = vmax.f32 %v2340_v21, %v1887_v10  ;;  %v1686_v25 = vpop.eup %1685 }
  0x79   : > { %v726_v43 = vmax.f32 %v725_v35, 0.0  ;;  %v2359_v40 = vmul.f32 %v708_v60, %v706_v39  ;;  %v728_v2 = vmax.f32 %v727_v55, 0.0  ;;  %v803_v9 = vmin.f32 %v2343_v19, %v1920_v22  ;;  %v3067_v55 = vld [vmem:[#allocation7_spill] sm:$0xff] }
  0x7a   : > { %v804_v52 = vmin.f32 %v2346_v61, %v1953_v33  ;;  %v614_v12 = vmul.f32 %v1686_v25, %v2201_v30  ;;  %v692_v16 = vadd.f32 1e-06, %v691_v58  ;;  %v810_v38 = vadd.f32 %v800_v0, %v1993_v49 }
  0x7b   : > { %v821_v63 = vmax.f32 %v2333_v4, %v1967_v37  ;;  %v711_v26 = vsub.f32 %v710_v3, %v2359_v40  ;;  %v2370_v29 = vmul.f32 %v728_v2, %v726_v43  ;;  %v805_v53 = vsub.f32 %v803_v9, %v801_v14 }
  0x7c   : > { %v807_v56 = vsub.f32 %v804_v52, %v802_v54  ;;  %vm615_vm4 = vcmp.gt.f32.partialorder %v614_v12, %v596_v34  ;;  %1687 = vrcp.f32 %v692_v16  ;;  %v822_v59 = vmax.f32 %v2340_v21, %v1976_v41 }
  0x7d   : > { %v823_v30 = vmin.f32 %v2343_v19, %v1985_v45  ;;  %v616_v62 = vsel %vm615_vm4, %v614_v12, %v596_v34  ;;  %v617_v31 = vsel %vm615_vm4, %v2010_v57, %v597_v13  ;;  %v618_v35 = vsel %vm615_vm4, %v2023_v11, %v598_v47  ;;  %v3068_v34 = vld [vmem:[#allocation8_spill] sm:$0xff] }
  0x7e   : > { %v619_v23 = vsel %vm615_vm4, %v2028_v17, %v599_v5  ;;  %v620_v3 = vsel %vm615_vm4, %v2044_v42, %v600_v8  ;;  %vm621_vm5 = vcmp.gt.f32.partialorder %v616_v62, 0.5  ;;  %v624_v36 = vsub.f32 %v1901_v15, %v617_v31 }
  0x7f   : > { %v631_v39 = vsub.f32 %v1914_v20, %v618_v35  ;;  %v2383_v60 = vsel %vm621_vm5, 1.0, %v3057_v28  ;;  %v2386_v14 = vsub.f32 %v3067_v55, %v619_v23  ;;  %v2389_v58 = vsub.f32 %v3068_v34, %v620_v3 }
  0x80   : > { %v712_v13 = vadd.f32 1e-06, %v711_v26  ;;  %v667_v47 = vsel %vm415_vm3, %v2383_v60, 0.0  ;;  %v731_v5 = vsub.f32 %v730_v46, %v2370_v29  ;;  %v806_v8 = vmax.f32 %v805_v53, 0.0 }
  0x81   : > { %v808_v43 = vmax.f32 %v807_v56, 0.0  ;;  %668 = vadd.xlane.f32.xlu1 %v667_v47  ;;  %v824_v15 = vmin.f32 %v2346_v61, %v1996_v50  ;;  %v825_v20 = vsub.f32 %v823_v30, %v821_v63  ;;  %v830_v54 = vadd.f32 %v800_v0, %v2020_v7 }
  0x82   : > { %1689 = vrcp.f32 %v712_v13  ;;  %v732_v25 = vadd.f32 1e-06, %v731_v5  ;;  %v841_v9 = vmax.f32 %v2333_v4, %v2010_v57  ;;  %v842_v52 = vmax.f32 %v2340_v21, %v2023_v11 }
  0x83   : > { %v2397_v2 = vmul.f32 %v808_v43, %v806_v8  ;;  %v826_v46 = vmax.f32 %v825_v20, 0.0  ;;  %v827_v12 = vsub.f32 %v824_v15, %v822_v59  ;;  %v843_v16 = vmin.f32 %v2343_v19, %v2028_v17 }
  0x84   : > { %v844_v26 = vmin.f32 %v2346_v61, %v2044_v42  ;;  %1691 = vrcp.f32 %v732_v25  ;;  %v850_v53 = vadd.f32 %v800_v0, %v2056_v44  ;;  %v416_v56 = vsel %vm415_vm3, %v2309_v48, 0.0 }
  0x85   : > { %v811_v63 = vsub.f32 %v810_v38, %v2397_v2  ;;  %v828_v30 = vmax.f32 %v827_v12, 0.0  ;;  %v845_v62 = vsub.f32 %v843_v16, %v841_v9  ;;  %417 = vadd.xlane.f32.xlu0 %v416_v56  ;;  %v2413_v59 = vsel %vm415_vm3, %v2252_v1, 0.0 }
  0x86   : > { %v847_v31 = vsub.f32 %v844_v26, %v842_v52  ;;  %v1688_v35 = vpop.eup %1687  ;;  %v625_v3 = vand.u32 2147483647, %v624_v36  ;;  %v627_v55 = vmul.f32 0.5, %v624_v36  ;;  %v634_v34 = vmul.f32 0.5, %v631_v39 }
  0x87   : > { %v812_v23 = vadd.f32 1e-06, %v811_v63  ;;  %v694_v38 = vmul.f32 %v1688_v35, %v2348_v18  ;;  %v2416_v13 = vmul.f32 %v828_v30, %v826_v46  ;;  %v846_v0 = vmax.f32 %v845_v62, 0.0 }
  0x88   : > { %v848_v47 = vmax.f32 %v847_v31, 0.0  ;;  %vm2418_vm6 = vcmp.lt.f32.partialorder %v625_v3, 1.0  ;;  %v628_v5 = vmul.f32 %v627_v55, %v624_v36  ;;  %v1554_v8 = vadd.f32 -0.5, %v625_v3 }
  0x89   : > { %1693 = vrcp.f32 %v812_v23  ;;  %vm695_vm7 = vcmp.gt.f32.partialorder %v694_v38, -1.0  ;;  %v831_v1 = vsub.f32 %v830_v54, %v2416_v13  ;;  %v632_v15 = vand.u32 2147483647, %v631_v39 }
  0x8a   : > { %v2423_v43 = vmul.f32 %v848_v47, %v846_v0  ;;  %v696_v20 = vsel %vm695_vm7, %v694_v38, -1.0  ;;  %v697_v18 = vsel %vm695_vm7, %v1874_v6, 0.0  ;;  %v698_v25 = vsel %vm695_vm7, %v1887_v10, 0.0 }
  0x8b   : > { %v699_v9 = vsel %vm695_vm7, %v1920_v22, 0.0  ;;  %v700_v46 = vsel %vm695_vm7, %v1953_v33, 0.0  ;;  %v832_v12 = vadd.f32 1e-06, %v831_v1  ;;  %v630_v16 = vsel %vm2418_vm6, %v628_v5, %v1554_v8  ;;  %v2463_v5 = vld [vmem:[%s1849_s6 + $0x14] sm:$0x1] }
  0x8c   : > { %v1690_v52 = vpop.eup %1689  ;;  %v851_v36 = vsub.f32 %v850_v53, %v2423_v43  ;;  %vm2433_vm8 = vcmp.lt.f32.partialorder %v632_v15, 1.0  ;;  %v635_v63 = vmul.f32 %v634_v34, %v631_v39  ;;  %v1555_v56 = vadd.f32 -0.5, %v632_v15 }
  0x8d   : > { %v714_v54 = vmul.f32 %v1690_v52, %v2359_v40  ;;  %1695 = vrcp.f32 %v832_v12  ;;  %v640_v62 = vand.u32 2147483647, %v2386_v14  ;;  %v642_v31 = vmul.f32 0.5, %v2386_v14 }
  0x8e   : > { %v852_v30 = vadd.f32 1e-06, %v851_v36  ;;  %v1692_v35 = vpop.eup %1691  ;;  %v637_v40 = vsel %vm2433_vm8, %v635_v63, %v1555_v56  ;;  %v648_v23 = vand.u32 2147483647, %v2389_v58  ;;  %v650_v39 = vmul.f32 0.5, %v2389_v58 }
  0x8f   : > { %vm2439_vm9 = vcmp.gt.f32.partialorder %v714_v54, %v696_v20  ;;  %v734_v47 = vmul.f32 %v1692_v35, %v2370_v29  ;;  %v638_v48 = vadd.f32 %v637_v40, %v630_v16  ;;  %vm2465_vm10 = vcmp.lt.f32.partialorder %v640_v62, 1.0 }
  0x90   : > { %v716_v3 = vsel %vm2439_vm9, %v714_v54, %v696_v20  ;;  %v717_v55 = vsel %vm2439_vm9, %v1967_v37, %v697_v18  ;;  %v718_v34 = vsel %vm2439_vm9, %v1976_v41, %v698_v25  ;;  %v719_v38 = vsel %vm2439_vm9, %v1985_v45, %v699_v9  ;;  %v2475_v18 = vld [vmem:[%s1849_s6 + $0x16] sm:$0x1] }
  0x91   : > { %v720_v0 = vsel %vm2439_vm9, %v1996_v50, %v700_v46  ;;  %1697 = vrcp.f32 %v852_v30  ;;  %v643_v1 = vmul.f32 %v642_v31, %v2386_v14  ;;  %v1556_v15 = vadd.f32 -0.5, %v640_v62 }
  0x92   : > { %vm2470_vm11 = vcmp.lt.f32.partialorder %v648_v23, 1.0  ;;  %vm735_vm12 = vcmp.gt.f32.partialorder %v734_v47, %v716_v3  ;;  %v651_v29 = vmul.f32 %v650_v39, %v2389_v58  ;;  %v1557_v9 = vadd.f32 -0.5, %v648_v23 }
  0x93   : > { %v1694_v25 = vpop.eup %1693  ;;  %v918_v52 = vsub.f32 %v2475_v18, %v2463_v5  ;;  %v736_v46 = vsel %vm735_vm12, %v734_v47, %v716_v3  ;;  %v737_v12 = vsel %vm735_vm12, %v2010_v57, %v717_v55  ;;  %v738_v14 = vsel %vm735_vm12, %v2023_v11, %v718_v34 }
  0x94   : > { %v739_v36 = vsel %vm735_vm12, %v2028_v17, %v719_v38  ;;  %v740_v16 = vsel %vm735_vm12, %v2044_v42, %v720_v0  ;;  %vm741_vm13 = vcmp.gt.f32.partialorder %v736_v46, 0.5  ;;  %v744_v54 = vsub.f32 %v1936_v27, %v737_v12 }
  0x95   : > { %v751_v26 = vsub.f32 %v2154_v51, %v738_v14  ;;  %v2487_v58 = vsel %vm741_vm13, 1.0, %v3057_v28  ;;  %v2490_v63 = vsub.f32 %v1950_v32, %v739_v36  ;;  %v2493_v56 = vsub.f32 %v2164_v24, %v740_v16 }
  0x96   : > { %v814_v30 = vmul.f32 %v1694_v25, %v2397_v2  ;;  %v787_v62 = vsel %vm415_vm3, %v2487_v58, 0.0  ;;  %v645_v31 = vsel %vm2465_vm10, %v643_v1, %v1556_v15  ;;  %v653_v27 = vsel %vm2470_vm11, %v651_v29, %v1557_v9 }
  0x97   : > { %v745_v51 = vand.u32 2147483647, %v744_v54  ;;  %v1696_v35 = vpop.eup %1695  ;;  %788 = vadd.xlane.f32.xlu1 %v787_v62  ;;  %v646_v32 = vadd.f32 %v645_v31, %v638_v48  ;;  %v747_v53 = vmul.f32 0.5, %v744_v54  ;;  %v752_v40 = vand.u32 2147483647, %v751_v26 }
  0x98   : > { %vm815_vm14 = vcmp.gt.f32.partialorder %v814_v30, -1.0  ;;  %v834_v55 = vmul.f32 %v1696_v35, %v2416_v13  ;;  %v754_v1 = vmul.f32 0.5, %v751_v26  ;;  %v923_v15 = vmin.f32 %v2475_v18, %v1920_v22 }
  0x99   : > { %v816_v24 = vsel %vm815_vm14, %v814_v30, -1.0  ;;  %v817_v23 = vsel %vm815_vm14, %v1874_v6, 0.0  ;;  %v818_v2 = vsel %vm815_vm14, %v1887_v10, 0.0  ;;  %v819_v39 = vsel %vm815_vm14, %v1920_v22, 0.0 }
  0x9a   : > { %v820_v3 = vsel %vm815_vm14, %v1953_v33, 0.0  ;;  %v654_v34 = vadd.f32 %v653_v27, %v646_v32  ;;  %vm2507_vm15 = vcmp.lt.f32.partialorder %v745_v51, 1.0  ;;  %v748_v47 = vmul.f32 %v747_v53, %v744_v54 }
  0x9b   : > { %v1698_v0 = vpop.eup %1697  ;;  %v1559_v48 = vadd.f32 -0.5, %v745_v51  ;;  %vm2511_vm0 = vcmp.lt.f32.partialorder %v752_v40, 1.0  ;;  %vm2515_vm1 = vcmp.gt.f32.partialorder %v834_v55, %v816_v24  ;;  %v1560_v25 = vadd.f32 -0.5, %v752_v40  ;;  %v2558_v40 = vld [vmem:[%s1849_s6 + $0x15] sm:$0x1] }
  0x9c   : > { %v854_v20 = vmul.f32 %v1698_v0, %v2423_v43  ;;  %v655_v13 = vmul.f32 %v2383_v60, %v654_v34  ;;  %v836_v29 = vsel %vm2515_vm1, %v834_v55, %v816_v24  ;;  %v837_v9 = vsel %vm2515_vm1, %v1967_v37, %v817_v23  ;;  %v2561_v24 = vld [vmem:[%s1849_s6 + $0x17] sm:$0x1] }
  0x9d   : > { %v838_v46 = vsel %vm2515_vm1, %v1976_v41, %v818_v2  ;;  %v839_v12 = vsel %vm2515_vm1, %v1985_v45, %v819_v39  ;;  %v840_v60 = vsel %vm2515_vm1, %v1996_v50, %v820_v3  ;;  %v750_v14 = vsel %vm2507_vm15, %v748_v47, %v1559_v48 }
  0x9e   : > { %vm855_vm2 = vcmp.gt.f32.partialorder %v854_v20, %v836_v29  ;;  %v656_v43 = vsel %vm415_vm3, %v655_v13, 0.0  ;;  %v755_v53 = vmul.f32 %v754_v1, %v751_v26  ;;  %v762_v23 = vmul.f32 0.5, %v2490_v63 }
  0x9f   : > { %v856_v36 = vsel %vm855_vm2, %v854_v20, %v836_v29  ;;  %v857_v16 = vsel %vm855_vm2, %v2010_v57, %v837_v9  ;;  %v858_v54 = vsel %vm855_vm2, %v2023_v11, %v838_v46  ;;  %v859_v30 = vsel %vm855_vm2, %v2028_v17, %v839_v12  ;;  %657 = vadd.xlane.f32.xlu0 %v656_v43 }
  0xa0   : > { %v860_v62 = vsel %vm855_vm2, %v2044_v42, %v840_v60  ;;  %vm861_vm4 = vcmp.gt.f32.partialorder %v856_v36, 0.5  ;;  %v2543_v31 = vsub.f32 %v2333_v4, %v857_v16  ;;  %v2546_v27 = vsub.f32 %v2340_v21, %v858_v54 }
  0xa1   : > { %v2549_v51 = vsel %vm861_vm4, 1.0, %v3057_v28  ;;  %v2552_v35 = vsub.f32 %v2343_v19, %v859_v30  ;;  %v2555_v32 = vsub.f32 %v2346_v61, %v860_v62  ;;  %v760_v21 = vand.u32 2147483647, %v2490_v63 }
  0xa2   : > { %v907_v4 = vsel %vm415_vm3, %v2549_v51, 0.0  ;;  %v768_v2 = vand.u32 2147483647, %v2493_v56  ;;  %v757_v19 = vsel %vm2511_vm0, %v755_v53, %v1560_v25  ;;  %v770_v61 = vmul.f32 0.5, %v2493_v56 }
  0xa3   : > { %908 = vadd.xlane.f32.xlu1 %v907_v4  ;;  %v919_v26 = vsub.f32 %v2561_v24, %v2558_v40  ;;  %v921_v39 = vmax.f32 %v2463_v5, %v1874_v6  ;;  %v758_v3 = vadd.f32 %v757_v19, %v750_v14  ;;  %vm761_vm5 = vcmp.lt.f32.partialorder %v760_v21, 1.0 }
  0xa4   : > { %v763_v55 = vmul.f32 %v762_v23, %v2490_v63  ;;  %v1561_v34 = vadd.f32 -0.5, %v760_v21  ;;  %vm2576_vm6 = vcmp.lt.f32.partialorder %v768_v2, 1.0  ;;  %v771_v0 = vmul.f32 %v770_v61, %v2493_v56 }
  0xa5   : > { %v1562_v47 = vadd.f32 -0.5, %v768_v2  ;;  %v920_v48 = vmul.f32 %v919_v26, %v918_v52  ;;  %v922_v1 = vmax.f32 %v2558_v40, %v1887_v10  ;;  %v924_v63 = vmin.f32 %v2561_v24, %v1953_v33 }
  0xa6   : > { %v765_v8 = vsel %vm761_vm5, %v763_v55, %v1561_v34  ;;  %v941_v52 = vmax.f32 %v2463_v5, %v1967_v37  ;;  %v925_v25 = vsub.f32 %v923_v15, %v921_v39  ;;  %v942_v9 = vmax.f32 %v2558_v40, %v1976_v41 }
  0xa7   : > { %537 = vadd.xlane.f32.xlu1 %v2413_v59  ;;  %v766_v20 = vadd.f32 %v765_v8, %v758_v3  ;;  %v773_v56 = vsel %vm2576_vm6, %v771_v0, %v1562_v47  ;;  %v930_v13 = vadd.f32 %v920_v48, %v1993_v49  ;;  %v927_v29 = vsub.f32 %v924_v63, %v922_v1 }
  0xa8   : > { %v943_v46 = vmin.f32 %v2475_v18, %v1985_v45  ;;  %v944_v59 = vmin.f32 %v2561_v24, %v1996_v50  ;;  %v950_v60 = vadd.f32 %v920_v48, %v2020_v7  ;;  %v961_v43 = vmax.f32 %v2463_v5, %v2010_v57 }
  0xa9   : > { %v774_v12 = vadd.f32 %v773_v56, %v766_v20  ;;  %v926_v14 = vmax.f32 %v925_v25, 0.0  ;;  %v928_v36 = vmax.f32 %v927_v29, 0.0  ;;  %v962_v54 = vmax.f32 %v2558_v40, %v2023_v11 }
  0xaa   : > { %v945_v16 = vsub.f32 %v943_v46, %v941_v52  ;;  %v947_v62 = vsub.f32 %v944_v59, %v942_v9  ;;  %v963_v53 = vmin.f32 %v2475_v18, %v2028_v17  ;;  %v964_v4 = vmin.f32 %v2561_v24, %v2044_v42  ;;  %v2644_v46 = vld [vmem:[%s1849_s6 + $0x18] sm:$0x1] }
  0xab   : > { %v775_v30 = vmul.f32 %v2487_v58, %v774_v12  ;;  %v2612_v21 = vmul.f32 %v928_v36, %v926_v14  ;;  %v970_v2 = vadd.f32 %v920_v48, %v2056_v44  ;;  %v865_v19 = vand.u32 2147483647, %v2543_v31  ;;  %v2649_v14 = vld [vmem:[%s1849_s6 + $0x1a] sm:$0x1] }
  0xac   : > { %v946_v23 = vmax.f32 %v945_v16, 0.0  ;;  %v948_v26 = vmax.f32 %v947_v62, 0.0  ;;  %v965_v39 = vsub.f32 %v963_v53, %v961_v43  ;;  %v967_v3 = vsub.f32 %v964_v4, %v962_v54  ;;  %v2656_v54 = vld [vmem:[%s1849_s6 + $0x19] sm:$0x1] }
  0xad   : > { %v776_v61 = vsel %vm415_vm3, %v775_v30, 0.0  ;;  %v931_v58 = vsub.f32 %v930_v13, %v2612_v21  ;;  %vm2618_vm7 = vcmp.lt.f32.partialorder %v865_v19, 1.0  ;;  %v867_v34 = vmul.f32 0.5, %v2543_v31 }
  0xae   : > { %777 = vadd.xlane.f32.xlu0 %v776_v61  ;;  %v1564_v38 = vadd.f32 -0.5, %v865_v19  ;;  %v2623_v0 = vmul.f32 %v948_v26, %v946_v23  ;;  %v966_v47 = vmax.f32 %v965_v39, 0.0  ;;  %v968_v48 = vmax.f32 %v967_v3, 0.0  ;;  %v2662_v23 = vld [vmem:[%s1849_s6 + $0x1b] sm:$0x1] }
  0xaf   : > { %v872_v8 = vand.u32 2147483647, %v2546_v27  ;;  %v932_v1 = vadd.f32 1e-06, %v931_v58  ;;  %v868_v15 = vmul.f32 %v867_v34, %v2543_v31  ;;  %v874_v63 = vmul.f32 0.5, %v2546_v27 }
  0xb0   : > { %v880_v20 = vand.u32 2147483647, %v2552_v35  ;;  %v951_v56 = vsub.f32 %v950_v60, %v2623_v0  ;;  %v2630_v13 = vmul.f32 %v968_v48, %v966_v47  ;;  %v882_v60 = vmul.f32 0.5, %v2552_v35 }
  0xb1   : > { %vm2632_vm8 = vcmp.lt.f32.partialorder %v872_v8, 1.0  ;;  %v1565_v25 = vadd.f32 -0.5, %v872_v8  ;;  %1699 = vrcp.f32 %v932_v1  ;;  %v870_v29 = vsel %vm2618_vm7, %v868_v15, %v1564_v38 }
  0xb2   : > { %v875_v31 = vmul.f32 %v874_v63, %v2546_v27  ;;  %vm2639_vm9 = vcmp.lt.f32.partialorder %v880_v20, 1.0  ;;  %v952_v12 = vadd.f32 1e-06, %v951_v56  ;;  %v971_v59 = vsub.f32 %v970_v2, %v2630_v13  ;;  %v2711_v2 = vld [vmem:[%s1849_s6 + $0x1e] sm:$0x1] }
  0xb3   : > { %v1566_v43 = vadd.f32 -0.5, %v880_v20  ;;  %v888_v27 = vand.u32 2147483647, %v2555_v32  ;;  %v890_v16 = vmul.f32 0.5, %v2555_v32  ;;  %v1038_v30 = vsub.f32 %v2649_v14, %v2644_v46 }
  0xb4   : > { %v877_v36 = vsel %vm2632_vm8, %v875_v31, %v1565_v25  ;;  %1701 = vrcp.f32 %v952_v12  ;;  %v972_v62 = vadd.f32 1e-06, %v971_v59  ;;  %v883_v4 = vmul.f32 %v882_v60, %v2552_v35 }
  0xb5   : > { %v878_v53 = vadd.f32 %v877_v36, %v870_v29  ;;  %vm2664_vm10 = vcmp.lt.f32.partialorder %v888_v27, 1.0  ;;  %v891_v19 = vmul.f32 %v890_v16, %v2555_v32  ;;  %v1567_v61 = vadd.f32 -0.5, %v888_v27 }
  0xb6   : > { %v1039_v26 = vsub.f32 %v2662_v23, %v2656_v54  ;;  %1703 = vrcp.f32 %v972_v62  ;;  %v885_v39 = vsel %vm2639_vm9, %v883_v4, %v1566_v43  ;;  %v1041_v3 = vmax.f32 %v2644_v46, %v1874_v6  ;;  %v2708_v4 = vld [vmem:[%s1849_s6 + $0x1c] sm:$0x1] }
  0xb7   : > { %v1042_v35 = vmax.f32 %v2656_v54, %v1887_v10  ;;  %v886_v58 = vadd.f32 %v885_v39, %v878_v53  ;;  %v893_v55 = vsel %vm2664_vm10, %v891_v19, %v1567_v61  ;;  %v1043_v32 = vmin.f32 %v2649_v14, %v1920_v22 }
  0xb8   : > { %v1040_v34 = vmul.f32 %v1039_v26, %v1038_v30  ;;  %v1044_v38 = vmin.f32 %v2662_v23, %v1953_v33  ;;  %v1061_v47 = vmax.f32 %v2644_v46, %v1967_v37  ;;  %v1062_v48 = vmax.f32 %v2656_v54, %v1976_v41 }
  0xb9   : > { %v1063_v8 = vmin.f32 %v2649_v14, %v1985_v45  ;;  %v894_v1 = vadd.f32 %v893_v55, %v886_v58  ;;  %v1045_v15 = vsub.f32 %v1043_v32, %v1041_v3  ;;  %v1064_v20 = vmin.f32 %v2662_v23, %v1996_v50 }
  0xba   : > { %v1050_v63 = vadd.f32 %v1040_v34, %v1993_v49  ;;  %v1047_v56 = vsub.f32 %v1044_v38, %v1042_v35  ;;  %v1070_v25 = vadd.f32 %v1040_v34, %v2020_v7  ;;  %v1081_v29 = vmax.f32 %v2644_v46, %v2010_v57 }
  0xbb   : > { %v1065_v52 = vsub.f32 %v1063_v8, %v1061_v47  ;;  %v1700_v31 = vpop.eup %1699  ;;  %v895_v9 = vmul.f32 %v2549_v51, %v894_v1  ;;  %v1046_v12 = vmax.f32 %v1045_v15, 0.0  ;;  %v1067_v59 = vsub.f32 %v1064_v20, %v1062_v48  ;;  %v2726_v48 = vld [vmem:[%s1849_s6 + $0x1d] sm:$0x1]  ;;  %v2729_v8 = vld [vmem:[%s1849_s6 + $0x1f] sm:$0x1] }
  0xbc   : > { %v1082_v60 = vmax.f32 %v2656_v54, %v2023_v11  ;;  %v934_v43 = vmul.f32 %v1700_v31, %v2612_v21  ;;  %v1048_v36 = vmax.f32 %v1047_v56, 0.0  ;;  %v1083_v16 = vmin.f32 %v2649_v14, %v2028_v17 }
  0xbd   : > { %v1066_v27 = vmax.f32 %v1065_v52, 0.0  ;;  %v896_v30 = vsel %vm415_vm3, %v895_v9, 0.0  ;;  %v1068_v62 = vmax.f32 %v1067_v59, 0.0  ;;  %v1084_v53 = vmin.f32 %v2662_v23, %v2044_v42 }
  0xbe   : > { %v2705_v51 = vadd.f32 %v1040_v34, %v2056_v44  ;;  %v1702_v21 = vpop.eup %1701  ;;  %vm935_vm11 = vcmp.gt.f32.partialorder %v934_v43, -1.0  ;;  %897 = vadd.xlane.f32.xlu0 %v896_v30  ;;  %v2713_v19 = vmul.f32 %v1048_v36, %v1046_v12  ;;  %v1085_v61 = vsub.f32 %v1083_v16, %v1081_v29 }
  0xbf   : > { %v1158_v26 = vsub.f32 %v2711_v2, %v2708_v4  ;;  %v936_v39 = vsel %vm935_vm11, %v934_v43, -1.0  ;;  %v937_v3 = vsel %vm935_vm11, %v1874_v6, 0.0  ;;  %v938_v35 = vsel %vm935_vm11, %v1887_v10, 0.0 }
  0xc0   : > { %v939_v58 = vsel %vm935_vm11, %v1920_v22, 0.0  ;;  %v1704_v55 = vpop.eup %1703  ;;  %v940_v34 = vsel %vm935_vm11, %v1953_v33, 0.0  ;;  %v954_v32 = vmul.f32 %v1702_v21, %v2623_v0  ;;  %v1051_v38 = vsub.f32 %v1050_v63, %v2713_v19 }
  0xc1   : > { %v2723_v47 = vmul.f32 %v1068_v62, %v1066_v27  ;;  %v974_v1 = vmul.f32 %v1704_v55, %v2630_v13  ;;  %v1086_v15 = vmax.f32 %v1085_v61, 0.0  ;;  %v1087_v20 = vsub.f32 %v1084_v53, %v1082_v60 }
  0xc2   : > { %v1159_v56 = vsub.f32 %v2729_v8, %v2726_v48  ;;  %vm2734_vm12 = vcmp.gt.f32.partialorder %v954_v32, %v936_v39  ;;  %v1052_v0 = vadd.f32 1e-06, %v1051_v38  ;;  %v1161_v29 = vmax.f32 %v2708_v4, %v1874_v6 }
  0xc3   : > { %v1071_v63 = vsub.f32 %v1070_v25, %v2723_v47  ;;  %v956_v31 = vsel %vm2734_vm12, %v954_v32, %v936_v39  ;;  %v957_v13 = vsel %vm2734_vm12, %v1967_v37, %v937_v3  ;;  %v958_v9 = vsel %vm2734_vm12, %v1976_v41, %v938_v35 }
  0xc4   : > { %v959_v12 = vsel %vm2734_vm12, %v1985_v45, %v939_v58  ;;  %v960_v25 = vsel %vm2734_vm12, %v1996_v50, %v940_v34  ;;  %vm975_vm13 = vcmp.gt.f32.partialorder %v974_v1, %v956_v31  ;;  %1705 = vrcp.f32 %v1052_v0 }
  0xc5   : > { %v1072_v59 = vadd.f32 1e-06, %v1071_v63  ;;  %v976_v60 = vsel %vm975_vm13, %v974_v1, %v956_v31  ;;  %v977_v43 = vsel %vm975_vm13, %v2010_v57, %v957_v13  ;;  %v978_v36 = vsel %vm975_vm13, %v2023_v11, %v958_v9 }
  0xc6   : > { %v979_v27 = vsel %vm975_vm13, %v2028_v17, %v959_v12  ;;  %v980_v16 = vsel %vm975_vm13, %v2044_v42, %v960_v25  ;;  %vm981_vm14 = vcmp.gt.f32.partialorder %v976_v60, 0.5  ;;  %v984_v30 = vsub.f32 %v2463_v5, %v977_v43 }
  0xc7   : > { %v991_v62 = vsub.f32 %v2558_v40, %v978_v36  ;;  %v1568_v53 = vsel %vm981_vm14, 1.0, %v3057_v28  ;;  %v999_v21 = vsub.f32 %v2475_v18, %v979_v27  ;;  %v1007_v61 = vsub.f32 %v2561_v24, %v980_v16  ;;  %v2841_v16 = vld [vmem:[%s1849_s6 + $0x20] sm:$0x1] }
  0xc8   : > { %1707 = vrcp.f32 %v1072_v59  ;;  %v1027_v39 = vsel %vm415_vm3, %v1568_v53, 0.0  ;;  %v1088_v3 = vmax.f32 %v1087_v20, 0.0  ;;  %v985_v35 = vand.u32 2147483647, %v984_v30 }
  0xc9   : > { %v987_v58 = vmul.f32 0.5, %v984_v30  ;;  %1028 = vadd.xlane.f32.xlu1 %v1027_v39  ;;  %v992_v55 = vand.u32 2147483647, %v991_v62  ;;  %v994_v34 = vmul.f32 0.5, %v991_v62  ;;  %v1000_v32 = vand.u32 2147483647, %v999_v21 }
  0xca   : > { %v1002_v38 = vmul.f32 0.5, %v999_v21  ;;  %v2765_v5 = vmul.f32 %v1088_v3, %v1086_v15  ;;  %vm2767_vm15 = vcmp.lt.f32.partialorder %v985_v35, 1.0  ;;  %v1569_v1 = vadd.f32 -0.5, %v985_v35 }
  0xcb   : > { %v988_v18 = vmul.f32 %v987_v58, %v984_v30  ;;  %vm993_vm0 = vcmp.lt.f32.partialorder %v992_v55, 1.0  ;;  %v995_v24 = vmul.f32 %v994_v34, %v991_v62  ;;  %v1570_v52 = vadd.f32 -0.5, %v992_v55 }
  0xcc   : > { %vm2771_vm1 = vcmp.lt.f32.partialorder %v1000_v32, 1.0  ;;  %v1091_v0 = vsub.f32 %v2705_v51, %v2765_v5  ;;  %v1003_v63 = vmul.f32 %v1002_v38, %v999_v21  ;;  %v1571_v31 = vadd.f32 -0.5, %v1000_v32 }
  0xcd   : > { %v990_v15 = vsel %vm2767_vm15, %v988_v18, %v1569_v1  ;;  %v997_v13 = vsel %vm993_vm0, %v995_v24, %v1570_v52  ;;  %v1008_v9 = vand.u32 2147483647, %v1007_v61  ;;  %v1010_v12 = vmul.f32 0.5, %v1007_v61 }
  0xce   : > { %v1160_v25 = vmul.f32 %v1159_v56, %v1158_v26  ;;  %v1706_v59 = vpop.eup %1705  ;;  %v1092_v60 = vadd.f32 1e-06, %v1091_v0  ;;  %v998_v43 = vadd.f32 %v997_v13, %v990_v15  ;;  %v1005_v36 = vsel %vm2771_vm1, %v1003_v63, %v1571_v31 }
  0xcf   : > { %v1162_v51 = vmax.f32 %v2726_v48, %v1887_v10  ;;  %v1054_v27 = vmul.f32 %v1706_v59, %v2713_v19  ;;  %vm2787_vm2 = vcmp.lt.f32.partialorder %v1008_v9, 1.0  ;;  %v1011_v30 = vmul.f32 %v1010_v12, %v1007_v61 }
  0xd0   : > { %v1572_v62 = vadd.f32 -0.5, %v1008_v9  ;;  %1709 = vrcp.f32 %v1092_v60  ;;  %v1006_v21 = vadd.f32 %v1005_v36, %v998_v43  ;;  %v1163_v26 = vmin.f32 %v2711_v2, %v1920_v22 }
  0xd1   : > { %v1164_v56 = vmin.f32 %v2729_v8, %v1953_v33  ;;  %vm1055_vm4 = vcmp.gt.f32.partialorder %v1054_v27, -1.0  ;;  %v1170_v19 = vadd.f32 %v1160_v25, %v1993_v49  ;;  %v1181_v35 = vmax.f32 %v2708_v4, %v1967_v37 }
  0xd2   : > { %v1708_v39 = vpop.eup %1707  ;;  %v1013_v3 = vsel %vm2787_vm2, %v1011_v30, %v1572_v62  ;;  %v1056_v61 = vsel %vm1055_vm4, %v1054_v27, -1.0  ;;  %v1057_v58 = vsel %vm1055_vm4, %v1874_v6, 0.0  ;;  %v1058_v55 = vsel %vm1055_vm4, %v1887_v10, 0.0  ;;  %v2844_v30 = vld [vmem:[%s1849_s6 + $0x21] sm:$0x1] }
  0xd3   : > { %v1059_v34 = vsel %vm1055_vm4, %v1920_v22, 0.0  ;;  %v1060_v32 = vsel %vm1055_vm4, %v1953_v33, 0.0  ;;  %v1074_v38 = vmul.f32 %v1708_v39, %v2723_v47  ;;  %v1014_v40 = vadd.f32 %v1013_v3, %v1006_v21  ;;  %v2852_v39 = vld [vmem:[%s1849_s6 + $0x22] sm:$0x1]  ;;  %v2855_v3 = vld [vmem:[%s1849_s6 + $0x23] sm:$0x1] }
  0xd4   : > { %v1165_v18 = vsub.f32 %v1163_v26, %v1161_v29  ;;  %v1167_v1 = vsub.f32 %v1164_v56, %v1162_v51  ;;  %v1182_v24 = vmax.f32 %v2726_v48, %v1976_v41  ;;  %v1183_v52 = vmin.f32 %v2711_v2, %v1985_v45 }
  0xd5   : > { %v1184_v20 = vmin.f32 %v2729_v8, %v1996_v50  ;;  %vm2814_vm5 = vcmp.gt.f32.partialorder %v1074_v38, %v1056_v61  ;;  %v1015_v47 = vmul.f32 %v1568_v53, %v1014_v40  ;;  %v1190_v29 = vadd.f32 %v1160_v25, %v2020_v7 }
  0xd6   : > { %v1166_v15 = vmax.f32 %v1165_v18, 0.0  ;;  %v1076_v63 = vsel %vm2814_vm5, %v1074_v38, %v1056_v61  ;;  %v1077_v31 = vsel %vm2814_vm5, %v1967_v37, %v1057_v58  ;;  %v1078_v13 = vsel %vm2814_vm5, %v1976_v41, %v1058_v55 }
  0xd7   : > { %v1079_v53 = vsel %vm2814_vm5, %v1985_v45, %v1059_v34  ;;  %v1080_v9 = vsel %vm2814_vm5, %v1996_v50, %v1060_v32  ;;  %v1016_v12 = vsel %vm415_vm3, %v1015_v47, 0.0  ;;  %v1168_v59 = vmax.f32 %v1167_v1, 0.0 }
  0xd8   : > { %v1185_v60 = vsub.f32 %v1183_v52, %v1181_v35  ;;  %1017 = vadd.xlane.f32.xlu0 %v1016_v12  ;;  %v1187_v43 = vsub.f32 %v1184_v20, %v1182_v24  ;;  %v1201_v36 = vmax.f32 %v2708_v4, %v2010_v57  ;;  %v1202_v51 = vmax.f32 %v2726_v48, %v2023_v11 }
  0xd9   : > { %v1203_v27 = vmin.f32 %v2711_v2, %v2028_v17  ;;  %v2846_v62 = vmul.f32 %v1168_v59, %v1166_v15  ;;  %v1204_v26 = vmin.f32 %v2729_v8, %v2044_v42  ;;  %v1210_v56 = vadd.f32 %v1160_v25, %v2056_v44 }
  0xda   : > { %v1186_v21 = vmax.f32 %v1185_v60, 0.0  ;;  %v1710_v35 = vpop.eup %1709  ;;  %v1188_v61 = vmax.f32 %v1187_v43, 0.0  ;;  %v1278_v55 = vsub.f32 %v2852_v39, %v2841_v16  ;;  %v1279_v34 = vsub.f32 %v2855_v3, %v2844_v30 }
  0xdb   : > { %v1205_v58 = vsub.f32 %v1203_v27, %v1201_v36  ;;  %v1094_v32 = vmul.f32 %v1710_v35, %v2765_v5  ;;  %v1171_v38 = vsub.f32 %v1170_v19, %v2846_v62  ;;  %v1207_v40 = vsub.f32 %v1204_v26, %v1202_v51 }
  0xdc   : > { %v1281_v25 = vmax.f32 %v2841_v16, %v1874_v6  ;;  %v2865_v18 = vmul.f32 %v1188_v61, %v1186_v21  ;;  %v2867_v24 = vmul.f32 %v1279_v34, %v1278_v55  ;;  %v1282_v52 = vmax.f32 %v2844_v30, %v1887_v10 }
  0xdd   : > { %v1206_v1 = vmax.f32 %v1205_v58, 0.0  ;;  %vm1095_vm6 = vcmp.gt.f32.partialorder %v1094_v32, %v1076_v63  ;;  %v1172_v20 = vadd.f32 1e-06, %v1171_v38  ;;  %v1208_v0 = vmax.f32 %v1207_v40, 0.0 }
  0xde   : > { %v1283_v5 = vmin.f32 %v2852_v39, %v1920_v22  ;;  %v1096_v47 = vsel %vm1095_vm6, %v1094_v32, %v1076_v63  ;;  %v1097_v19 = vsel %vm1095_vm6, %v2010_v57, %v1077_v31  ;;  %v1098_v15 = vsel %vm1095_vm6, %v2023_v11, %v1078_v13 }
  0xdf   : > { %v1099_v12 = vsel %vm1095_vm6, %v2028_v17, %v1079_v53  ;;  %v1100_v59 = vsel %vm1095_vm6, %v2044_v42, %v1080_v9  ;;  %vm1101_vm7 = vcmp.gt.f32.partialorder %v1096_v47, 0.5  ;;  %v1104_v60 = vsub.f32 %v2644_v46, %v1097_v19 }
  0xe0   : > { %v1111_v43 = vsub.f32 %v2656_v54, %v1098_v15  ;;  %v2880_v36 = vsel %vm1101_vm7, 1.0, %v3057_v28  ;;  %v1119_v51 = vsub.f32 %v2649_v14, %v1099_v12  ;;  %v1127_v63 = vsub.f32 %v2662_v23, %v1100_v59 }
  0xe1   : > { %1711 = vrcp.f32 %v1172_v20  ;;  %v1147_v31 = vsel %vm415_vm3, %v2880_v36, 0.0  ;;  %v1191_v13 = vsub.f32 %v1190_v29, %v2865_v18  ;;  %v2887_v53 = vmul.f32 %v1208_v0, %v1206_v1 }
  0xe2   : > { %v1105_v9 = vand.u32 2147483647, %v1104_v60  ;;  %1148 = vadd.xlane.f32.xlu1 %v1147_v31  ;;  %v1107_v46 = vmul.f32 0.5, %v1104_v60  ;;  %v1112_v27 = vand.u32 2147483647, %v1111_v43  ;;  %v1114_v54 = vmul.f32 0.5, %v1111_v43 }
  0xe3   : > { %v1120_v21 = vand.u32 2147483647, %v1119_v51  ;;  %v1192_v26 = vadd.f32 1e-06, %v1191_v13  ;;  %v1211_v35 = vsub.f32 %v1210_v56, %v2887_v53  ;;  %v1122_v34 = vmul.f32 0.5, %v1119_v51 }
  0xe4   : > { %vm1106_vm8 = vcmp.lt.f32.partialorder %v1105_v9, 1.0  ;;  %v1574_v14 = vadd.f32 -0.5, %v1105_v9  ;;  %v1108_v23 = vmul.f32 %v1107_v46, %v1104_v60  ;;  %vm1113_vm9 = vcmp.lt.f32.partialorder %v1112_v27, 1.0 }
  0xe5   : > { %v1115_v61 = vmul.f32 %v1114_v54, %v1111_v43  ;;  %v1575_v58 = vadd.f32 -0.5, %v1112_v27  ;;  %1713 = vrcp.f32 %v1192_v26  ;;  %v1212_v55 = vadd.f32 1e-06, %v1211_v35 }
  0xe6   : > { %vm2890_vm10 = vcmp.lt.f32.partialorder %v1120_v21, 1.0  ;;  %v1110_v32 = vsel %vm1106_vm8, %v1108_v23, %v1574_v14  ;;  %v1576_v40 = vadd.f32 -0.5, %v1120_v21  ;;  %v1128_v1 = vand.u32 2147483647, %v1127_v63 }
  0xe7   : > { %v1117_v38 = vsel %vm1113_vm9, %v1115_v61, %v1575_v58  ;;  %1715 = vrcp.f32 %v1212_v55  ;;  %v1123_v56 = vmul.f32 %v1122_v34, %v1119_v51  ;;  %v1130_v0 = vmul.f32 0.5, %v1127_v63 }
  0xe8   : > { %v1118_v20 = vadd.f32 %v1117_v38, %v1110_v32  ;;  %vm2894_vm11 = vcmp.lt.f32.partialorder %v1128_v1, 1.0  ;;  %v1577_v19 = vadd.f32 -0.5, %v1128_v1  ;;  %v1284_v15 = vmin.f32 %v2855_v3, %v1953_v33 }
  0xe9   : > { %v1285_v12 = vsub.f32 %v1283_v5, %v1281_v25  ;;  %v1125_v59 = vsel %vm2890_vm10, %v1123_v56, %v1576_v40  ;;  %v1131_v60 = vmul.f32 %v1130_v0, %v1127_v63  ;;  %v1301_v43 = vmax.f32 %v2841_v16, %v1967_v37 }
  0xea   : > { %v1126_v13 = vadd.f32 %v1125_v59, %v1118_v20  ;;  %v1287_v9 = vsub.f32 %v1284_v15, %v1282_v52  ;;  %v1302_v46 = vmax.f32 %v2844_v30, %v1976_v41  ;;  %v1303_v25 = vmin.f32 %v2852_v39, %v1985_v45 }
  0xeb   : > { %v1712_v31 = vpop.eup %1711  ;;  %v1286_v51 = vmax.f32 %v1285_v12, 0.0  ;;  %v1133_v54 = vsel %vm2894_vm11, %v1131_v60, %v1577_v19  ;;  %v1304_v5 = vmin.f32 %v2855_v3, %v1996_v50  ;;  %v1290_v26 = vadd.f32 %v2867_v24, %v1993_v49 }
  0xec   : > { %v1174_v27 = vmul.f32 %v1712_v31, %v2846_v62  ;;  %v1134_v63 = vadd.f32 %v1133_v54, %v1126_v13  ;;  %v1288_v21 = vmax.f32 %v1287_v9, 0.0  ;;  %v1310_v52 = vadd.f32 %v2867_v24, %v2020_v7 }
  0xed   : > { %v1305_v35 = vsub.f32 %v1303_v25, %v1301_v43  ;;  %v1307_v62 = vsub.f32 %v1304_v5, %v1302_v46  ;;  %v1321_v14 = vmax.f32 %v2841_v16, %v2010_v57  ;;  %v1322_v55 = vmax.f32 %v2844_v30, %v2023_v11 }
  0xee   : > { %vm1175_vm12 = vcmp.gt.f32.partialorder %v1174_v27, -1.0  ;;  %v1135_v34 = vmul.f32 %v2880_v36, %v1134_v63  ;;  %v2925_v7 = vmul.f32 %v1288_v21, %v1286_v51  ;;  %v1323_v20 = vmin.f32 %v2852_v39, %v2028_v17 }
  0xef   : > { %v1176_v23 = vsel %vm1175_vm12, %v1174_v27, -1.0  ;;  %v1177_v61 = vsel %vm1175_vm12, %v1874_v6, 0.0  ;;  %v1178_v58 = vsel %vm1175_vm12, %v1887_v10, 0.0  ;;  %v1714_v29 = vpop.eup %1713  ;;  %v1179_v49 = vsel %vm1175_vm12, %v1920_v22, 0.0 }
  0xf0   : > { %v1306_v32 = vmax.f32 %v1305_v35, 0.0  ;;  %v1180_v38 = vsel %vm1175_vm12, %v1953_v33, 0.0  ;;  %v1194_v40 = vmul.f32 %v1714_v29, %v2865_v18  ;;  %v1308_v1 = vmax.f32 %v1307_v62, 0.0 }
  0xf1   : > { %v1716_v56 = vpop.eup %1715  ;;  %v1136_v0 = vsel %vm415_vm3, %v1135_v34, 0.0  ;;  %v1291_v47 = vsub.f32 %v1290_v26, %v2925_v7  ;;  %v1324_v19 = vmin.f32 %v2855_v3, %v2044_v42  ;;  %v1330_v36 = vadd.f32 %v2867_v24, %v2056_v44 }
  0xf2   : > { %vm2937_vm13 = vcmp.gt.f32.partialorder %v1194_v40, %v1176_v23  ;;  %v1214_v18 = vmul.f32 %v1716_v56, %v2887_v53  ;;  %1137 = vadd.xlane.f32.xlu0 %v1136_v0  ;;  %v2942_v12 = vmul.f32 %v1308_v1, %v1306_v32  ;;  %v1325_v59 = vsub.f32 %v1323_v20, %v1321_v14 }
  0xf3   : > { %v1196_v60 = vsel %vm2937_vm13, %v1194_v40, %v1176_v23  ;;  %v1197_v43 = vsel %vm2937_vm13, %v1967_v37, %v1177_v61  ;;  %v1198_v44 = vsel %vm2937_vm13, %v1976_v41, %v1178_v58  ;;  %v1199_v24 = vsel %vm2937_vm13, %v1985_v45, %v1179_v49 }
  0xf4   : > { %v1200_v53 = vsel %vm2937_vm13, %v1996_v50, %v1180_v38  ;;  %vm1215_vm14 = vcmp.gt.f32.partialorder %v1214_v18, %v1196_v60  ;;  %v1292_v31 = vadd.f32 1e-06, %v1291_v47  ;;  %v1311_v13 = vsub.f32 %v1310_v52, %v2942_v12 }
  0xf5   : > { %v1216_v51 = vsel %vm1215_vm14, %v1214_v18, %v1196_v60  ;;  %v1217_v9 = vsel %vm1215_vm14, %v2010_v57, %v1197_v43  ;;  %v1218_v46 = vsel %vm1215_vm14, %v2023_v11, %v1198_v44  ;;  %v1219_v27 = vsel %vm1215_vm14, %v2028_v17, %v1199_v24 }
  0xf6   : > { %v1220_v54 = vsel %vm1215_vm14, %v2044_v42, %v1200_v53  ;;  %vm1221_vm15 = vcmp.gt.f32.partialorder %v1216_v51, 0.5  ;;  %v1224_v25 = vsub.f32 %v2708_v4, %v1217_v9  ;;  %v1231_v5 = vsub.f32 %v2726_v48, %v1218_v46 }
  0xf7   : > { %v1578_v63 = vsel %vm1221_vm15, 1.0, %v3057_v28  ;;  %v1239_v21 = vsub.f32 %v2711_v2, %v1219_v27  ;;  %v1247_v26 = vsub.f32 %v2729_v8, %v1220_v54  ;;  %1717 = vrcp.f32 %v1292_v31 }
  0xf8   : > { %v1267_v52 = vsel %vm415_vm3, %v1578_v63, 0.0  ;;  %v1312_v35 = vadd.f32 1e-06, %v1311_v13  ;;  %v1326_v62 = vmax.f32 %v1325_v59, 0.0  ;;  %v1327_v14 = vsub.f32 %v1324_v19, %v1322_v55 }
  0xf9   : > { %1268 = vadd.xlane.f32.xlu1 %v1267_v52  ;;  %v1225_v23 = vand.u32 2147483647, %v1224_v25  ;;  %v1227_v61 = vmul.f32 0.5, %v1224_v25  ;;  %v1232_v58 = vand.u32 2147483647, %v1231_v5  ;;  %v1234_v29 = vmul.f32 0.5, %v1231_v5 }
  0xfa   : > { %1719 = vrcp.f32 %v1312_v35  ;;  %v1328_v4 = vmax.f32 %v1327_v14, 0.0  ;;  %v1240_v48 = vand.u32 2147483647, %v1239_v21  ;;  %v1242_v49 = vmul.f32 0.5, %v1239_v21 }
  0xfb   : > { %vm1226_vm0 = vcmp.lt.f32.partialorder %v1225_v23, 1.0  ;;  %v1228_v34 = vmul.f32 %v1227_v61, %v1224_v25  ;;  %v1579_v2 = vadd.f32 -0.5, %v1225_v23  ;;  %vm1233_vm1 = vcmp.lt.f32.partialorder %v1232_v58, 1.0 }
  0xfc   : > { %v1329_v8 = vmul.f32 %v1328_v4, %v1326_v62  ;;  %v1235_v32 = vmul.f32 %v1234_v29, %v1231_v5  ;;  %v1580_v38 = vadd.f32 -0.5, %v1232_v58  ;;  %vm1241_vm2 = vcmp.lt.f32.partialorder %v1240_v48, 1.0 }
  0xfd   : > { %v1230_v40 = vsel %vm1226_vm0, %v1228_v34, %v1579_v2  ;;  %v1243_v1 = vmul.f32 %v1242_v49, %v1239_v21  ;;  %v1581_v55 = vadd.f32 -0.5, %v1240_v48  ;;  %v1248_v20 = vand.u32 2147483647, %v1247_v26  ;;  %v429_v21 = vpop.xlane.xlu0 %428 }
  0xfe   : > { %v1331_v56 = vsub.f32 %v1330_v36, %v1329_v8  ;;  %v1237_v0 = vsel %vm1233_vm1, %v1235_v32, %v1580_v38  ;;  %v1250_v47 = vmul.f32 0.5, %v1247_v26 }
  0xff   : > { %v1238_v19 = vadd.f32 %v1237_v0, %v1230_v40  ;;  %v1245_v15 = vsel %vm1241_vm2, %v1243_v1, %v1581_v55  ;;  %vm1249_vm4 = vcmp.lt.f32.partialorder %v1248_v20, 1.0  ;;  %v1582_v18 = vadd.f32 -0.5, %v1248_v20 }
 0x100   : > { %v1332_v59 = vadd.f32 1e-06, %v1331_v56  ;;  %v1251_v60 = vmul.f32 %v1250_v47, %v1247_v26 }
 0x101   : > { %v1718_v43 = vpop.eup %1717  ;;  %v1246_v44 = vadd.f32 %v1245_v15, %v1238_v19 }
 0x102   : > { %v1294_v24 = vmul.f32 %v1718_v43, %v2925_v7  ;;  %1721 = vrcp.f32 %v1332_v59  ;;  %v1253_v53 = vsel %vm1249_vm4, %v1251_v60, %v1582_v18 }
 0x103   : > { %v1254_v31 = vadd.f32 %v1253_v53, %v1246_v44 }
 0x104   : > { %v1720_v13 = vpop.eup %1719  ;;  %vm1295_vm5 = vcmp.gt.f32.partialorder %v1294_v24, -1.0 }
 0x105   : > { %v1296_v51 = vsel %vm1295_vm5, %v1294_v24, -1.0  ;;  %v1314_v36 = vmul.f32 %v1720_v13, %v2942_v12  ;;  %v1255_v9 = vmul.f32 %v1578_v63, %v1254_v31  ;;  %v1297_v54 = vsel %vm1295_vm5, %v1874_v6, 0.0  ;;  %v549_v24 = vpop.xlane.xlu1 %548 }
 0x106   : > { %v1298_v7 = vsel %vm1295_vm5, %v1887_v10, 0.0  ;;  %v1299_v25 = vsel %vm1295_vm5, %v1920_v22, 0.0  ;;  %v1300_v5 = vsel %vm1295_vm5, %v1953_v33, 0.0  ;;  %v430_v33 = vrot.slane %v429_v21, 4 }
 0x107   : > { %v1256_v46 = vsel %vm415_vm3, %v1255_v9, 0.0  ;;  %vm2972_vm6 = vcmp.gt.f32.partialorder %v1314_v36, %v1296_v51 }
 0x108   : > { %1257 = vadd.xlane.f32.xlu0 %v1256_v46  ;;  %v1316_v12 = vsel %vm2972_vm6, %v1314_v36, %v1296_v51  ;;  %v1317_v63 = vsel %vm2972_vm6, %v1967_v37, %v1297_v54  ;;  %v1318_v52 = vsel %vm2972_vm6, %v1976_v41, %v1298_v7  ;;  %v1319_v6 = vsel %vm2972_vm6, %v1985_v45, %v1299_v25 }
 0x109   : > { %v1320_v22 = vsel %vm2972_vm6, %v1996_v50, %v1300_v5  ;;  %v431_v29 = vadd.f32 %v430_v33, %v429_v21  ;;  %v550_v7 = vrot.slane %v549_v24, 4 }
 0x10b   : > { %v432_v1 = vrot.slane %v431_v29, 2 }
 0x10c   : > { %v1722_v26 = vpop.eup %1721 }
 0x10d   : > { %v1334_v10 = vmul.f32 %v1722_v26, %v1329_v8  ;;  %v433_v60 = vadd.f32 %v432_v1, %v431_v29 }
 0x10e   : > { %v669_v46 = vpop.xlane.xlu1 %668 }
 0x10f   : > { %vm1335_vm7 = vcmp.gt.f32.partialorder %v1334_v10, %v1316_v12  ;;  %v434_v13 = vrot.slane %v433_v60, 1  ;;  %v670_v21 = vrot.slane %v669_v46, 4 }
 0x110   : > { %v1336_v35 = vsel %vm1335_vm7, %v1334_v10, %v1316_v12  ;;  %v1337_v62 = vsel %vm1335_vm7, %v2010_v57, %v1317_v63  ;;  %v1338_v37 = vsel %vm1335_vm7, %v2023_v11, %v1318_v52  ;;  %v1339_v14 = vsel %vm1335_vm7, %v2028_v17, %v1319_v6 }
 0x111   : > { %v1340_v41 = vsel %vm1335_vm7, %v2044_v42, %v1320_v22  ;;  %vm1341_vm8 = vcmp.gt.f32.partialorder %v1336_v35, 0.5  ;;  %v1344_v23 = vsub.f32 %v2841_v16, %v1337_v62  ;;  %v1351_v45 = vsub.f32 %v2844_v30, %v1338_v37 }
 0x112   : > { %v1583_v61 = vsel %vm1341_vm8, 1.0, %v3057_v28  ;;  %v1359_v50 = vsub.f32 %v2852_v39, %v1339_v14  ;;  %v1367_v58 = vsub.f32 %v2855_v3, %v1340_v41  ;;  %v418_v39 = vpop.xlane.xlu0 %417  ;;  %v435_v27 = vadd.f32 %v434_v13, %v433_v60 }
 0x113   : > { %v1387_v57 = vsel %vm415_vm3, %v1583_v61, 0.0  ;;  %v1345_v4 = vand.u32 2147483647, %v1344_v23  ;;  %v1347_v11 = vmul.f32 0.5, %v1344_v23  ;;  %v1352_v48 = vand.u32 2147483647, %v1351_v45 }
 0x114   : > { %1388 = vadd.xlane.f32.xlu1 %v1387_v57  ;;  %v1354_v17 = vmul.f32 0.5, %v1351_v45  ;;  %v1360_v42 = vand.u32 2147483647, %v1359_v50  ;;  %v1362_v49 = vmul.f32 0.5, %v1359_v50  ;;  %v1368_v34 = vand.u32 2147483647, %v1367_v58 }
 0x115   : > { %vm3004_vm9 = vcmp.lt.f32.partialorder %v1345_v4, 1.0  ;;  %v1348_v28 = vmul.f32 %v1347_v11, %v1344_v23  ;;  %v1584_v30 = vadd.f32 -0.5, %v1345_v4  ;;  %vm1353_vm10 = vcmp.lt.f32.partialorder %v1352_v48, 1.0 }
 0x116   : > { %v1355_v3 = vmul.f32 %v1354_v17, %v1351_v45  ;;  %v1585_v2 = vadd.f32 -0.5, %v1352_v48  ;;  %vm1361_vm11 = vcmp.lt.f32.partialorder %v1360_v42, 1.0  ;;  %v1363_v8 = vmul.f32 %v1362_v49, %v1359_v50 }
 0x117   : > { %v1350_v32 = vsel %vm3004_vm9, %v1348_v28, %v1584_v30  ;;  %v1586_v38 = vadd.f32 -0.5, %v1360_v42  ;;  %v1370_v40 = vmul.f32 0.5, %v1367_v58  ;;  %vm1369_vm12 = vcmp.lt.f32.partialorder %v1368_v34, 1.0 }
 0x118   : > { %v1357_v55 = vsel %vm1353_vm10, %v1355_v3, %v1585_v2  ;;  %v1587_v20 = vadd.f32 -0.5, %v1368_v34  ;;  %v419_v56 = vrot.slane %v418_v39, 4  ;;  %v551_v12 = vadd.f32 %v550_v7, %v549_v24 }
 0x119   : > { %v1358_v0 = vadd.f32 %v1357_v55, %v1350_v32  ;;  %v1365_v47 = vsel %vm1361_vm11, %v1363_v8, %v1586_v38  ;;  %v1371_v19 = vmul.f32 %v1370_v40, %v1367_v58  ;;  %v671_v52 = vadd.f32 %v670_v21, %v669_v46 }
 0x11a   : > { %v420_v15 = vadd.f32 %v419_v56, %v418_v39  ;;  %v552_v22 = vrot.slane %v551_v12, 2 }
 0x11b   : > { %v1366_v18 = vadd.f32 %v1365_v47, %v1358_v0  ;;  %v1373_v59 = vsel %vm1369_vm12, %v1371_v19, %v1587_v20  ;;  %v672_v62 = vrot.slane %v671_v52, 2 }
 0x11c   : > { %v421_v43 = vrot.slane %v420_v15, 2  ;;  %v553_v23 = vadd.f32 %v552_v22, %v551_v12 }
 0x11d   : > { %v1374_v44 = vadd.f32 %v1373_v59, %v1366_v18 }
 0x11e   : > { %v422_v53 = vadd.f32 %v421_v43, %v420_v15  ;;  %v554_v11 = vrot.slane %v553_v23, 1 }
 0x11f   : > { %v1375_v31 = vmul.f32 %v1583_v61, %v1374_v44  ;;  %v673_v61 = vadd.f32 %v672_v62, %v671_v52 }
 0x120   : > { %v423_v51 = vrot.slane %v422_v53, 1  ;;  %v555_v30 = vadd.f32 %v554_v11, %v553_v23 }
 0x121   : > { %v1376_v36 = vsel %vm415_vm3, %v1375_v31, 0.0  ;;  %v674_v42 = vrot.slane %v673_v61, 1 }
 0x122   : > { %1377 = vadd.xlane.f32.xlu0 %v1376_v36  ;;  %v424_v9 = vadd.f32 %v423_v51, %v422_v53 }
 0x123   : > { %v675_v39 = vadd.f32 %v674_v42, %v673_v61 }
 0x124   : > { %1597 = vpush %v424_v9  ;;  %v789_v54 = vpop.xlane.xlu1 %788 }
 0x125   : > { %1599 = vpush %v435_v27  ;;  %v790_v6 = vrot.slane %v789_v54, 4 }
 0x127   : > { %v791_v37 = vadd.f32 %v790_v6, %v789_v54 }
 0x129   : > { %v792_v50 = vrot.slane %v791_v37, 2 }
 0x12b   : > { %v793_v16 = vadd.f32 %v792_v50, %v791_v37 }
 0x12c   : > { %v658_v25 = vpop.xlane.xlu0 %657 }
 0x12d   : > { %v659_v5 = vrot.slane %v658_v25, 4  ;;  %v794_v2 = vrot.slane %v793_v16, 1 }
 0x12f   : > { %v660_v26 = vadd.f32 %v659_v5, %v658_v25  ;;  %v795_v40 = vadd.f32 %v794_v2, %v793_v16 }
 0x130   : > { %v909_v63 = vpop.xlane.xlu1 %908 }
 0x131   : > { %v661_v10 = vrot.slane %v660_v26, 2  ;;  %v910_v8 = vrot.slane %v909_v63, 4 }
 0x133   : > { %v662_v41 = vadd.f32 %v661_v10, %v660_v26  ;;  %v911_v1 = vadd.f32 %v910_v8, %v909_v63 }
 0x134   : > { %v538_v33 = vpop.xlane.xlu1 %537 }
 0x135   : > { %v539_v35 = vrot.slane %v538_v33, 4  ;;  %v663_v57 = vrot.slane %v662_v41, 1  ;;  %v912_v55 = vrot.slane %v911_v1, 2 }
 0x137   : > { %v540_v14 = vadd.f32 %v539_v35, %v538_v33  ;;  %v664_v34 = vadd.f32 %v663_v57, %v662_v41  ;;  %v913_v47 = vadd.f32 %v912_v55, %v911_v1 }
 0x139   : > { %v541_v45 = vrot.slane %v540_v14, 2  ;;  %v914_v18 = vrot.slane %v913_v47, 1 }
 0x13b   : > { %v778_v58 = vpop.xlane.xlu0 %777  ;;  %v542_v29 = vadd.f32 %v541_v45, %v540_v14  ;;  %v915_v43 = vadd.f32 %v914_v18, %v913_v47 }
 0x13c   : > { %v779_v4 = vrot.slane %v778_v58, 4 }
 0x13d   : > { %v543_v48 = vrot.slane %v542_v29, 1 }
 0x13e   : > { %v780_v17 = vadd.f32 %v779_v4, %v778_v58 }
 0x13f   : > { %v544_v49 = vadd.f32 %v543_v48, %v542_v29 }
 0x140   : > { %v781_v28 = vrot.slane %v780_v17, 2 }
 0x141   : > { %1601 = vpush %v544_v49 }
 0x142   : > { %1603 = vpush %v555_v30  ;;  %v782_v3 = vadd.f32 %v781_v28, %v780_v17 }
 0x143   : > { %1605 = vpush %v664_v34 }
 0x144   : > { %1607 = vpush %v675_v39  ;;  %v783_v32 = vrot.slane %v782_v3, 1 }
 0x146   : > { %v784_v38 = vadd.f32 %v783_v32, %v782_v3 }
 0x148   : > { %1609 = vpush %v784_v38 }
 0x149   : > { %1611 = vpush %v795_v40 }
 0x14b   : > { %v898_v20 = vpop.xlane.xlu0 %897 }
 0x14c   : > { %v899_v56 = vrot.slane %v898_v20, 4 }
 0x14e   : > { %v900_v0 = vadd.f32 %v899_v56, %v898_v20 }
 0x150   : > { %v901_v19 = vrot.slane %v900_v0, 2 }
 0x152   : > { %v902_v15 = vadd.f32 %v901_v19, %v900_v0 }
 0x154   : > { %v903_v59 = vrot.slane %v902_v15, 1 }
 0x155   : > { %s1598_s6 = spop %1597 }
 0x156   : > { %v904_v60 = vadd.f32 %v903_v59, %v902_v15  ;;  %v1029_v44 = vpop.xlane.xlu1 %1028  ;;  %s1600_s15 = spop %1599 }
 0x157   : > { %v1030_v24 = vrot.slane %v1029_v44, 4 }
 0x158   : > { %1613 = vpush %v904_v60 }
 0x159   : > { %1615 = vpush %v915_v43  ;;  %v1031_v53 = vadd.f32 %v1030_v24, %v1029_v44 }
 0x15b   : > { %v1032_v31 = vrot.slane %v1031_v53, 2 }
 0x15d   : > { %v1033_v9 = vadd.f32 %v1032_v31, %v1031_v53 }
 0x15f   : > { %v1034_v54 = vrot.slane %v1033_v9, 1 }
 0x161   : > { %v1035_v5 = vadd.f32 %v1034_v54, %v1033_v9 }
 0x165   : > { %v1018_v13 = vpop.xlane.xlu0 %1017 }
 0x166   : > { %v1019_v51 = vrot.slane %v1018_v13, 4 }
 0x168   : > { %v1020_v36 = vadd.f32 %v1019_v51, %v1018_v13 }
 0x16a   : > { %v1021_v46 = vrot.slane %v1020_v36, 2 }
 0x16c   : > { %v1022_v27 = vadd.f32 %v1021_v46, %v1020_v36 }
 0x16e   : > { %v1023_v7 = vrot.slane %v1022_v27, 1 }
 0x16f   : > { %v1149_v21 = vpop.xlane.xlu1 %1148 }
 0x170   : > { %v1024_v25 = vadd.f32 %v1023_v7, %v1022_v27  ;;  %v1150_v26 = vrot.slane %v1149_v21, 4 }
 0x172   : > { %1617 = vpush %v1024_v25  ;;  %v1151_v12 = vadd.f32 %v1150_v26, %v1149_v21  ;;  %s1602_s17 = spop %1601 }
 0x173   : > { %1619 = vpush %v1035_v5  ;;  %s1604_s18 = spop %1603  ;;  %s546_s21 = sadd.f32 %s1602_s17, %s1598_s6 }
 0x174   : > { %v1152_v63 = vrot.slane %v1151_v12, 2  ;;  %s1606_s19 = spop %1605  ;;  %s557_s23 = sadd.f32 %s1604_s18, %s1600_s15 }
 0x175   : > { %s1608_s20 = spop %1607  ;;  %s666_s26 = sadd.f32 %s1606_s19, %s546_s21 }
 0x176   : > { %v1153_v22 = vadd.f32 %v1152_v63, %v1151_v12  ;;  %s677_s27 = sadd.f32 %s1608_s20, %s557_s23  ;;  %s1539_s6 = sshll.u32 %s3120_s12, 3 }
 0x177   : > { %s222_s20 = scalar_lea.vmem %s3029_s2, %s1539_s6 }
 0x178   : > { %v1154_v62 = vrot.slane %v1153_v22, 1 }
 0x179   : > { %s1610_s22 = spop %1609 }
 0x17a   : > { %v1155_v23 = vadd.f32 %v1154_v62, %v1153_v22  ;;  %s1612_s24 = spop %1611  ;;  %s786_s30 = sadd.f32 %s1610_s22, %s666_s26 }
 0x17b   : > { %s797_s5 = sadd.f32 %s1612_s24, %s677_s27  ;;  %s229_s27 = scalar_lea.vmem %s3030_s3, %s1539_s6 }
 0x17f   : > { %v1138_v52 = vpop.xlane.xlu0 %1137 }
 0x180   : > { %v1139_v6 = vrot.slane %v1138_v52, 4 }
 0x182   : > { %v1140_v10 = vadd.f32 %v1139_v6, %v1138_v52 }
 0x184   : > { %v1141_v33 = vrot.slane %v1140_v10, 2 }
 0x186   : > { %v1142_v35 = vadd.f32 %v1141_v33, %v1140_v10  ;;  %v1269_v41 = vpop.xlane.xlu1 %1268 }
 0x187   : > { %v1270_v45 = vrot.slane %v1269_v41, 4 }
 0x188   : > { %v1143_v37 = vrot.slane %v1142_v35, 1 }
 0x189   : > { %v1271_v61 = vadd.f32 %v1270_v45, %v1269_v41  ;;  %s1614_s25 = spop %1613 }
 0x18a   : > { %v1144_v14 = vadd.f32 %v1143_v37, %v1142_v35  ;;  %s1616_s28 = spop %1615  ;;  %s906_s8 = sadd.f32 %s1614_s25, %s786_s30 }
 0x18b   : > { %v1272_v50 = vrot.slane %v1271_v61, 2  ;;  %s917_s9 = sadd.f32 %s1616_s28, %s797_s5 }
 0x18c   : > { %1621 = vpush %v1144_v14 }
 0x18d   : > { %1623 = vpush %v1155_v23  ;;  %v1273_v4 = vadd.f32 %v1272_v50, %v1271_v61 }
 0x18f   : > { %v1274_v17 = vrot.slane %v1273_v4, 1 }
 0x191   : > { %v1275_v34 = vadd.f32 %v1274_v17, %v1273_v4 }
 0x195   : > { %v1258_v58 = vpop.xlane.xlu0 %1257 }
 0x196   : > { %v1259_v29 = vrot.slane %v1258_v58, 4 }
 0x198   : > { %v1260_v57 = vadd.f32 %v1259_v29, %v1258_v58 }
 0x19a   : > { %v1261_v11 = vrot.slane %v1260_v57, 2 }
 0x19c   : > { %v1262_v48 = vadd.f32 %v1261_v11, %v1260_v57 }
 0x19e   : > { %v1263_v42 = vrot.slane %v1262_v48, 1 }
 0x1a0   : > { %v1264_v49 = vadd.f32 %v1263_v42, %v1262_v48 }
 0x1a1   : > { %v1389_v16 = vpop.xlane.xlu1 %1388 }
 0x1a2   : > { %1625 = vpush %v1264_v49  ;;  %v1390_v28 = vrot.slane %v1389_v16, 4 }
 0x1a3   : > { %1627 = vpush %v1275_v34  ;;  %s1618_s29 = spop %1617 }
 0x1a4   : > { %v1391_v30 = vadd.f32 %v1390_v28, %v1389_v16  ;;  %s1620_s4 = spop %1619  ;;  %s1026_s11 = sadd.f32 %s1618_s29, %s906_s8 }
 0x1a5   : > { %s1037_s1 = sadd.f32 %s1620_s4, %s917_s9 }
 0x1a6   : > { %v1392_v39 = vrot.slane %v1391_v30, 2 }
 0x1a8   : > { %v1393_v32 = vadd.f32 %v1392_v39, %v1391_v30 }
 0x1aa   : > { %v1394_v1 = vrot.slane %v1393_v32, 1 }
 0x1ac   : > { %v1395_v56 = vadd.f32 %v1394_v1, %v1393_v32 }
 0x1af   : > { %v1378_v3 = vpop.xlane.xlu0 %1377 }
 0x1b0   : > { %v1379_v2 = vrot.slane %v1378_v3, 4 }
 0x1b2   : > { %v1380_v8 = vadd.f32 %v1379_v2, %v1378_v3 }
 0x1b4   : > { %v1381_v38 = vrot.slane %v1380_v8, 2 }
 0x1b6   : > { %v1382_v40 = vadd.f32 %v1381_v38, %v1380_v8 }
 0x1b8   : > { %v1383_v55 = vrot.slane %v1382_v40, 1 }
 0x1ba   : > { %v1384_v20 = vadd.f32 %v1383_v55, %v1382_v40 }
 0x1bc   : > { %1629 = vpush %v1384_v20 }
 0x1bd   : > { %1631 = vpush %v1395_v56  ;;  %s1622_s7 = spop %1621 }
 0x1be   : > { %s1624_s10 = spop %1623  ;;  %s1146_s17 = sadd.f32 %s1622_s7, %s1026_s11 }
 0x1bf   : > { %s1157_s18 = sadd.f32 %s1624_s10, %s1037_s1 }
 0x1d3   : > { %s1626_s0 = spop %1625 }
 0x1d4   : > { %s1628_s15 = spop %1627  ;;  %s1266_s16 = sadd.f32 %s1626_s0, %s1146_s17 }
 0x1d5   : > { %s1277_s21 = sadd.f32 %s1628_s15, %s1157_s18 }
 0x1ed   : > { %s1630_s22 = spop %1629 }
 0x1ee   : > { %s1386_s23 = sadd.f32 %s1630_s22, %s1266_s16  ;;  %s1632_s24 = spop %1631 }
 0x1ef   : > { %s1397_s28 = sadd.f32 %s1632_s24, %s1277_s21 }
 0x1f0   : > { %v1398_v0 = vstv %s1386_s23 }
 0x1f1   : > { %1400 = vst [vmem:[%s222_s20] sm:$0xff] %v1398_v0  ;;  %v1401_v47 = vstv %s1397_s28 }
 0x1f2   : > { %1403 = vst [vmem:[%s229_s27] sm:$0xff] %v1401_v47 }
 0x1f3 PF: > { %s15_s14 = sadd.s32 1, %s1764_s14   ;;  %s3115_s12 = sld [smem:[#allocation5_spill]] }
 0x1f4   : > { %p12_p2 = scmp.ge.s32.totalorder %s15_s14, 4   ;;  %s3116_s13 = sld [smem:[#allocation6_spill]] }
 0x1f6   :  { %14 = sbr.rel (!%p12_p2) target bundleno = 5 (0x5), region = 75 }
 0x1fd   :  { %1449 = vsyncpa [#allocation3], 1 }
 0x1fe   :  { %1451 = vsyncpa [#allocation3 + $0x1], 1 }

</bundles_post_ra>
